<compile_context>
chip_gen: v6e
topology: v6e:2x2x1
jax: 0.10.0
libtpu: 0.0.40
codegen_flags: <defaults>
</compile_context>

<pallas_src>
import functools

import jax
import jax.numpy as jnp
from jax.experimental import pallas as pl
from jax.experimental.pallas import tpu as pltpu

_CompilerParams = getattr(pltpu, "CompilerParams", None) or getattr(
    pltpu, "TPUCompilerParams", None)

_HALO_L = 8  # left halo width -> interior columns start sublane-aligned


def _round_up(x, m):
    return (x + m - 1) // m * m


def _cout_block(cout):
    if cout <= 256:
        return cout
    if cout % 256 == 0:
        return 256
    if cout % 128 == 0:
        return 128
    return cout


def _fold(w, scale):
    """Fold per-output-channel BN scale into conv weights (f32), cast bf16."""
    return (w.astype(jnp.float32) * scale.astype(jnp.float32)).astype(jnp.bfloat16)


def _row(v):
    return v.reshape(1, -1).astype(jnp.float32)


# ---------------------------------------------------------------------------
# Fused Bottleneck kernel (one grid step == one batch image)
# ---------------------------------------------------------------------------
def _bottleneck_kernel(*refs, H, W, Cin, c_, Cout, stride, has_down, cb):
    it = iter(refs)
    x_ref = next(it)
    xres_ref = next(it) if (has_down and stride > 1) else None
    w1_ref, b1_ref = next(it), next(it)
    w2_ref, b2_ref = next(it), next(it)
    w3_ref, b3_ref = next(it), next(it)
    if has_down:
        wd_ref, bd_ref = next(it), next(it)
    else:
        wd_ref = bd_ref = None
    o_ref = next(it)
    pad_ref = next(it)
    slab_ref = next(it)

    s = stride
    Ho = (H - 1) // s + 1
    Wo = (W - 1) // s + 1
    f32, bf16 = jnp.float32, jnp.bfloat16
    Hp, Wp, _ = pad_ref.shape

    # -- zero ONLY the halo ring (interior is fully overwritten every step).
    #    Done every step so correctness never depends on how the batch axis is
    #    scheduled / split across TensorCores.
    pad_ref[0, :, :] = jnp.zeros((Wp, c_), bf16)
    pad_ref[H + 1:Hp, :, :] = jnp.zeros((Hp - (H + 1), Wp, c_), bf16)
    pad_ref[:, 0:_HALO_L, :] = jnp.zeros((Hp, _HALO_L, c_), bf16)
    pad_ref[:, _HALO_L + W:Wp, :] = jnp.zeros((Hp, Wp - _HALO_L - W, c_), bf16)

    # -- cv1: 1x1 conv (BN scale already folded into weights) + bias + ReLU --
    x2d = x_ref[...].reshape(H * W, Cin)                        # bf16
    y1 = jnp.dot(x2d, w1_ref[...], preferred_element_type=f32)
    y1 = jnp.maximum(y1 + b1_ref[...], 0.0)
    # interior write starts at column _HALO_L -> sublane-aligned full stores
    pad_ref[1:H + 1, _HALO_L:_HALO_L + W, :] = (
        y1.reshape(H, W, c_).astype(bf16))

    # -- build the 3 kw-shifted slabs once; reuse across the 3 kh taps -------
    for kw in range(3):
        col0 = _HALO_L - 1 + kw
        if s == 1:
            slab_ref[kw, :, :, :] = pad_ref[:, col0:col0 + Wo, :]
        else:
            # single-axis (sublane) strided read == column subsample
            slab_ref[kw, :, :, :] = pad_ref[:, pl.ds(col0, Wo, stride=s), :]

    # -- cv2: 3x3 conv as 9 MXU matmuls accumulated in a local f32 value -----
    acc = None
    for kh in range(3):
        for kw in range(3):
            if s == 1:
                tap = slab_ref[kw, kh:kh + Ho, :, :]            # (Ho, Wo, c_)
            else:
                # row subsample via leading-dim reshape (no strided ref read)
                tap = slab_ref[kw, kh:kh + s * Ho, :, :]
                tap = tap.reshape(Ho, s, Wo, c_)[:, 0]
            d = jnp.dot(tap.reshape(Ho * Wo, c_), w2_ref[kh * 3 + kw],
                        preferred_element_type=f32)
            acc = d if acc is None else acc + d
    # TODO(synk): for large c_, merge the 3 kw taps per kh into one K=3*c_
    # matmul to better feed the 256-wide MXU on v6e/v7x.
    y2 = jnp.maximum(acc + b2_ref[...], 0.0).astype(bf16)       # (Ho*Wo, c_)

    # -- residual input --------------------------------------------------------
    if has_down:
        xr2d = xres_ref[...].reshape(Ho * Wo, Cin) if s > 1 else x2d

    # -- cv3 (+downsample) + residual add + ReLU, tiled over Cout blocks ------
    for c0 in range(0, Cout, cb):
        y3 = jnp.dot(y2, w3_ref[:, c0:c0 + cb], preferred_element_type=f32)
        y3 = y3 + b3_ref[:, c0:c0 + cb]
        if has_down:
            res = jnp.dot(xr2d, wd_ref[:, c0:c0 + cb],
                          preferred_element_type=f32)
            res = res + bd_ref[:, c0:c0 + cb]
        else:
            # identity residual (Cin == Cout, stride == 1)
            res = x2d[:, c0:c0 + cb].astype(f32)
        blk = jnp.maximum(y3 + res, 0.0)
        o_ref[0, :, :, c0:c0 + cb] = blk.reshape(Ho, Wo, cb).astype(o_ref.dtype)


# ---------------------------------------------------------------------------
# Bottleneck forward (Pallas)
# ---------------------------------------------------------------------------
def bottleneck_forward(x_nchw, params, *, stride=1):
    out_dtype = x_nchw.dtype
    x = jnp.transpose(x_nchw, (0, 2, 3, 1)).astype(jnp.bfloat16)  # NCHW->NHWC
    N, H, W, Cin = x.shape

    w1, s1, b1 = params["cv1"]
    w2, s2, b2 = params["cv2"]
    w3, s3, b3 = params["cv3"]
    c_ = w1.shape[-1]
    Cout = w3.shape[-1]
    has_down = "down" in params
    if not has_down and (Cin != Cout or stride != 1):
        raise ValueError("identity residual requires Cin == Cout and stride == 1")

    s = int(stride)
    Ho = (H - 1) // s + 1
    Wo = (W - 1) // s + 1
    cb = _cout_block(Cout)

    # Fold BN scale into the weights' output channels (f32), cast to bf16.
    w1m = _fold(w1, s1).reshape(Cin, c_)
    w2m = _fold(w2, s2).reshape(9, c_, c_)
    w3m = _fold(w3, s3).reshape(c_, Cout)

    act_inputs = [x]
    act_specs = [pl.BlockSpec((1, H, W, Cin), lambda n: (n, 0, 0, 0))]
    if has_down and s > 1:
        # pre-strided residual input built in glue -> no in-kernel striding
        x_res = x[:, ::s, ::s, :]
        act_inputs.append(x_res)
        act_specs.append(pl.BlockSpec((1, Ho, Wo, Cin), lambda n: (n, 0, 0, 0)))

    const_inputs = [w1m, _row(b1), w2m, _row(b2), w3m, _row(b3)]
    if has_down:
        wd, sd, bd = params["down"]
        const_inputs += [_fold(wd, sd).reshape(Cin, Cout), _row(bd)]

    def _const_spec(a):
        zeros = (0,) * a.ndim
        imap = lambda n, _z=zeros: _z
        if hasattr(pl, "Buffered"):
            try:
                # grid-invariant operands -> single VMEM buffer (saves VMEM)
                return pl.BlockSpec(a.shape, imap, pipeline_mode=pl.Buffered(1))
            except TypeError:
                pass
        return pl.BlockSpec(a.shape, imap)

    in_specs = act_specs + [_const_spec(a) for a in const_inputs]
    out_specs = pl.BlockSpec((1, Ho, Wo, Cout), lambda n: (n, 0, 0, 0))

    Hp = max(H + 2, s * Ho + 2)
    Wp = _HALO_L + _round_up(W + 1, 8)
    scratch_shapes = [
        pltpu.VMEM((Hp, Wp, c_), jnp.bfloat16),       # padded cv1 output
        pltpu.VMEM((3, Hp, Wo, c_), jnp.bfloat16),    # kw-shifted slabs
    ]

    # ---- VMEM budget: per-generation cap via get_tpu_info (~85%) ------------
    out_item = jnp.dtype(out_dtype).itemsize
    est = 2 * H * W * Cin * 2 + 2 * Ho * Wo * Cout * out_item
    if has_down and s > 1:
        est += 2 * Ho * Wo * Cin * 2
    wbytes = sum(int(a.size) * a.dtype.itemsize for a in const_inputs)
    est += wbytes * (1 if hasattr(pl, "Buffered") else 2)
    est += Hp * Wp * c_ * 2 + 3 * Hp * Wo * c_ * 2
    est += H * W * c_ * 4 + Ho * Wo * c_ * 6 + 2 * Ho * Wo * cb * 4
    try:
        cap = int(pltpu.get_tpu_info().vmem_capacity_bytes)
    except Exception:
        cap = 64 * 1024 * 1024          # conservative fallback (v7x per-TC)
    ceiling = (cap * 85) // 100
    vmem_limit = int(min(ceiling, max(32 * 1024 * 1024, 2 * est)))

    kernel = functools.partial(
        _bottleneck_kernel, H=H, W=W, Cin=Cin, c_=c_, Cout=Cout,
        stride=s, has_down=has_down, cb=cb)

    out = pl.pallas_call(
        kernel,
        out_shape=jax.ShapeDtypeStruct((N, Ho, Wo, Cout), out_dtype),
        grid_spec=pltpu.PrefetchScalarGridSpec(
            num_scalar_prefetch=0,
            grid=(N,),
            in_specs=in_specs,
            out_specs=out_specs,
            scratch_shapes=scratch_shapes),
        compiler_params=_CompilerParams(
            dimension_semantics=("parallel",),
            vmem_limit_bytes=vmem_limit),
    )(*(act_inputs + const_inputs))

    # TODO(synk): for v7x (2 TensorCores) with batch == 1, add a spatial
    # (output-row) grid axis with a 1-row halo re-fetch so both cores are busy.
    return jnp.transpose(out, (0, 3, 1, 2))                      # NHWC -> NCHW


# ---------------------------------------------------------------------------
# Deterministic parameter init (Conv weight HWIO + folded BN scale/bias)
# ---------------------------------------------------------------------------
def init_convbn(key, cin, cout, k, eps=1e-5):
    k1, k2, k3, k4, k5 = jax.random.split(key, 5)
    w = jax.random.normal(k1, (k, k, cin, cout), jnp.float32) / jnp.sqrt(k * k * cin)
    gamma = jax.random.uniform(k2, (cout,), jnp.float32, 0.5, 1.5)
    beta = jax.random.normal(k3, (cout,), jnp.float32) * 0.1
    mean = jax.random.normal(k4, (cout,), jnp.float32) * 0.1
    var = jax.random.uniform(k5, (cout,), jnp.float32, 0.5, 1.5)
    scale = gamma / jnp.sqrt(var + eps)
    bias = beta - mean * scale
    return w, scale, bias


# ---------------------------------------------------------------------------
# Pure-JAX reference with the same numerics (folded BN, bf16 in, f32 accum)
# ---------------------------------------------------------------------------
def ref_forward(x_nchw, params, *, stride=1):
    x = jnp.transpose(x_nchw, (0, 2, 3, 1)).astype(jnp.bfloat16)

    def cba(h, w, scale, bias, st, relu):
        wf = _fold(w, scale)
        k = w.shape[0]
        pad = (k - 1) // 2
        y = jax.lax.conv_general_dilated(
            h.astype(jnp.bfloat16), wf, (st, st), [(pad, pad), (pad, pad)],
            dimension_numbers=("NHWC", "HWIO", "NHWC"),
            preferred_element_type=jnp.float32)
        y = y + bias.astype(jnp.float32)
        return jnp.maximum(y, 0.0) if relu else y

    w1, s1, b1 = params["cv1"]
    w2, s2, b2 = params["cv2"]
    w3, s3, b3 = params["cv3"]
    h = cba(x, w1, s1, b1, 1, True)
    h = cba(h, w2, s2, b2, stride, True)
    h = cba(h, w3, s3, b3, 1, False)
    if "down" in params:
        wd, sd, bd = params["down"]
        res = cba(x, wd, sd, bd, stride, False)
    else:
        res = x.astype(jnp.float32)
    out = jnp.maximum(h + res, 0.0)
    return jnp.transpose(out, (0, 3, 1, 2)).astype(x_nchw.dtype)


# ---------------------------------------------------------------------------
if __name__ == "__main__":
    def run_case(case_key, N, Cin, Cout, H, W, stride):
        c_ = Cout // 4
        kx, k1, k2, k3, kd = jax.random.split(case_key, 5)
        x = jax.random.normal(kx, (N, Cin, H, W), jnp.float32)
        params = {
            "cv1": init_convbn(k1, Cin, c_, 1),
            "cv2": init_convbn(k2, c_, c_, 3),
            "cv3": init_convbn(k3, c_, Cout, 1),
        }
        if Cin != Cout or stride > 1:
            params["down"] = init_convbn(kd, Cin, Cout, 1)

        fwd = jax.jit(functools.partial(bottleneck_forward, stride=stride))
        out = jax.block_until_ready(fwd(x, params))
        ref = ref_forward(x, params, stride=stride)
        assert out.shape == ref.shape, (out.shape, ref.shape)
        if not jnp.allclose(out, ref, atol=1e-2, rtol=1e-2):
            err = float(jnp.max(jnp.abs(out - ref)))
            raise SystemExit(f"mismatch vs reference (max abs err {err:.4e})")

    key = jax.random.PRNGKey(0)
    k_a, k_b, k_c = jax.random.split(key, 3)
    # 1) projection (1x1 downsample) residual: Cin != Cout
    run_case(k_a, N=2, Cin=8, Cout=32, H=16, W=16, stride=1)
    # 2) identity residual: Cin == Cout, stride == 1
    run_case(k_b, N=2, Cin=32, Cout=32, H=16, W=16, stride=1)
    # 3) strided block: stride=2 with projection residual
    run_case(k_c, N=2, Cin=16, Cout=32, H=16, W=16, stride=2)

    print("KERNEL_OK")
</pallas_src>

<mosaic_0001>
module attributes {stable_mosaic.version = 11 : i64} {
  func.func @_bottleneck_kernel(%arg0: i32, %arg1: memref<1x16x16x8xbf16, #tpu.memory_space<vmem>>, %arg2: memref<8x8xbf16, #tpu.memory_space<vmem>>, %arg3: memref<1x8xf32, #tpu.memory_space<vmem>>, %arg4: memref<9x8x8xbf16, #tpu.memory_space<vmem>>, %arg5: memref<1x8xf32, #tpu.memory_space<vmem>>, %arg6: memref<8x32xbf16, #tpu.memory_space<vmem>>, %arg7: memref<1x32xf32, #tpu.memory_space<vmem>>, %arg8: memref<8x32xbf16, #tpu.memory_space<vmem>>, %arg9: memref<1x32xf32, #tpu.memory_space<vmem>>, %arg10: memref<1x16x16x32xf32, #tpu.memory_space<vmem>>, %arg11: memref<18x32x8xbf16, #tpu.memory_space<vmem>>, %arg12: memref<3x18x16x8xbf16, #tpu.memory_space<vmem>>) attributes {dimension_semantics = [#tpu.dimension_semantics<parallel>], iteration_bounds = array<i64: 2>, scalar_prefetch = 0 : i64, scratch_operands = 2 : i64, tpu.core_type = #tpu.core_type<tc>, window_params = [{transform_indices = @transform_0, window_bounds = array<i64: 1, 16, 16, 8>}, {pipeline_mode = #tpu.pipeline_mode<synchronous>, transform_indices = @transform_1, window_bounds = array<i64: 8, 8>}, {pipeline_mode = #tpu.pipeline_mode<synchronous>, transform_indices = @transform_2, window_bounds = array<i64: 1, 8>}, {pipeline_mode = #tpu.pipeline_mode<synchronous>, transform_indices = @transform_3, window_bounds = array<i64: 9, 8, 8>}, {pipeline_mode = #tpu.pipeline_mode<synchronous>, transform_indices = @transform_4, window_bounds = array<i64: 1, 8>}, {pipeline_mode = #tpu.pipeline_mode<synchronous>, transform_indices = @transform_5, window_bounds = array<i64: 8, 32>}, {pipeline_mode = #tpu.pipeline_mode<synchronous>, transform_indices = @transform_6, window_bounds = array<i64: 1, 32>}, {pipeline_mode = #tpu.pipeline_mode<synchronous>, transform_indices = @transform_7, window_bounds = array<i64: 8, 32>}, {pipeline_mode = #tpu.pipeline_mode<synchronous>, transform_indices = @transform_8, window_bounds = array<i64: 1, 32>}, {transform_indices = @transform_9, window_bounds = array<i64: 1, 16, 16, 32>}]} {
    %cst = arith.constant 0.000000e+00 : bf16
    %0 = vector.broadcast %cst : bf16 to vector<32x8xbf16>
    %c0 = arith.constant 0 : index
    %c0_0 = arith.constant 0 : index
    %c0_1 = arith.constant 0 : index
    %1 = vector.load %arg11[%c0, %c0_0, %c0_1] : memref<18x32x8xbf16, #tpu.memory_space<vmem>>, vector<1x32x8xbf16>
    %2 = vector.shape_cast %1 : vector<1x32x8xbf16> to vector<32x8xbf16>
    %3 = vector.shape_cast %0 : vector<32x8xbf16> to vector<1x32x8xbf16>
    tpu.vector_store %arg11[%c0, %c0_0, %c0_1], %3 {strides = array<i32>} : memref<18x32x8xbf16, #tpu.memory_space<vmem>>, vector<1x32x8xbf16>,
    %cst_2 = arith.constant 0.000000e+00 : bf16
    %4 = vector.broadcast %cst_2 : bf16 to vector<1x32x8xbf16>
    %c17 = arith.constant 17 : index
    %c0_3 = arith.constant 0 : index
    %c0_4 = arith.constant 0 : index
    %5 = vector.load %arg11[%c17, %c0_3, %c0_4] : memref<18x32x8xbf16, #tpu.memory_space<vmem>>, vector<1x32x8xbf16>
    tpu.vector_store %arg11[%c17, %c0_3, %c0_4], %4 {strides = array<i32>} : memref<18x32x8xbf16, #tpu.memory_space<vmem>>, vector<1x32x8xbf16>,
    %cst_5 = arith.constant 0.000000e+00 : bf16
    %6 = vector.broadcast %cst_5 : bf16 to vector<18x8x8xbf16>
    %c0_6 = arith.constant 0 : index
    %c0_7 = arith.constant 0 : index
    %c0_8 = arith.constant 0 : index
    %7 = vector.load %arg11[%c0_6, %c0_7, %c0_8] : memref<18x32x8xbf16, #tpu.memory_space<vmem>>, vector<18x8x8xbf16>
    tpu.vector_store %arg11[%c0_6, %c0_7, %c0_8], %6 {strides = array<i32>} : memref<18x32x8xbf16, #tpu.memory_space<vmem>>, vector<18x8x8xbf16>,
    %cst_9 = arith.constant 0.000000e+00 : bf16
    %8 = vector.broadcast %cst_9 : bf16 to vector<18x8x8xbf16>
    %c0_10 = arith.constant 0 : index
    %c24 = arith.constant 24 : index
    %c0_11 = arith.constant 0 : index
    %9 = vector.load %arg11[%c0_10, %c24, %c0_11] : memref<18x32x8xbf16, #tpu.memory_space<vmem>>, vector<18x8x8xbf16>
    tpu.vector_store %arg11[%c0_10, %c24, %c0_11], %8 {strides = array<i32>} : memref<18x32x8xbf16, #tpu.memory_space<vmem>>, vector<18x8x8xbf16>,
    %c0_12 = arith.constant 0 : index
    %c0_13 = arith.constant 0 : index
    %c0_14 = arith.constant 0 : index
    %c0_15 = arith.constant 0 : index
    %10 = vector.load %arg1[%c0_12, %c0_13, %c0_14, %c0_15] : memref<1x16x16x8xbf16, #tpu.memory_space<vmem>>, vector<1x16x16x8xbf16>
    %11 = vector.shape_cast %10 : vector<1x16x16x8xbf16> to vector<256x8xbf16>
    %c0_16 = arith.constant 0 : index
    %c0_17 = arith.constant 0 : index
    %12 = vector.load %arg2[%c0_16, %c0_17] : memref<8x8xbf16, #tpu.memory_space<vmem>>, vector<8x8xbf16>
    %cst_18 = arith.constant dense<0.000000e+00> : vector<256x8xf32>
    %13 = tpu.matmul %11, %12, %cst_18 {dimension_numbers = #tpu.dot_dimension_numbers<[1], [0], [0], [1], [0, 0, 1, 1], [], []>} : vector<256x8xbf16>, vector<8x8xbf16>, vector<256x8xf32> -> vector<256x8xf32>
    %c0_19 = arith.constant 0 : index
    %c0_20 = arith.constant 0 : index
    %14 = vector.load %arg3[%c0_19, %c0_20] : memref<1x8xf32, #tpu.memory_space<vmem>>, vector<1x8xf32>
    %15 = vector.broadcast %14 : vector<1x8xf32> to vector<256x8xf32>
    %16 = arith.addf %13, %15 : vector<256x8xf32>
    %cst_21 = arith.constant 0.000000e+00 : f32
    %17 = vector.broadcast %cst_21 : f32 to vector<256x8xf32>
    %18 = arith.maximumf %16, %17 : vector<256x8xf32>
    %19 = vector.shape_cast %18 : vector<256x8xf32> to vector<16x16x8xf32>
    %20 = arith.truncf %19 : vector<16x16x8xf32> to vector<16x16x8xbf16>
    %c1 = arith.constant 1 : index
    %c8 = arith.constant 8 : index
    %c0_22 = arith.constant 0 : index
    %21 = vector.load %arg11[%c1, %c8, %c0_22] : memref<18x32x8xbf16, #tpu.memory_space<vmem>>, vector<16x16x8xbf16>
    tpu.vector_store %arg11[%c1, %c8, %c0_22], %20 {strides = array<i32>} : memref<18x32x8xbf16, #tpu.memory_space<vmem>>, vector<16x16x8xbf16>,
    %c0_23 = arith.constant 0 : index
    %c7 = arith.constant 7 : index
    %c0_24 = arith.constant 0 : index
    %22 = vector.load %arg11[%c0_23, %c7, %c0_24] : memref<18x32x8xbf16, #tpu.memory_space<vmem>>, vector<18x16x8xbf16>
    %c0_25 = arith.constant 0 : index
    %c0_26 = arith.constant 0 : index
    %c0_27 = arith.constant 0 : index
    %c0_28 = arith.constant 0 : index
    %23 = vector.load %arg12[%c0_25, %c0_26, %c0_27, %c0_28] : memref<3x18x16x8xbf16, #tpu.memory_space<vmem>>, vector<1x18x16x8xbf16>
    %24 = vector.shape_cast %23 : vector<1x18x16x8xbf16> to vector<18x16x8xbf16>
    %25 = vector.shape_cast %22 : vector<18x16x8xbf16> to vector<1x18x16x8xbf16>
    tpu.vector_store %arg12[%c0_25, %c0_26, %c0_27, %c0_28], %25 {strides = array<i32>} : memref<3x18x16x8xbf16, #tpu.memory_space<vmem>>, vector<1x18x16x8xbf16>,
    %c0_29 = arith.constant 0 : index
    %c8_30 = arith.constant 8 : index
    %c0_31 = arith.constant 0 : index
    %26 = vector.load %arg11[%c0_29, %c8_30, %c0_31] : memref<18x32x8xbf16, #tpu.memory_space<vmem>>, vector<18x16x8xbf16>
    %c1_32 = arith.constant 1 : index
    %c0_33 = arith.constant 0 : index
    %c0_34 = arith.constant 0 : index
    %c0_35 = arith.constant 0 : index
    %27 = vector.load %arg12[%c1_32, %c0_33, %c0_34, %c0_35] : memref<3x18x16x8xbf16, #tpu.memory_space<vmem>>, vector<1x18x16x8xbf16>
    %28 = vector.shape_cast %27 : vector<1x18x16x8xbf16> to vector<18x16x8xbf16>
    %29 = vector.shape_cast %26 : vector<18x16x8xbf16> to vector<1x18x16x8xbf16>
    tpu.vector_store %arg12[%c1_32, %c0_33, %c0_34, %c0_35], %29 {strides = array<i32>} : memref<3x18x16x8xbf16, #tpu.memory_space<vmem>>, vector<1x18x16x8xbf16>,
    %c0_36 = arith.constant 0 : index
    %c9 = arith.constant 9 : index
    %c0_37 = arith.constant 0 : index
    %30 = vector.load %arg11[%c0_36, %c9, %c0_37] : memref<18x32x8xbf16, #tpu.memory_space<vmem>>, vector<18x16x8xbf16>
    %c2 = arith.constant 2 : index
    %c0_38 = arith.constant 0 : index
    %c0_39 = arith.constant 0 : index
    %c0_40 = arith.constant 0 : index
    %31 = vector.load %arg12[%c2, %c0_38, %c0_39, %c0_40] : memref<3x18x16x8xbf16, #tpu.memory_space<vmem>>, vector<1x18x16x8xbf16>
    %32 = vector.shape_cast %31 : vector<1x18x16x8xbf16> to vector<18x16x8xbf16>
    %33 = vector.shape_cast %30 : vector<18x16x8xbf16> to vector<1x18x16x8xbf16>
    tpu.vector_store %arg12[%c2, %c0_38, %c0_39, %c0_40], %33 {strides = array<i32>} : memref<3x18x16x8xbf16, #tpu.memory_space<vmem>>, vector<1x18x16x8xbf16>,
    %c0_41 = arith.constant 0 : index
    %c0_42 = arith.constant 0 : index
    %c0_43 = arith.constant 0 : index
    %c0_44 = arith.constant 0 : index
    %34 = vector.load %arg12[%c0_41, %c0_42, %c0_43, %c0_44] : memref<3x18x16x8xbf16, #tpu.memory_space<vmem>>, vector<1x16x16x8xbf16>
    %35 = vector.shape_cast %34 : vector<1x16x16x8xbf16> to vector<16x16x8xbf16>
    %36 = vector.shape_cast %35 : vector<16x16x8xbf16> to vector<256x8xbf16>
    %c0_45 = arith.constant 0 : index
    %c0_46 = arith.constant 0 : index
    %c0_47 = arith.constant 0 : index
    %37 = vector.load %arg4[%c0_45, %c0_46, %c0_47] : memref<9x8x8xbf16, #tpu.memory_space<vmem>>, vector<1x8x8xbf16>
    %38 = vector.shape_cast %37 : vector<1x8x8xbf16> to vector<8x8xbf16>
    %cst_48 = arith.constant dense<0.000000e+00> : vector<256x8xf32>
    %39 = tpu.matmul %36, %38, %cst_48 {dimension_numbers = #tpu.dot_dimension_numbers<[1], [0], [0], [1], [0, 0, 1, 1], [], []>} : vector<256x8xbf16>, vector<8x8xbf16>, vector<256x8xf32> -> vector<256x8xf32>
    %c1_49 = arith.constant 1 : index
    %c0_50 = arith.constant 0 : index
    %c0_51 = arith.constant 0 : index
    %c0_52 = arith.constant 0 : index
    %40 = vector.load %arg12[%c1_49, %c0_50, %c0_51, %c0_52] : memref<3x18x16x8xbf16, #tpu.memory_space<vmem>>, vector<1x16x16x8xbf16>
    %41 = vector.shape_cast %40 : vector<1x16x16x8xbf16> to vector<16x16x8xbf16>
    %42 = vector.shape_cast %41 : vector<16x16x8xbf16> to vector<256x8xbf16>
    %c1_53 = arith.constant 1 : index
    %c0_54 = arith.constant 0 : index
    %c0_55 = arith.constant 0 : index
    %43 = vector.load %arg4[%c1_53, %c0_54, %c0_55] : memref<9x8x8xbf16, #tpu.memory_space<vmem>>, vector<1x8x8xbf16>
    %44 = vector.shape_cast %43 : vector<1x8x8xbf16> to vector<8x8xbf16>
    %cst_56 = arith.constant dense<0.000000e+00> : vector<256x8xf32>
    %45 = tpu.matmul %42, %44, %cst_56 {dimension_numbers = #tpu.dot_dimension_numbers<[1], [0], [0], [1], [0, 0, 1, 1], [], []>} : vector<256x8xbf16>, vector<8x8xbf16>, vector<256x8xf32> -> vector<256x8xf32>
    %46 = arith.addf %39, %45 : vector<256x8xf32>
    %c2_57 = arith.constant 2 : index
    %c0_58 = arith.constant 0 : index
    %c0_59 = arith.constant 0 : index
    %c0_60 = arith.constant 0 : index
    %47 = vector.load %arg12[%c2_57, %c0_58, %c0_59, %c0_60] : memref<3x18x16x8xbf16, #tpu.memory_space<vmem>>, vector<1x16x16x8xbf16>
    %48 = vector.shape_cast %47 : vector<1x16x16x8xbf16> to vector<16x16x8xbf16>
    %49 = vector.shape_cast %48 : vector<16x16x8xbf16> to vector<256x8xbf16>
    %c2_61 = arith.constant 2 : index
    %c0_62 = arith.constant 0 : index
    %c0_63 = arith.constant 0 : index
    %50 = vector.load %arg4[%c2_61, %c0_62, %c0_63] : memref<9x8x8xbf16, #tpu.memory_space<vmem>>, vector<1x8x8xbf16>
    %51 = vector.shape_cast %50 : vector<1x8x8xbf16> to vector<8x8xbf16>
    %cst_64 = arith.constant dense<0.000000e+00> : vector<256x8xf32>
    %52 = tpu.matmul %49, %51, %cst_64 {dimension_numbers = #tpu.dot_dimension_numbers<[1], [0], [0], [1], [0, 0, 1, 1], [], []>} : vector<256x8xbf16>, vector<8x8xbf16>, vector<256x8xf32> -> vector<256x8xf32>
    %53 = arith.addf %46, %52 : vector<256x8xf32>
    %c0_65 = arith.constant 0 : index
    %c1_66 = arith.constant 1 : index
    %c0_67 = arith.constant 0 : index
    %c0_68 = arith.constant 0 : index
    %54 = vector.load %arg12[%c0_65, %c1_66, %c0_67, %c0_68] : memref<3x18x16x8xbf16, #tpu.memory_space<vmem>>, vector<1x16x16x8xbf16>
    %55 = vector.shape_cast %54 : vector<1x16x16x8xbf16> to vector<16x16x8xbf16>
    %56 = vector.shape_cast %55 : vector<16x16x8xbf16> to vector<256x8xbf16>
    %c3 = arith.constant 3 : index
    %c0_69 = arith.constant 0 : index
    %c0_70 = arith.constant 0 : index
    %57 = vector.load %arg4[%c3, %c0_69, %c0_70] : memref<9x8x8xbf16, #tpu.memory_space<vmem>>, vector<1x8x8xbf16>
    %58 = vector.shape_cast %57 : vector<1x8x8xbf16> to vector<8x8xbf16>
    %cst_71 = arith.constant dense<0.000000e+00> : vector<256x8xf32>
    %59 = tpu.matmul %56, %58, %cst_71 {dimension_numbers = #tpu.dot_dimension_numbers<[1], [0], [0], [1], [0, 0, 1, 1], [], []>} : vector<256x8xbf16>, vector<8x8xbf16>, vector<256x8xf32> -> vector<256x8xf32>
    %60 = arith.addf %53, %59 : vector<256x8xf32>
    %c1_72 = arith.constant 1 : index
    %c1_73 = arith.constant 1 : index
    %c0_74 = arith.constant 0 : index
    %c0_75 = arith.constant 0 : index
    %61 = vector.load %arg12[%c1_72, %c1_73, %c0_74, %c0_75] : memref<3x18x16x8xbf16, #tpu.memory_space<vmem>>, vector<1x16x16x8xbf16>
    %62 = vector.shape_cast %61 : vector<1x16x16x8xbf16> to vector<16x16x8xbf16>
    %63 = vector.shape_cast %62 : vector<16x16x8xbf16> to vector<256x8xbf16>
    %c4 = arith.constant 4 : index
    %c0_76 = arith.constant 0 : index
    %c0_77 = arith.constant 0 : index
    %64 = vector.load %arg4[%c4, %c0_76, %c0_77] : memref<9x8x8xbf16, #tpu.memory_space<vmem>>, vector<1x8x8xbf16>
    %65 = vector.shape_cast %64 : vector<1x8x8xbf16> to vector<8x8xbf16>
    %cst_78 = arith.constant dense<0.000000e+00> : vector<256x8xf32>
    %66 = tpu.matmul %63, %65, %cst_78 {dimension_numbers = #tpu.dot_dimension_numbers<[1], [0], [0], [1], [0, 0, 1, 1], [], []>} : vector<256x8xbf16>, vector<8x8xbf16>, vector<256x8xf32> -> vector<256x8xf32>
    %67 = arith.addf %60, %66 : vector<256x8xf32>
    %c2_79 = arith.constant 2 : index
    %c1_80 = arith.constant 1 : index
    %c0_81 = arith.constant 0 : index
    %c0_82 = arith.constant 0 : index
    %68 = vector.load %arg12[%c2_79, %c1_80, %c0_81, %c0_82] : memref<3x18x16x8xbf16, #tpu.memory_space<vmem>>, vector<1x16x16x8xbf16>
    %69 = vector.shape_cast %68 : vector<1x16x16x8xbf16> to vector<16x16x8xbf16>
    %70 = vector.shape_cast %69 : vector<16x16x8xbf16> to vector<256x8xbf16>
    %c5 = arith.constant 5 : index
    %c0_83 = arith.constant 0 : index
    %c0_84 = arith.constant 0 : index
    %71 = vector.load %arg4[%c5, %c0_83, %c0_84] : memref<9x8x8xbf16, #tpu.memory_space<vmem>>, vector<1x8x8xbf16>
    %72 = vector.shape_cast %71 : vector<1x8x8xbf16> to vector<8x8xbf16>
    %cst_85 = arith.constant dense<0.000000e+00> : vector<256x8xf32>
    %73 = tpu.matmul %70, %72, %cst_85 {dimension_numbers = #tpu.dot_dimension_numbers<[1], [0], [0], [1], [0, 0, 1, 1], [], []>} : vector<256x8xbf16>, vector<8x8xbf16>, vector<256x8xf32> -> vector<256x8xf32>
    %74 = arith.addf %67, %73 : vector<256x8xf32>
    %c0_86 = arith.constant 0 : index
    %c2_87 = arith.constant 2 : index
    %c0_88 = arith.constant 0 : index
    %c0_89 = arith.constant 0 : index
    %75 = vector.load %arg12[%c0_86, %c2_87, %c0_88, %c0_89] : memref<3x18x16x8xbf16, #tpu.memory_space<vmem>>, vector<1x16x16x8xbf16>
    %76 = vector.shape_cast %75 : vector<1x16x16x8xbf16> to vector<16x16x8xbf16>
    %77 = vector.shape_cast %76 : vector<16x16x8xbf16> to vector<256x8xbf16>
    %c6 = arith.constant 6 : index
    %c0_90 = arith.constant 0 : index
    %c0_91 = arith.constant 0 : index
    %78 = vector.load %arg4[%c6, %c0_90, %c0_91] : memref<9x8x8xbf16, #tpu.memory_space<vmem>>, vector<1x8x8xbf16>
    %79 = vector.shape_cast %78 : vector<1x8x8xbf16> to vector<8x8xbf16>
    %cst_92 = arith.constant dense<0.000000e+00> : vector<256x8xf32>
    %80 = tpu.matmul %77, %79, %cst_92 {dimension_numbers = #tpu.dot_dimension_numbers<[1], [0], [0], [1], [0, 0, 1, 1], [], []>} : vector<256x8xbf16>, vector<8x8xbf16>, vector<256x8xf32> -> vector<256x8xf32>
    %81 = arith.addf %74, %80 : vector<256x8xf32>
    %c1_93 = arith.constant 1 : index
    %c2_94 = arith.constant 2 : index
    %c0_95 = arith.constant 0 : index
    %c0_96 = arith.constant 0 : index
    %82 = vector.load %arg12[%c1_93, %c2_94, %c0_95, %c0_96] : memref<3x18x16x8xbf16, #tpu.memory_space<vmem>>, vector<1x16x16x8xbf16>
    %83 = vector.shape_cast %82 : vector<1x16x16x8xbf16> to vector<16x16x8xbf16>
    %84 = vector.shape_cast %83 : vector<16x16x8xbf16> to vector<256x8xbf16>
    %c7_97 = arith.constant 7 : index
    %c0_98 = arith.constant 0 : index
    %c0_99 = arith.constant 0 : index
    %85 = vector.load %arg4[%c7_97, %c0_98, %c0_99] : memref<9x8x8xbf16, #tpu.memory_space<vmem>>, vector<1x8x8xbf16>
    %86 = vector.shape_cast %85 : vector<1x8x8xbf16> to vector<8x8xbf16>
    %cst_100 = arith.constant dense<0.000000e+00> : vector<256x8xf32>
    %87 = tpu.matmul %84, %86, %cst_100 {dimension_numbers = #tpu.dot_dimension_numbers<[1], [0], [0], [1], [0, 0, 1, 1], [], []>} : vector<256x8xbf16>, vector<8x8xbf16>, vector<256x8xf32> -> vector<256x8xf32>
    %88 = arith.addf %81, %87 : vector<256x8xf32>
    %c2_101 = arith.constant 2 : index
    %c2_102 = arith.constant 2 : index
    %c0_103 = arith.constant 0 : index
    %c0_104 = arith.constant 0 : index
    %89 = vector.load %arg12[%c2_101, %c2_102, %c0_103, %c0_104] : memref<3x18x16x8xbf16, #tpu.memory_space<vmem>>, vector<1x16x16x8xbf16>
    %90 = vector.shape_cast %89 : vector<1x16x16x8xbf16> to vector<16x16x8xbf16>
    %91 = vector.shape_cast %90 : vector<16x16x8xbf16> to vector<256x8xbf16>
    %c8_105 = arith.constant 8 : index
    %c0_106 = arith.constant 0 : index
    %c0_107 = arith.constant 0 : index
    %92 = vector.load %arg4[%c8_105, %c0_106, %c0_107] : memref<9x8x8xbf16, #tpu.memory_space<vmem>>, vector<1x8x8xbf16>
    %93 = vector.shape_cast %92 : vector<1x8x8xbf16> to vector<8x8xbf16>
    %cst_108 = arith.constant dense<0.000000e+00> : vector<256x8xf32>
    %94 = tpu.matmul %91, %93, %cst_108 {dimension_numbers = #tpu.dot_dimension_numbers<[1], [0], [0], [1], [0, 0, 1, 1], [], []>} : vector<256x8xbf16>, vector<8x8xbf16>, vector<256x8xf32> -> vector<256x8xf32>
    %95 = arith.addf %88, %94 : vector<256x8xf32>
    %c0_109 = arith.constant 0 : index
    %c0_110 = arith.constant 0 : index
    %96 = vector.load %arg5[%c0_109, %c0_110] : memref<1x8xf32, #tpu.memory_space<vmem>>, vector<1x8xf32>
    %97 = vector.broadcast %96 : vector<1x8xf32> to vector<256x8xf32>
    %98 = arith.addf %95, %97 : vector<256x8xf32>
    %cst_111 = arith.constant 0.000000e+00 : f32
    %99 = vector.broadcast %cst_111 : f32 to vector<256x8xf32>
    %100 = arith.maximumf %98, %99 : vector<256x8xf32>
    %101 = arith.truncf %100 : vector<256x8xf32> to vector<256x8xbf16>
    %c0_112 = arith.constant 0 : index
    %c0_113 = arith.constant 0 : index
    %102 = vector.load %arg6[%c0_112, %c0_113] : memref<8x32xbf16, #tpu.memory_space<vmem>>, vector<8x32xbf16>
    %cst_114 = arith.constant dense<0.000000e+00> : vector<256x32xf32>
    %103 = tpu.matmul %101, %102, %cst_114 {dimension_numbers = #tpu.dot_dimension_numbers<[1], [0], [0], [1], [0, 0, 1, 1], [], []>} : vector<256x8xbf16>, vector<8x32xbf16>, vector<256x32xf32> -> vector<256x32xf32>
    %c0_115 = arith.constant 0 : index
    %c0_116 = arith.constant 0 : index
    %104 = vector.load %arg7[%c0_115, %c0_116] : memref<1x32xf32, #tpu.memory_space<vmem>>, vector<1x32xf32>
    %105 = vector.broadcast %104 : vector<1x32xf32> to vector<256x32xf32>
    %106 = arith.addf %103, %105 : vector<256x32xf32>
    %c0_117 = arith.constant 0 : index
    %c0_118 = arith.constant 0 : index
    %107 = vector.load %arg8[%c0_117, %c0_118] : memref<8x32xbf16, #tpu.memory_space<vmem>>, vector<8x32xbf16>
    %cst_119 = arith.constant dense<0.000000e+00> : vector<256x32xf32>
    %108 = tpu.matmul %11, %107, %cst_119 {dimension_numbers = #tpu.dot_dimension_numbers<[1], [0], [0], [1], [0, 0, 1, 1], [], []>} : vector<256x8xbf16>, vector<8x32xbf16>, vector<256x32xf32> -> vector<256x32xf32>
    %c0_120 = arith.constant 0 : index
    %c0_121 = arith.constant 0 : index
    %109 = vector.load %arg9[%c0_120, %c0_121] : memref<1x32xf32, #tpu.memory_space<vmem>>, vector<1x32xf32>
    %110 = vector.broadcast %109 : vector<1x32xf32> to vector<256x32xf32>
    %111 = arith.addf %108, %110 : vector<256x32xf32>
    %112 = arith.addf %106, %111 : vector<256x32xf32>
    %cst_122 = arith.constant 0.000000e+00 : f32
    %113 = vector.broadcast %cst_122 : f32 to vector<256x32xf32>
    %114 = arith.maximumf %112, %113 : vector<256x32xf32>
    %115 = vector.shape_cast %114 : vector<256x32xf32> to vector<16x16x32xf32>
    %c0_123 = arith.constant 0 : index
    %c0_124 = arith.constant 0 : index
    %c0_125 = arith.constant 0 : index
    %c0_126 = arith.constant 0 : index
    %116 = vector.load %arg10[%c0_123, %c0_124, %c0_125, %c0_126] : memref<1x16x16x32xf32, #tpu.memory_space<vmem>>, vector<1x16x16x32xf32>
    %117 = vector.shape_cast %116 : vector<1x16x16x32xf32> to vector<16x16x32xf32>
    %118 = vector.shape_cast %115 : vector<16x16x32xf32> to vector<1x16x16x32xf32>
    tpu.vector_store %arg10[%c0_123, %c0_124, %c0_125, %c0_126], %118 {strides = array<i32>} : memref<1x16x16x32xf32, #tpu.memory_space<vmem>>, vector<1x16x16x32xf32>,
    return
  }
  func.func @transform_0(%arg0: i32) -> (i32, i32, i32, i32) {
    %c0_i32 = arith.constant 0 : i32
    %c0_i32_0 = arith.constant 0 : i32
    %c0_i32_1 = arith.constant 0 : i32
    %c0_i32_2 = arith.constant 0 : i32
    return %arg0, %c0_i32, %c0_i32_0, %c0_i32_1 : i32, i32, i32, i32
  }
  func.func @transform_1(%arg0: i32) -> (i32, i32) {
    %c0_i32 = arith.constant 0 : i32
    %c0_i32_0 = arith.constant 0 : i32
    %c0_i32_1 = arith.constant 0 : i32
    return %c0_i32, %c0_i32_0 : i32, i32
  }
  func.func @transform_2(%arg0: i32) -> (i32, i32) {
    %c0_i32 = arith.constant 0 : i32
    %c0_i32_0 = arith.constant 0 : i32
    %c0_i32_1 = arith.constant 0 : i32
    return %c0_i32, %c0_i32_0 : i32, i32
  }
  func.func @transform_3(%arg0: i32) -> (i32, i32, i32) {
    %c0_i32 = arith.constant 0 : i32
    %c0_i32_0 = arith.constant 0 : i32
    %c0_i32_1 = arith.constant 0 : i32
    %c0_i32_2 = arith.constant 0 : i32
    return %c0_i32, %c0_i32_0, %c0_i32_1 : i32, i32, i32
  }
  func.func @transform_4(%arg0: i32) -> (i32, i32) {
    %c0_i32 = arith.constant 0 : i32
    %c0_i32_0 = arith.constant 0 : i32
    %c0_i32_1 = arith.constant 0 : i32
    return %c0_i32, %c0_i32_0 : i32, i32
  }
  func.func @transform_5(%arg0: i32) -> (i32, i32) {
    %c0_i32 = arith.constant 0 : i32
    %c0_i32_0 = arith.constant 0 : i32
    %c0_i32_1 = arith.constant 0 : i32
    return %c0_i32, %c0_i32_0 : i32, i32
  }
  func.func @transform_6(%arg0: i32) -> (i32, i32) {
    %c0_i32 = arith.constant 0 : i32
    %c0_i32_0 = arith.constant 0 : i32
    %c0_i32_1 = arith.constant 0 : i32
    return %c0_i32, %c0_i32_0 : i32, i32
  }
  func.func @transform_7(%arg0: i32) -> (i32, i32) {
    %c0_i32 = arith.constant 0 : i32
    %c0_i32_0 = arith.constant 0 : i32
    %c0_i32_1 = arith.constant 0 : i32
    return %c0_i32, %c0_i32_0 : i32, i32
  }
  func.func @transform_8(%arg0: i32) -> (i32, i32) {
    %c0_i32 = arith.constant 0 : i32
    %c0_i32_0 = arith.constant 0 : i32
    %c0_i32_1 = arith.constant 0 : i32
    return %c0_i32, %c0_i32_0 : i32, i32
  }
  func.func @transform_9(%arg0: i32) -> (i32, i32, i32, i32) {
    %c0_i32 = arith.constant 0 : i32
    %c0_i32_0 = arith.constant 0 : i32
    %c0_i32_1 = arith.constant 0 : i32
    %c0_i32_2 = arith.constant 0 : i32
    return %arg0, %c0_i32, %c0_i32_0, %c0_i32_1 : i32, i32, i32, i32
  }
}

</mosaic_0001>

<bundles_post_ra>
// kernel: bottleneck_forward.1
= control target key start
LH: loop header
LB: loop body
LE: loop exit
PB: predicated region body
PF: predicated region fallthrough
CT: control target
= control target key end

     0   :  { %14 = vsyncpa [#allocation5], 0  ;;  %s9440_s0 = inlined_call_operand.vmem [shape: bf16[2,16,16,8], index: 0, kind: input, shape index: {}]   ;;  %s9441_s1 = inlined_call_operand.vmem [shape: bf16[8,8], index: 1, kind: input, shape index: {}]   ;;  %s9442_s2 = inlined_call_operand.vmem [shape: f32[1,8], index: 2, kind: input, shape index: {}]   ;;  %s9443_s3 = inlined_call_operand.vmem [shape: bf16[9,8,8], index: 3, kind: input, shape index: {}]   ;;  %s9444_s4 = inlined_call_operand.vmem [shape: f32[1,8], index: 4, kind: input, shape index: {}]   ;;  %s9445_s5 = inlined_call_operand.vmem [shape: bf16[8,32], index: 5, kind: input, shape index: {}]   ;;  %s9446_s6 = inlined_call_operand.vmem [shape: f32[1,32], index: 6, kind: input, shape index: {}]   ;;  %s9447_s7 = inlined_call_operand.vmem [shape: bf16[8,32], index: 7, kind: input, shape index: {}]   ;;  %s9448_s8 = inlined_call_operand.vmem [shape: f32[1,32], index: 8, kind: input, shape index: {}]   ;;  %s9449_s9 = inlined_call_operand.hbm [shape: f32[2,16,16,32], index: 9, kind: output, shape index: {}]  }
   0x1   :  { %16 = vsyncpa [#allocation5 + $0x1], 0  ;;  %s7301_s30 = smov 0   ;;  %s7303_s10 = smov 0  }
   0x2   :  { %s7305_s11 = smov 0   ;;  %s7307_s12 = smov 0  }
   0x3 LB: > { %s7322_s13 = sadd.s32 4294967295, %s7245_s12   ;;  %s5880_s14 = sadd.s32 4294967294, %s7245_s12   ;;  %s7245_s12 = sphi %s7307_s12, %s9597_s12   ;;  %s7241_s11 = sphi %s7305_s11, %s9596_s11   ;;  %s7237_s10 = sphi %s7303_s10, %s9595_s10   ;;  %s7233_s30 = sphi %s7301_s30, %s9594_s30  }
   0x4   : > { %s7326_s15 = sadd.s32 1, %s7245_s12   ;;  %s223_s16 = sadd.s32 1, %s7241_s11 }
   0x5   : > { %s220_s17 = ssub.s32 %s7245_s12, %s7326_s15  ;;  %p233_p0 = scmp.ne.s32.totalorder %s7241_s11, %s7237_s10 }
   0x6   : > { %p221_p1 = scmp.eq.s32.totalorder %s220_s17, 0  ;;  %p234_p2 = scmp.eq.s32.totalorder %s7322_s13, 1 }
   0x7   : > { %p239_p3 = scmp.ne.s32.totalorder %s7237_s10, %s7233_s30  ;;  %p240_p4 = scmp.eq.s32.totalorder %s5880_s14, 1 }
   0x8   : > { %s7337_s18 = scalar_select %p221_p1, %s7241_s11, %s223_s16  }
   0x9   : > { %p7339_p5 = por %p234_p2, %p233_p0  ;;  %p7343_p6 = por %p240_p4, %p239_p3 }
   0xa   : > { %p5883_p7 = scmp.ge.s32.totalorder %s7245_s12, 1  ;;  %p290_p8 = scmp.lt.s32.totalorder %s7245_s12, 3 }
   0xc   : > { %p291_p9 = pnand %p5883_p7, %p290_p8 }
   0xe   : > { %294 = sbr.rel (%p291_p9) target bundleno = 1063 (0x427), region = 56 }
  0x13   : > { %v410_v0 = vld [vmem:[%s9441_s1] sm:$0xf]  ;;  %vm547_vm0 = vcmask 1043456   ;;  %p326_p10 = scmp.lt.s32.totalorder %s7322_s13, 1  ;;  %vm498_vm1 = vcmask 64512   ;;  %vm332_vm2 = vcmask 60416  }
  0x14   : > { %6952 = vmatprep.subr.msk.bf16.mxu0 %vm547_vm0, %v410_v0  ;;  %v549_v1 = vsel %vm547_vm0, %v410_v0, 0  ;;  %v7247_v18 = vmov 0   ;;  %v5970_v21 = vld [vmem:[%s9443_s3 + $0x4] sm:$0xf]  ;;  %vm959_vm3 = vsmask.f32 256 }
  0x15   : > { %6545 = vmatpush3.bf16.msra.mxu0 %v549_v1  ;;  %s327_s23 = scalar_select %p326_p10, %s7322_s13, 1  ;;  %343 = vst.msk [vmem:[#allocation2 + $0x10] sm:$0xf] %vm332_vm2, %v7247_v18  ;;  %333 = vst.msk [vmem:[#allocation2] sm:$0xf] %vm332_vm2, %v7247_v18  ;;  %6953 = vmatprep.subr.msk.bf16.mxu1 %vm547_vm0, %v5970_v21  ;;  %v2261_v22 = vsel %vm547_vm0, %v5970_v21, 0 }
  0x16   : > { %334 = vst.msk [vmem:[#allocation2 + $0x4] sm:$0xf] %vm332_vm2, %v7247_v18  ;;  %335 = vst.msk [vmem:[#allocation2 + $0x8] sm:$0xf] %vm332_vm2, %v7247_v18  ;;  %6579 = vmatpush3.bf16.msra.mxu1 %v2261_v22  ;;  %v2097_v26 = vld [vmem:[%s9443_s3] sm:$0xf] }
  0x17   : > { %s6306_s24 = sshll.u32 %s327_s23, 7  ;;  %336 = vst.msk [vmem:[#allocation2 + $0xc] sm:$0xf] %vm332_vm2, %v7247_v18  ;;  %338 = vst.msk [vmem:[#allocation2 + $0x110] sm:$0xf] %vm332_vm2, %v7247_v18  ;;  %6954 = vmatprep.subr.msk.bf16.mxu0 %vm547_vm0, %v2097_v26  ;;  %v2553_v29 = vsel %vm547_vm0, %v2097_v26, 0 }
  0x18   : > { %s7359_s27 = scalar_lea.vmem %s9440_s0, %s6306_s24  ;;  %339 = vst.msk [vmem:[#allocation2 + $0x114] sm:$0xf] %vm332_vm2, %v7247_v18  ;;  %340 = vst.msk [vmem:[#allocation2 + $0x118] sm:$0xf] %vm332_vm2, %v7247_v18  ;;  %vm960_vm4 = vsmask.f32 4368 }
  0x19   : > { %v7006_v2 = vld [vmem:[%s7359_s27] sm:$0xff]   ;;  %v7007_v3 = vld [vmem:[%s7359_s27 + $0x8] sm:$0xff]   ;;  %v7008_v4 = vld [vmem:[%s7359_s27 + $0x10] sm:$0xff]   ;;  %341 = vst.msk [vmem:[#allocation2 + $0x11c] sm:$0xf] %vm332_vm2, %v7247_v18  ;;  %s323_s28 = sand.u32 1, %s7237_s10  }
  0x1a   : > { %6546 = vmatprep.mubr.msk.bf16.mxu0 %vm498_vm1, %v7006_v2  ;;  %v7009_v5 = vld [vmem:[%s7359_s27 + $0x18] sm:$0xff]   ;;  %v7010_v6 = vld [vmem:[%s7359_s27 + $0x20] sm:$0xff]   ;;  %v7011_v7 = vld [vmem:[%s7359_s27 + $0x28] sm:$0xff]   ;;  %344 = vst.msk [vmem:[#allocation2 + $0x20] sm:$0xf] %vm332_vm2, %v7247_v18  ;;  %s5884_s16 = sshll.u32 %s323_s28, 8 }
  0x1b   : > { %6547 = vmatmul.mubr.msk.bf16.vlgmr.msra.gmra.mxu0 %vm498_vm1, %v7007_v3  ;;  %v7012_v8 = vld [vmem:[%s7359_s27 + $0x30] sm:$0xff]   ;;  %v7013_v9 = vld [vmem:[%s7359_s27 + $0x38] sm:$0xff]   ;;  %v7014_v10 = vld [vmem:[%s7359_s27 + $0x40] sm:$0xff]   ;;  %345 = vst.msk [vmem:[#allocation2 + $0x30] sm:$0xf] %vm332_vm2, %v7247_v18  ;;  %vm5771_vm9 = vcmask 261120  }
  0x1c   : > { %6550 = vmatprep.mubr.msk.bf16.mxu0 %vm498_vm1, %v7008_v4  ;;  %v7015_v11 = vld [vmem:[%s7359_s27 + $0x48] sm:$0xff]   ;;  %v7016_v12 = vld [vmem:[%s7359_s27 + $0x50] sm:$0xff]   ;;  %v7017_v13 = vld [vmem:[%s7359_s27 + $0x58] sm:$0xff]   ;;  %346 = vst.msk [vmem:[#allocation2 + $0x40] sm:$0xf] %vm332_vm2, %v7247_v18  ;;  %6613 = vmatpush3.bf16.msra.mxu0 %v2553_v29  ;;  %s9242_s17 = scalar_lea.vmem [#allocation4], %s5884_s16 }
  0x1d   : > { %v7018_v14 = vld [vmem:[%s7359_s27 + $0x60] sm:$0xff]   ;;  %v7019_v15 = vld [vmem:[%s7359_s27 + $0x68] sm:$0xff]   ;;  %v7020_v16 = vld [vmem:[%s7359_s27 + $0x70] sm:$0xff]   ;;  %347 = vst.msk [vmem:[#allocation2 + $0x50] sm:$0xf] %vm332_vm2, %v7247_v18  ;;  %s6339_s21 = sshll.u32 %s7322_s13, 12 }
  0x1e   : > { %v7021_v17 = vld [vmem:[%s7359_s27 + $0x78] sm:$0xff]   ;;  %348 = vst.msk [vmem:[#allocation2 + $0x60] sm:$0xf] %vm332_vm2, %v7247_v18  ;;  %349 = vst.msk [vmem:[#allocation2 + $0x70] sm:$0xf] %vm332_vm2, %v7247_v18  ;;  %s5818_s22 = sshll.u32 %s9242_s17, 4  ;;  %s9390_s24 = scalar_lea.hbm %s9449_s9, %s6339_s21  ;;  %s9392_s22 = int_to_ptr.vmem [resolvable:$true] %s5818_s22 }
  0x1f   : > { %350 = vst.msk [vmem:[#allocation2 + $0x80] sm:$0xf] %vm332_vm2, %v7247_v18  ;;  %351 = vst.msk [vmem:[#allocation2 + $0x90] sm:$0xf] %vm332_vm2, %v7247_v18  ;;  %v1430_v19 = vld [vmem:[#allocation2 + $0x4] sm:$0xf] }
  0x20   : > { %352 = vst.msk [vmem:[#allocation2 + $0xa0] sm:$0xf] %vm332_vm2, %v7247_v18  ;;  %353 = vst.msk [vmem:[#allocation2 + $0xb0] sm:$0xf] %vm332_vm2, %v7247_v18  ;;  %v1431_v20 = vld [vmem:[#allocation2 + $0x8] sm:$0xf] }
  0x21   : > { %354 = vst.msk [vmem:[#allocation2 + $0xc0] sm:$0xf] %vm332_vm2, %v7247_v18  ;;  %355 = vst.msk [vmem:[#allocation2 + $0xd0] sm:$0xf] %vm332_vm2, %v7247_v18  ;;  %v906_v24 = vld [vmem:[#allocation2 + $0x4] sm:$0xf] }
  0x22   : > { %356 = vst.msk [vmem:[#allocation2 + $0xe0] sm:$0xf] %vm332_vm2, %v7247_v18  ;;  %357 = vst.msk [vmem:[#allocation2 + $0xf0] sm:$0xf] %vm332_vm2, %v7247_v18  ;;  %v907_v25 = vld [vmem:[#allocation2 + $0x8] sm:$0xf] }
  0x23   : > { %6551 = vmatmul.mubr.msk.bf16.gmra.mxu0 %vm498_vm1, %v7009_v5  ;;  %358 = vst.msk [vmem:[#allocation2 + $0x100] sm:$0xf] %vm332_vm2, %v7247_v18  ;;  %361 = vst.msk [vmem:[#allocation2 + $0x1c] sm:$0xf] %vm332_vm2, %v7247_v18  ;;  %v968_v27 = vshrl.u32 %v906_v24, 16  ;;  %v977_v28 = vshrl.u32 %v907_v25, 16 }
  0x24   : > { %6554 = vmatprep.mubr.msk.bf16.mxu0 %vm498_vm1, %v7010_v6  ;;  %362 = vst.msk [vmem:[#allocation2 + $0x2c] sm:$0xf] %vm332_vm2, %v7247_v18  ;;  %363 = vst.msk [vmem:[#allocation2 + $0x3c] sm:$0xf] %vm332_vm2, %v7247_v18  ;;  %v971_v33 = vshll.u32 %v906_v24, 16  ;;  %v980_v35 = vshll.u32 %v907_v25, 16 }
  0x25   : > { %364 = vst.msk [vmem:[#allocation2 + $0x4c] sm:$0xf] %vm332_vm2, %v7247_v18  ;;  %365 = vst.msk [vmem:[#allocation2 + $0x5c] sm:$0xf] %vm332_vm2, %v7247_v18  ;;  %v970_v32 = vrot.slane %v968_v27, 7  ;;  %v979_v34 = vrot.slane %v977_v28, 7 }
  0x26   : > { %366 = vst.msk [vmem:[#allocation2 + $0x6c] sm:$0xf] %vm332_vm2, %v7247_v18  ;;  %367 = vst.msk [vmem:[#allocation2 + $0x7c] sm:$0xf] %vm332_vm2, %v7247_v18  ;;  %v6035_v44 = vld [vmem:[%s9443_s3 + $0x8] sm:$0xf] }
  0x27   : > { %368 = vst.msk [vmem:[#allocation2 + $0x8c] sm:$0xf] %vm332_vm2, %v7247_v18  ;;  %369 = vst.msk [vmem:[#allocation2 + $0x9c] sm:$0xf] %vm332_vm2, %v7247_v18  ;;  %v973_v37 = vor.u32 %v971_v33, %v970_v32  ;;  %v975_v38 = vrot.slane %v970_v32, 4  ;;  %v982_v40 = vor.u32 %v980_v35, %v979_v34  ;;  %6955 = vmatprep.subr.msk.bf16.mxu1 %vm547_vm0, %v6035_v44  ;;  %s9400_s13 = scalar_lea.sflag [#allocation5], %s323_s28 }
  0x28   : > { %370 = vst.msk [vmem:[#allocation2 + $0xac] sm:$0xf] %vm332_vm2, %v7247_v18  ;;  %371 = vst.msk [vmem:[#allocation2 + $0xbc] sm:$0xf] %vm332_vm2, %v7247_v18  ;;  %v908_v45 = vld [vmem:[#allocation2 + $0x10] sm:$0x8] }
  0x29   : > { %372 = vst.msk [vmem:[#allocation2 + $0xcc] sm:$0xf] %vm332_vm2, %v7247_v18  ;;  %373 = vst.msk [vmem:[#allocation2 + $0xdc] sm:$0xf] %vm332_vm2, %v7247_v18  ;;  %v911_v47 = vld [vmem:[#allocation2 + $0x20] sm:$0x8] }
  0x2a   : > { %374 = vst.msk [vmem:[#allocation2 + $0xec] sm:$0xf] %vm332_vm2, %v7247_v18  ;;  %375 = vst.msk [vmem:[#allocation2 + $0xfc] sm:$0xf] %vm332_vm2, %v7247_v18  ;;  %v1508_v46 = vld [vmem:[#allocation2 + $0x1c] sm:$0x1] }
  0x2b   : > { %6555 = vmatmul.mubr.msk.bf16.gmra.mxu0 %vm498_vm1, %v7011_v7  ;;  %376 = vst.msk [vmem:[#allocation2 + $0x10c] sm:$0xf] %vm332_vm2, %v7247_v18  ;;  %342 = vst.msk [vmem:[#allocation2] sm:$0xf] %vm332_vm2, %v7247_v18  ;;  %v914_v48 = vld [vmem:[#allocation2 + $0x30] sm:$0x8] }
  0x2c   : > { %6558 = vmatprep.mubr.msk.bf16.mxu0 %vm498_vm1, %v7012_v8  ;;  %359 = vst.msk [vmem:[#allocation2 + $0x110] sm:$0xf] %vm332_vm2, %v7247_v18  ;;  %360 = vst.msk [vmem:[#allocation2 + $0xc] sm:$0xf] %vm332_vm2, %v7247_v18  ;;  %v985_v49 = vshrl.u32 %v908_v45, 16  ;;  %v1604_v50 = vshll.u32 %v1508_v46, 16 }
  0x2d   : > { %377 = vst.msk [vmem:[#allocation2 + $0x11c] sm:$0xf] %vm332_vm2, %v7247_v18  ;;  %1467 = vst.msk [vmem:[#allocation3 + $0x90] sm:$0xf] %vm332_vm2, %v1430_v19  ;;  %v917_v51 = vld [vmem:[#allocation2 + $0x40] sm:$0x8] }
  0x2e   : > { %1468 = vst.msk [vmem:[#allocation3 + $0x94] sm:$0xf] %vm332_vm2, %v1431_v20  ;;  %vm7451_vm5 = vmor %vm959_vm3, %vm960_vm4  ;;  %v920_v52 = vld [vmem:[#allocation2 + $0x50] sm:$0x8]  ;;  %v1511_v53 = vld [vmem:[#allocation2 + $0x2c] sm:$0x1] }
  0x2f   : > { %v983_v42 = vsel %vm7451_vm5, %v975_v38, %v982_v40  ;;  %v7469_v54 = vld [vmem:[%s9442_s2] ss:$0 sm:$0xff]  ;;  %v1007_v55 = vshrl.u32 %v911_v47, 16  ;;  %v1029_v56 = vshrl.u32 %v914_v48, 16  ;;  %v1051_v57 = vshrl.u32 %v917_v51, 16  ;;  %s7185_s25 = scalar_lea.vmem %s9392_s22, 4096 }
  0x30   : > { %1395 = vst.msk [vmem:[#allocation3 + $0x4] sm:$0xf] %vm332_vm2, %v983_v42  ;;  %v923_v58 = vld [vmem:[#allocation2 + $0x60] sm:$0x8]  ;;  %v7471_v60 = vrot.slane %v985_v49, 11  ;;  %v7473_v61 = vrot.slane %v1604_v50, 5  ;;  %p7186_p11 = scmp.ne.s32.totalorder %s9392_s22, %s7185_s25 }
  0x31   : > { %v929_v59 = vld [vmem:[#allocation2 + $0x80] sm:$0x8]  ;;  %v1073_v62 = vshrl.u32 %v920_v52, 16  ;;  %v926_v63 = vld [vmem:[#allocation2 + $0x70] sm:$0x8]  ;;  %v1628_v0 = vshll.u32 %v1511_v53, 16 }
  0x32   : > { %v905_v30 = vld [vmem:[#allocation2] sm:$0x8]  ;;  %v932_v1 = vld [vmem:[#allocation2 + $0x90] sm:$0x8]  ;;  %v7475_v5 = vrot.slane %v1007_v55, 11  ;;  %v7477_v6 = vrot.slane %v1029_v56, 11  ;;  %p7187_p12 = pnand %p7186_p11, %p7339_p5 }
  0x33   : > { %6559 = vmatmul.mubr.msk.bf16.gmra.mxu0 %vm498_vm1, %v7013_v9  ;;  %v963_v31 = vshrl.u32 %v905_v30, 16  ;;  %v935_v2 = vld [vmem:[#allocation2 + $0xa0] sm:$0x8]  ;;  %v1095_v7 = vshrl.u32 %v923_v58, 16  ;;  %v1139_v8 = vshrl.u32 %v929_v59, 16  ;;  %v7486_v22 = vrot.slane %v1073_v62, 11 }
  0x34   : > { %6562 = vmatprep.mubr.msk.bf16.mxu0 %vm498_vm1, %v7014_v10  ;;  %v941_v3 = vld [vmem:[#allocation2 + $0xc0] sm:$0x8]  ;;  %v7481_v10 = vsel %vm547_vm0, %v6035_v44, 0  ;;  %v944_v19 = vld [vmem:[#allocation2 + $0xd0] sm:$0x8]  ;;  %p7188_p13 = pneg %p7187_p12  ;;  %s7248_s26 = smov [#allocation4]  }
  0x35   : > { %v7022_v23 = vld [vmem:[#allocation3 + $0x90] sm:$0xff]   ;;  %v5952_v36 = vrot.slane %v963_v31, 11  ;;  %v1227_v18 = vshrl.u32 %v941_v3, 16  ;;  %v7490_v25 = vrot.slane %v1095_v7, 11  ;;  %v7492_v26 = vrot.slane %v1139_v8, 11  ;;  %s7189_s29 = sshll.u32 %s7248_s26, 4  ;;  %s7190_s29 = int_to_ptr.vmem [resolvable:$false] %s7189_s29 }
  0x36   : > { %6580 = vmatprep.mubr.msk.bf16.mxu1 %vm498_vm1, %v7022_v23  ;;  %v7488_v23 = vrot.slane %v1628_v0, 5  ;;  %v1517_v29 = vld [vmem:[#allocation2 + $0x4c] sm:$0x1]  ;;  %v1249_v34 = vshrl.u32 %v944_v19, 16  ;;  %v1514_v35 = vld [vmem:[#allocation2 + $0x3c] sm:$0x1]  ;;  %p7192_p0 = scmp.lt.s32.totalorder %s9392_s22, %s7190_s29 }
  0x37   : > { %v974_v41 = vsel %vm7451_vm5, %v5952_v36, %v973_v37  ;;  %v1553_v33 = vld [vmem:[#allocation2 + $0x10c] sm:$0x1]  ;;  %v1676_v45 = vshll.u32 %v1517_v29, 16  ;;  %v1652_v50 = vshll.u32 %v1514_v35, 16  ;;  %v7513_v58 = vld [vmem:[#allocation2 + $0x4] sm:$0xf] }
  0x38   : > { %1394 = vst.msk [vmem:[#allocation3] sm:$0xf] %vm332_vm2, %v974_v41  ;;  %v7501_v41 = vrot.slane %v1227_v18, 11  ;;  %v1964_v47 = vshll.u32 %v1553_v33, 16  ;;  %v7511_v55 = vrot.slane %v1249_v34, 11  ;;  %9465 = vst [vmem:[#allocation7_spill] sm:$0xff] %v7513_v58 }
  0x39   : > { %v7515_v59 = vld [vmem:[#allocation2 + $0x8] sm:$0xf]  ;;  %v7524_v8 = vrot.slane %v1652_v50, 5  ;;  %vm1557_vm6 = vsmask.f32 3328  ;;  %s7191_s14 = scalar_lea.vmem %s7190_s29, 8192 }
  0x3a   : > { %9466 = vst [vmem:[#allocation8_spill] sm:$0xff] %v7515_v59  ;;  %v7521_v3 = vrot.slane %v1964_v47, 5  ;;  %vm1558_vm7 = vsmask.f32 7440  ;;  %v6068_v35 = vld [vmem:[%s9443_s3 + $0xc] sm:$0xf]  ;;  %p7193_p1 = scmp.lt.s32.totalorder %s7191_s14, %s7185_s25 }
  0x3b   : > { %6563 = vmatmul.mubr.msk.bf16.gmra.mxu0 %vm498_vm1, %v7015_v11  ;;  %v7483_v11 = vrot.slane %v1051_v57, 11  ;;  %v950_v57 = vld [vmem:[#allocation2 + $0xf0] sm:$0x8]  ;;  %9469 = vst [vmem:[#allocation11_spill] sm:$0xff] %v7524_v8  ;;  %6956 = vmatprep.subr.msk.bf16.mxu0 %vm547_vm0, %v6068_v35  ;;  %vm7582_vm8 = vmor %vm1557_vm6, %vm1558_vm7 }
  0x3c   : > { %6566 = vmatprep.mubr.msk.bf16.mxu0 %vm498_vm1, %v7016_v12  ;;  %v938_v12 = vld [vmem:[#allocation2 + $0xb0] sm:$0x8]  ;;  %9468 = vst [vmem:[#allocation10_spill] sm:$0xff] %v7521_v3  ;;  %p7194_p2 = por %p7193_p1, %p7192_p0 }
  0x3d   : > { %v1205_v27 = vshrl.u32 %v938_v12, 16 }
  0x3e   : > { %p7195_p3 = pnand %p7194_p2, %p7188_p13 }
  0x3f   : > { %v7025_v43 = vld [vmem:[#allocation3] sm:$0xff]   ;;  %v7505_v48 = vrot.slane %v1205_v27, 11 }
  0x43   : > { %6567 = vmatmul.mubr.msk.bf16.gmra.mxu0 %vm498_vm1, %v7017_v13  ;;  %v947_v13 = vld [vmem:[#allocation2 + $0xe0] sm:$0x8] }
  0x44   : > { %6570 = vmatprep.mubr.msk.bf16.mxu0 %vm498_vm1, %v7018_v14  ;;  %v1271_v28 = vshrl.u32 %v947_v13, 16 }
  0x46   : > { %v7507_v49 = vrot.slane %v1271_v28, 11 }
  0x4b   : > { %6571 = vmatmul.mubr.msk.bf16.gmra.mxu0 %vm498_vm1, %v7019_v15  ;;  %v1117_v15 = vshrl.u32 %v926_v63, 16 }
  0x4c   : > { %6574 = vmatprep.mubr.msk.bf16.mxu0 %vm498_vm1, %v7020_v16  ;;  %v1161_v16 = vshrl.u32 %v932_v1, 16  ;;  %v7519_v1 = vrot.slane %v1676_v45, 5 }
  0x4d   : > { %v7495_v37 = vrot.slane %v1117_v15, 11 }
  0x4e   : > { %v7497_v38 = vrot.slane %v1161_v16, 11  ;;  %9467 = vst [vmem:[#allocation9_spill] sm:$0xff] %v7519_v1 }
  0x53   : > { %6575 = vmatmul.mubr.msk.bf16.gmra.mxu0 %vm498_vm1, %v7021_v17  ;;  %v1183_v17 = vshrl.u32 %v935_v2, 16 }
  0x54   : > { %6614 = vmatprep.mubr.msk.bf16.mxu0 %vm498_vm1, %v7025_v43 }
  0x55   : > { %v7499_v40 = vrot.slane %v1183_v17, 11 }
  0xdb   : > { %v6548_v4 = vpop.f32.mrf.mxu0 }
  0xdc   : > { %v594_v9 = vadd.f32 %v6548_v4, %v7469_v54  ;;  %v1293_v4 = vshrl.u32 %v950_v57, 16 }
  0xdd   : > { %v585_v14 = vpop.f32.mrf.mxu0 }
  0xde   : > { %v714_v20 = vmax.f32 %v594_v9, 0.0  ;;  %v586_v21 = vadd.f32 %v7469_v54, %v585_v14 }
  0xdf   : > { %v6549_v24 = vpop.f32.mrf.mxu0 }
  0xe0   : > { %v6309_v30 = vpack.c.bf16 %v714_v20, %v714_v20  ;;  %v712_v31 = vmax.f32 %v586_v21, 0.0  ;;  %v597_v32 = vadd.f32 %v6549_v24, %v7469_v54 }
  0xe1   : > { %v588_v36 = vpop.f32.mrf.mxu0 }
  0xe2   : > { %875 = vst.msk [vmem:[#allocation2 + $0x24] sm:$0xf] %vm332_vm2, %v6309_v30  ;;  %v6307_v42 = vpack.c.bf16 %v712_v31, %v712_v31  ;;  %v715_v43 = vmax.f32 %v597_v32, 0.0  ;;  %v589_v44 = vadd.f32 %v7469_v54, %v588_v36  ;;  %v7545_v36 = vrot.slane %v1293_v4, 11 }
  0xe3   : > { %v6552_v46 = vpop.f32.mrf.mxu0 }
  0xe4   : > { %873 = vst.msk [vmem:[#allocation2 + $0x14] sm:$0xf] %vm332_vm2, %v6307_v42  ;;  %v6310_v51 = vpack.c.bf16 %v715_v43, %v715_v43  ;;  %v713_v52 = vmax.f32 %v589_v44, 0.0  ;;  %v610_v53 = vadd.f32 %v6552_v46, %v7469_v54  ;;  %9470 = vst [vmem:[#allocation12_spill] sm:$0xff] %v7545_v36 }
  0xe5   : > { %v601_v56 = vpop.f32.mrf.mxu0 }
  0xe6   : > { %876 = vst.msk [vmem:[#allocation2 + $0x28] sm:$0xf] %vm332_vm2, %v6310_v51  ;;  %v6308_v62 = vpack.c.bf16 %v713_v52, %v713_v52  ;;  %v718_v63 = vmax.f32 %v610_v53, 0.0  ;;  %v602_v0 = vadd.f32 %v7469_v54, %v601_v56 }
  0xe7   : > { %v6553_v2 = vpop.f32.mrf.mxu0 }
  0xe8   : > { %874 = vst.msk [vmem:[#allocation2 + $0x18] sm:$0xf] %vm332_vm2, %v6308_v62  ;;  %v6313_v9 = vpack.c.bf16 %v718_v63, %v718_v63  ;;  %v716_v12 = vmax.f32 %v602_v0, 0.0  ;;  %v7540_v34 = vadd.f32 %v6553_v2, %v7469_v54 }
  0xe9   : > { %v7529_v15 = vld [vmem:[#allocation2 + $0x24] sm:$0xf]  ;;  %v604_v18 = vpop.f32.mrf.mxu0 }
  0xea   : > { %v1434_v16 = vld [vmem:[#allocation2 + $0x24] sm:$0xf]  ;;  %v1012_v19 = vshrl.u32 %v7529_v15, 16  ;;  %879 = vst.msk [vmem:[#allocation2 + $0x44] sm:$0xf] %vm332_vm2, %v6313_v9  ;;  %v6311_v30 = vpack.c.bf16 %v716_v12, %v716_v12  ;;  %v1015_v32 = vshll.u32 %v7529_v15, 16  ;;  %v7561_v0 = vadd.f32 %v7469_v54, %v604_v18 }
  0xeb   : > { %v1509_v17 = vld [vmem:[#allocation2 + $0x24] sm:$0xf]  ;;  %1471 = vst.msk [vmem:[#allocation3 + $0xa0] sm:$0xf] %vm332_vm2, %v1434_v16  ;;  %v909_v27 = vld [vmem:[#allocation2 + $0x14] sm:$0xf]  ;;  %v7535_v31 = vpop.f32.mrf.mxu0 }
  0xec   : > { %v1609_v20 = vshrl.u32 %v1509_v17, 16  ;;  %v1612_v21 = vshll.u32 %v1509_v17, 16  ;;  %v1432_v28 = vld [vmem:[#allocation2 + $0x14] sm:$0xf]  ;;  %v990_v33 = vshrl.u32 %v909_v27, 16  ;;  %v993_v51 = vshll.u32 %v909_v27, 16 }
  0xed   : > { %v1506_v29 = vld [vmem:[#allocation2 + $0x14] sm:$0xf]  ;;  %1469 = vst.msk [vmem:[#allocation3 + $0x98] sm:$0xf] %vm332_vm2, %v1432_v28  ;;  %v7551_v46 = vld [vmem:[#allocation2 + $0x28] sm:$0xf]  ;;  %v7554_v47 = vpop.f32.mrf.mxu0 }
  0xee   : > { %v7547_v42 = vrot.slane %v1609_v20, 4  ;;  %v7549_v43 = vrot.slane %v1612_v21, 5  ;;  %v1585_v44 = vshrl.u32 %v1506_v29, 16  ;;  %v1588_v45 = vshll.u32 %v1506_v29, 16  ;;  %877 = vst.msk [vmem:[#allocation2 + $0x34] sm:$0xf] %vm332_vm2, %v6311_v30 }
  0xef   : > { %v992_v50 = vrot.slane %v990_v33, 7  ;;  %v1435_v52 = vld [vmem:[#allocation2 + $0x28] sm:$0xf]  ;;  %v7557_v56 = vrot.slane %v1012_v19, 7  ;;  %v910_v63 = vld [vmem:[#allocation2 + $0x18] sm:$0xf]  ;;  %v7563_v2 = vpop.f32.mrf.mxu0 }
  0xf0   : > { %v1510_v53 = vld [vmem:[#allocation2 + $0x28] sm:$0xf]  ;;  %v1587_v57 = vrot.slane %v1585_v44, 4  ;;  %v1590_v62 = vrot.slane %v1588_v45, 5  ;;  %1472 = vst.msk [vmem:[#allocation3 + $0xa4] sm:$0xf] %vm332_vm2, %v1435_v52  ;;  %v1615_v19 = vor.u32 %v7549_v43, %v7547_v42 }
  0xf1   : > { %v995_v4 = vor.u32 %v993_v51, %v992_v50  ;;  %v1021_v9 = vshrl.u32 %v7551_v46, 16  ;;  %v1618_v12 = vshll.u32 %v1510_v53, 16  ;;  %v1433_v16 = vld [vmem:[#allocation2 + $0x18] sm:$0xf]  ;;  %v719_v17 = vmax.f32 %v7540_v34, 0.0  ;;  %v7570_v18 = vpop.f32.mrf.mxu0 }
  0xf2   : > { %v1591_v20 = vor.u32 %v1590_v62, %v1587_v57  ;;  %v1622_v21 = vshrl.u32 %v1510_v53, 16  ;;  %v999_v27 = vshrl.u32 %v910_v63, 16  ;;  %1470 = vst.msk [vmem:[#allocation3 + $0x9c] sm:$0xf] %vm332_vm2, %v1433_v16  ;;  %v1507_v28 = vld [vmem:[#allocation2 + $0x18] sm:$0xf] }
  0xf3   : > { %v996_v29 = vsel %vm7451_vm5, %v7471_v60, %v995_v4  ;;  %v997_v30 = vrot.slane %v992_v50, 4  ;;  %v7575_v33 = vrot.slane %v1618_v12, 5  ;;  %v1594_v35 = vshll.u32 %v1507_v28, 16  ;;  %v918_v34 = vld [vmem:[#allocation2 + $0x44] sm:$0xf]  ;;  %v6560_v52 = vpop.f32.mrf.mxu0 }
  0xf4   : > { %1396 = vst.msk [vmem:[#allocation3 + $0x8] sm:$0xf] %vm332_vm2, %v996_v29  ;;  %v1592_v42 = vrot.slane %v1591_v20, 4  ;;  %v1624_v43 = vrot.slane %v1622_v21, 4  ;;  %v1001_v44 = vrot.slane %v999_v27, 7  ;;  %v1002_v45 = vshll.u32 %v910_v63, 16 }
  0xf5   : > { %v1438_v51 = vld [vmem:[#allocation2 + $0x44] sm:$0xf]  ;;  %v1023_v53 = vrot.slane %v1021_v9, 7  ;;  %v1596_v57 = vrot.slane %v1594_v35, 5  ;;  %v1598_v62 = vshrl.u32 %v1507_v28, 16  ;;  %v1056_v16 = vshrl.u32 %v918_v34, 16  ;;  %v633_v27 = vpop.f32.mrf.mxu0 }
  0xf6   : > { %1475 = vst.msk [vmem:[#allocation3 + $0xb0] sm:$0xf] %vm332_vm2, %v1438_v51  ;;  %v1515_v60 = vld [vmem:[#allocation2 + $0x44] sm:$0xf]  ;;  %v1625_v50 = vor.u32 %v1624_v43, %v7575_v33  ;;  %v1004_v4 = vor.u32 %v1002_v45, %v1001_v44  ;;  %v9471_v12 = vmov 0  ;;  %v1024_v28 = vshll.u32 %v7551_v46, 16 }
  0xf7   : > { %v9472_v12 = vsel %vm7582_vm8, 4294967295, %v9471_v12  ;;  %v1657_v20 = vshrl.u32 %v1515_v60, 16  ;;  %v1660_v63 = vshll.u32 %v1515_v60, 16  ;;  %v7586_v21 = vld [vmem:[#allocation2 + $0x34] sm:$0xf]  ;;  %v1597_v29 = vsel %vm7582_vm8, %v1592_v42, %v1596_v57  ;;  %v6561_v42 = vpop.f32.mrf.mxu0  ;;  %v7024_v24 = vld [vmem:[#allocation3 + $0xa0] sm:$0xff]  }
  0xf8   : > { %9473 = vst [vmem:[#allocation13_spill] sm:$0xff] %v9472_v12  ;;  %v1436_v9 = vld [vmem:[#allocation2 + $0x34] sm:$0xf]  ;;  %v1600_v35 = vrot.slane %v1598_v62, 4  ;;  %v7591_v43 = vrot.slane %v1056_v16, 7  ;;  %v7597_v45 = vor.u32 %v1015_v32, %v7557_v56  ;;  %v1019_v51 = vrot.slane %v7557_v56, 4 }
  0xf9   : > { %1473 = vst.msk [vmem:[#allocation3 + $0xa8] sm:$0xf] %vm332_vm2, %v1436_v9  ;;  %v1512_v44 = vld [vmem:[#allocation2 + $0x34] sm:$0xf]  ;;  %v1005_v60 = vsel %vm7451_vm5, %v997_v30, %v1004_v4  ;;  %2031 = vst.msk [vmem:[#allocation3 + $0x128] sm:$0xf] %vm332_vm2, %v1597_v29  ;;  %v7606_v16 = vor.u32 %v1024_v28, %v1023_v53  ;;  %v636_v29 = vpop.f32.mrf.mxu0  ;;  %v6314_v53 = vpack.c.bf16 %v719_v17, %v719_v17 }
  0xfa   : > { %v1034_v46 = vshrl.u32 %v7586_v21, 16  ;;  %v7604_v62 = vrot.slane %v1615_v19, 4  ;;  %1397 = vst.msk [vmem:[#allocation3 + $0xc] sm:$0xf] %vm332_vm2, %v1005_v60  ;;  %v1601_v9 = vor.u32 %v1600_v35, %v1596_v57  ;;  %v1059_v15 = vshll.u32 %v918_v34, 16  ;;  %v7023_v32 = vld [vmem:[#allocation3 + $0x98] sm:$0xff]  }
  0xfb   : > { %v7609_v14 = vrot.slane %v1625_v50, 4  ;;  %v7611_v13 = vrot.slane %v1657_v20, 4  ;;  %v7613_v30 = vrot.slane %v1660_v63, 5  ;;  %v1633_v4 = vshrl.u32 %v1512_v44, 16  ;;  %6581 = vmatmul.mubr.msk.bf16.vlgmr.msra.gmra.mxu1 %vm498_vm1, %v7023_v32  ;;  %v6564_v63 = vpop.f32.mrf.mxu0  ;;  %880 = vst.msk [vmem:[#allocation2 + $0x48] sm:$0xf] %vm332_vm2, %v6314_v53 }
  0xfc   : > { %v1602_v7 = vrot.slane %v1601_v9, 4  ;;  %v7616_v19 = vor.u32 %v1059_v15, %v7591_v43  ;;  %v717_v28 = vmax.f32 %v7561_v0, 0.0  ;;  %v7621_v57 = vrot.slane %v1034_v46, 7  ;;  %6647 = vmatpush3.bf16.msra.mxu1 %v7481_v10  ;;  %6584 = vmatprep.mubr.msk.bf16.mxu1 %vm498_vm1, %v7024_v24  ;;  %v6101_v10 = vld [vmem:[%s9443_s3 + $0x10] sm:$0xf] }
  0xfd   : > { %v1037_v50 = vshll.u32 %v7586_v21, 16  ;;  %v1636_v20 = vshll.u32 %v1512_v44, 16  ;;  %v626_v35 = vadd.f32 %v7535_v31, %v7469_v54  ;;  %v618_v60 = vadd.f32 %v7469_v54, %v7554_v47  ;;  %6957 = vmatprep.subr.msk.bf16.mxu1 %vm547_vm0, %v6101_v10 }
  0xfe   : > { %v1607_v17 = vsel %vm7582_vm8, %v1602_v7, %v7473_v61  ;;  %v6312_v0 = vpack.c.bf16 %v717_v28, %v717_v28  ;;  %v7638_v24 = vrot.slane %v1633_v4, 4  ;;  %v629_v61 = vadd.f32 %v7563_v2, %v7469_v54  ;;  %v7649_v2 = vpop.f32.mrf.mxu0 }
  0xff   : > { %2032 = vst.msk [vmem:[#allocation3 + $0x12c] sm:$0xf] %vm332_vm2, %v1607_v17  ;;  %v621_v7 = vadd.f32 %v7469_v54, %v7570_v18  ;;  %v642_v21 = vadd.f32 %v6560_v52, %v7469_v54  ;;  %v722_v31 = vmax.f32 %v626_v35, 0.0  ;;  %v720_v47 = vmax.f32 %v618_v60, 0.0 }
 0x100   : > { %878 = vst.msk [vmem:[#allocation2 + $0x38] sm:$0xf] %vm332_vm2, %v6312_v0  ;;  %v634_v44 = vadd.f32 %v7469_v54, %v633_v27  ;;  %v645_v46 = vadd.f32 %v6561_v42, %v7469_v54  ;;  %v1638_v9 = vrot.slane %v1636_v20, 5  ;;  %v723_v15 = vmax.f32 %v629_v61, 0.0 }
 0x101   : > { %v721_v32 = vmax.f32 %v621_v7, 0.0  ;;  %v726_v4 = vmax.f32 %v642_v21, 0.0  ;;  %v6317_v53 = vpack.c.bf16 %v722_v31, %v722_v31  ;;  %v6315_v18 = vpack.c.bf16 %v720_v47, %v720_v47  ;;  %v7026_v17 = vld [vmem:[#allocation3 + $0x8] sm:$0xff]   ;;  %v7663_v31 = vpop.f32.mrf.mxu0 }
 0x102   : > { %v724_v28 = vmax.f32 %v634_v44, 0.0  ;;  %v727_v52 = vmax.f32 %v645_v46, 0.0  ;;  %v1039_v10 = vor.u32 %v1037_v50, %v7621_v57  ;;  %v6318_v0 = vpack.c.bf16 %v723_v15, %v723_v15  ;;  %6615 = vmatmul.mubr.msk.bf16.vlgmr.msra.gmra.mxu0 %vm498_vm1, %v7026_v17  ;;  %v7657_v61 = vld [vmem:[#allocation2 + $0x48] sm:$0xf] }
 0x103   : > { %v6316_v35 = vpack.c.bf16 %v721_v32, %v721_v32  ;;  %v6321_v60 = vpack.c.bf16 %v726_v4, %v726_v4  ;;  %883 = vst.msk [vmem:[#allocation2 + $0x64] sm:$0xf] %vm332_vm2, %v6317_v53  ;;  %881 = vst.msk [vmem:[#allocation2 + $0x54] sm:$0xf] %vm332_vm2, %v6315_v18  ;;  %v1663_v20 = vor.u32 %v7613_v30, %v7611_v13  ;;  %v1439_v7 = vld [vmem:[#allocation2 + $0x48] sm:$0xf] }
 0x104   : > { %v6319_v27 = vpack.c.bf16 %v724_v28, %v724_v28  ;;  %v6322_v42 = vpack.c.bf16 %v727_v52, %v727_v52  ;;  %v1516_v21 = vld [vmem:[#allocation2 + $0x48] sm:$0xf]  ;;  %884 = vst.msk [vmem:[#allocation2 + $0x68] sm:$0xf] %vm332_vm2, %v6318_v0  ;;  %v637_v50 = vadd.f32 %v7469_v54, %v636_v29  ;;  %v1018_v47 = vsel %vm7451_vm5, %v7475_v5, %v7597_v45 }
 0x105   : > { %882 = vst.msk [vmem:[#allocation2 + $0x58] sm:$0xf] %vm332_vm2, %v6316_v35  ;;  %887 = vst.msk [vmem:[#allocation2 + $0x84] sm:$0xf] %vm332_vm2, %v6321_v60  ;;  %v1027_v13 = vsel %vm7451_vm5, %v1019_v51, %v7606_v16  ;;  %v1639_v30 = vor.u32 %v1638_v9, %v7638_v24  ;;  %v1666_v44 = vshll.u32 %v1516_v21, 16  ;;  %v1670_v46 = vshrl.u32 %v1516_v21, 16 }
 0x106   : > { %1476 = vst.msk [vmem:[#allocation3 + $0xb4] sm:$0xf] %vm332_vm2, %v1439_v7  ;;  %885 = vst.msk [vmem:[#allocation2 + $0x74] sm:$0xf] %vm332_vm2, %v6319_v27  ;;  %v658_v29 = vadd.f32 %v6564_v63, %v7469_v54  ;;  %v1040_v51 = vsel %vm7451_vm5, %v7477_v6, %v1039_v10  ;;  %v1062_v16 = vsel %vm7451_vm5, %v7483_v11, %v7616_v19  ;;  %v1065_v9 = vshrl.u32 %v7657_v61, 16 }
 0x107   : > { %888 = vst.msk [vmem:[#allocation2 + $0x88] sm:$0xf] %vm332_vm2, %v6322_v42  ;;  %1398 = vst.msk [vmem:[#allocation3 + $0x10] sm:$0xf] %vm332_vm2, %v1018_v47  ;;  %v7681_v5 = vld [vmem:[#allocation2 + $0x38] sm:$0xf]  ;;  %v1621_v63 = vsel %vm7582_vm8, %v7604_v62, %v7575_v33  ;;  %v7704_v62 = vpop.f32.mrf.mxu0  ;;  %v650_v60 = vadd.f32 %v7469_v54, %v7649_v2 }
 0x108   : > { %1399 = vst.msk [vmem:[#allocation3 + $0x14] sm:$0xf] %vm332_vm2, %v1027_v13  ;;  %v1437_v56 = vld [vmem:[#allocation2 + $0x38] sm:$0xf]  ;;  %v7696_v15 = vrot.slane %v1666_v44, 5  ;;  %v1672_v32 = vrot.slane %v1670_v46, 4 }
 0x109   : > { %v1513_v45 = vld [vmem:[#allocation2 + $0x38] sm:$0xf]  ;;  %1474 = vst.msk [vmem:[#allocation3 + $0xac] sm:$0xf] %vm332_vm2, %v1437_v56  ;;  %1400 = vst.msk [vmem:[#allocation3 + $0x18] sm:$0xf] %vm332_vm2, %v1040_v51  ;;  %v7726_v46 = vpop.f32.mrf.mxu0 }
 0x10a   : > { %9474 = vst [vmem:[#allocation14_spill] sm:$0xff] %v7696_v15  ;;  %1402 = vst.msk [vmem:[#allocation3 + $0x20] sm:$0xf] %vm332_vm2, %v1062_v16  ;;  %v7702_v6 = vrot.slane %v1663_v20, 4  ;;  %v1642_v11 = vshll.u32 %v1513_v45, 16  ;;  %v1646_v19 = vshrl.u32 %v1513_v45, 16  ;;  %v1673_v53 = vor.u32 %v1672_v32, %v7696_v15 }
 0x10b   : > { %2033 = vst.msk [vmem:[#allocation3 + $0x130] sm:$0xf] %vm332_vm2, %v1621_v63  ;;  %v725_v33 = vmax.f32 %v637_v50, 0.0  ;;  %v7706_v4 = vrot.slane %v1639_v30, 4  ;;  %v1043_v18 = vshrl.u32 %v7681_v5, 16  ;;  %v730_v28 = vmax.f32 %v658_v29, 0.0 }
 0x10c   : > { %9475 = vst [vmem:[#allocation15_spill] sm:$0xff] %v7702_v6  ;;  %v7710_v52 = vrot.slane %v1642_v11, 5  ;;  %v1648_v17 = vrot.slane %v1646_v19, 4  ;;  %v7712_v10 = vld [vmem:[#allocation2 + $0x64] sm:$0xf]  ;;  %v7716_v27 = vrot.slane %v1065_v9, 7 }
 0x10d   : > { %9476 = vst [vmem:[#allocation16_spill] sm:$0xff] %v7706_v4  ;;  %v1442_v0 = vld [vmem:[#allocation2 + $0x64] sm:$0xf]  ;;  %v6320_v35 = vpack.c.bf16 %v725_v33, %v725_v33  ;;  %v1100_v7 = vshrl.u32 %v7712_v10, 16  ;;  %v7723_v30 = vld [vmem:[#allocation2 + $0x54] sm:$0xf]  ;;  %v6325_v2 = vpack.c.bf16 %v730_v28, %v730_v28 }
 0x10e   : > { %9477 = vst [vmem:[#allocation17_spill] sm:$0xff] %v7710_v52  ;;  %1479 = vst.msk [vmem:[#allocation3 + $0xc0] sm:$0xf] %vm332_vm2, %v1442_v0  ;;  %v1521_v21 = vld [vmem:[#allocation2 + $0x64] sm:$0xf]  ;;  %v1649_v50 = vor.u32 %v1648_v17, %v7710_v52  ;;  %v7728_v29 = vrot.slane %v1673_v53, 4 }
 0x10f   : > { %v1705_v47 = vshrl.u32 %v1521_v21, 16  ;;  %v1708_v13 = vshll.u32 %v1521_v21, 16  ;;  %v1440_v44 = vld [vmem:[#allocation2 + $0x54] sm:$0xf]  ;;  %886 = vst.msk [vmem:[#allocation2 + $0x78] sm:$0xf] %vm332_vm2, %v6320_v35 }
 0x110   : > { %9478 = vst [vmem:[#allocation18_spill] sm:$0xff] %v7728_v29  ;;  %v7730_v56 = vrot.slane %v1043_v18, 7  ;;  %v1078_v51 = vshrl.u32 %v7723_v30, 16  ;;  %1477 = vst.msk [vmem:[#allocation3 + $0xb8] sm:$0xf] %vm332_vm2, %v1440_v44  ;;  %v7735_v63 = vrot.slane %v1100_v7, 7  ;;  %v7746_v44 = vpop.f32.mrf.mxu0 }
 0x111   : > { %v1518_v16 = vld [vmem:[#allocation2 + $0x54] sm:$0xf]  ;;  %v1707_v9 = vrot.slane %v1705_v47, 4  ;;  %v1710_v32 = vrot.slane %v1708_v13, 5  ;;  %v7737_v19 = vld [vmem:[#allocation2 + $0x68] sm:$0xf] }
 0x112   : > { %v1681_v11 = vshrl.u32 %v1518_v16, 16  ;;  %891 = vst.msk [vmem:[#allocation2 + $0xa4] sm:$0xf] %vm332_vm2, %v6325_v2  ;;  %v7740_v33 = vrot.slane %v1078_v51, 7  ;;  %v1684_v53 = vshll.u32 %v1518_v16, 16  ;;  %v728_v28 = vmax.f32 %v650_v60, 0.0  ;;  %v7769_v20 = vpop.f32.mrf.mxu0 }
 0x113   : > { %v1443_v18 = vld [vmem:[#allocation2 + $0x68] sm:$0xf]  ;;  %v7742_v0 = vrot.slane %v1649_v50, 4  ;;  %v1711_v35 = vor.u32 %v1710_v32, %v1707_v9  ;;  %v7028_v13 = vld [vmem:[#allocation3 + $0x10] sm:$0xff]   ;;  %v1109_v2 = vshrl.u32 %v7737_v19, 16  ;;  %v7764_v50 = vadd.f32 %v7663_v31, %v7469_v54 }
 0x114   : > { %v7027_v17 = vld [vmem:[#allocation3 + $0xa8] sm:$0xff]   ;;  %v1683_v7 = vrot.slane %v1681_v11, 4  ;;  %1480 = vst.msk [vmem:[#allocation3 + $0xc4] sm:$0xf] %vm332_vm2, %v1443_v18  ;;  %v1686_v34 = vrot.slane %v1684_v53, 5  ;;  %v7029_v60 = vld [vmem:[#allocation3 + $0xb0] sm:$0xff]   ;;  %6618 = vmatprep.mubr.msk.bf16.mxu0 %vm498_vm1, %v7028_v13 }
 0x115   : > { %9479 = vst [vmem:[#allocation19_spill] sm:$0xff] %v7742_v0  ;;  %v1522_v47 = vld [vmem:[#allocation2 + $0x68] sm:$0xf]  ;;  %v7749_v16 = vld [vmem:[#allocation2 + $0x58] sm:$0xf]  ;;  %6585 = vmatmul.mubr.msk.bf16.gmra.mxu1 %vm498_vm1, %v7027_v17  ;;  %v6323_v17 = vpack.c.bf16 %v728_v28, %v728_v28  ;;  %v7771_v42 = vrot.slane %v1109_v2, 7  ;;  %v7784_v2 = vadd.f32 %v7469_v54, %v7704_v62  ;;  %v7797_v62 = vpop.f32.mrf.mxu0 }
 0x116   : > { %v1714_v51 = vshll.u32 %v1522_v47, 16  ;;  %v1718_v11 = vshrl.u32 %v1522_v47, 16  ;;  %v1441_v18 = vld [vmem:[#allocation2 + $0x58] sm:$0xf]  ;;  %v1087_v53 = vshrl.u32 %v7749_v16, 16  ;;  %6588 = vmatprep.mubr.msk.bf16.mxu1 %vm498_vm1, %v7029_v60  ;;  %v7767_v47 = vrot.slane %v1711_v35, 4 }
 0x117   : > { %1478 = vst.msk [vmem:[#allocation3 + $0xbc] sm:$0xf] %vm332_vm2, %v1441_v18  ;;  %v1519_v21 = vld [vmem:[#allocation2 + $0x58] sm:$0xf]  ;;  %v7760_v45 = vld [vmem:[#allocation2 + $0x84] sm:$0xf]  ;;  %v1687_v9 = vor.u32 %v1686_v34, %v1683_v7 }
 0x118   : > { %v7756_v24 = vrot.slane %v1714_v51, 5  ;;  %9481 = vst [vmem:[#allocation21_spill] sm:$0xff] %v7767_v47  ;;  %v1720_v13 = vrot.slane %v1718_v11, 4  ;;  %v1690_v51 = vshll.u32 %v1519_v21, 16  ;;  %v1446_v32 = vld [vmem:[#allocation2 + $0x84] sm:$0xf] }
 0x119   : > { %v1694_v3 = vshrl.u32 %v1519_v21, 16  ;;  %v1144_v28 = vshrl.u32 %v7760_v45, 16  ;;  %1483 = vst.msk [vmem:[#allocation3 + $0xd0] sm:$0xf] %vm332_vm2, %v1446_v32  ;;  %v1527_v31 = vld [vmem:[#allocation2 + $0x84] sm:$0xf] }
 0x11a   : > { %9480 = vst [vmem:[#allocation20_spill] sm:$0xff] %v7756_v24  ;;  %889 = vst.msk [vmem:[#allocation2 + $0x94] sm:$0xf] %vm332_vm2, %v6323_v17  ;;  %v1721_v35 = vor.u32 %v1720_v13, %v7756_v24  ;;  %v7778_v34 = vrot.slane %v1690_v51, 5  ;;  %v1753_v7 = vshrl.u32 %v1527_v31, 16  ;;  %v7786_v21 = vrot.slane %v1087_v53, 7 }
 0x11b   : > { %v7780_v60 = vld [vmem:[#allocation2 + $0x74] sm:$0xf]  ;;  %v1696_v18 = vrot.slane %v1694_v3, 4  ;;  %v1756_v36 = vshll.u32 %v1527_v31, 16  ;;  %v7790_v13 = vrot.slane %v1687_v9, 4  ;;  %v7792_v51 = vrot.slane %v1144_v28, 7 }
 0x11c   : > { %9482 = vst [vmem:[#allocation22_spill] sm:$0xff] %v7778_v34  ;;  %v1444_v11 = vld [vmem:[#allocation2 + $0x74] sm:$0xf]  ;;  %v1122_v32 = vshrl.u32 %v7780_v60, 16  ;;  %v7795_v59 = vld [vmem:[#allocation2 + $0x88] sm:$0xf] }
 0x11d   : > { %1481 = vst.msk [vmem:[#allocation3 + $0xc8] sm:$0xf] %vm332_vm2, %v1444_v11  ;;  %v1524_v17 = vld [vmem:[#allocation2 + $0x74] sm:$0xf]  ;;  %9483 = vst [vmem:[#allocation23_spill] sm:$0xff] %v7790_v13  ;;  %v1697_v53 = vor.u32 %v1696_v18, %v7778_v34  ;;  %v1755_v3 = vrot.slane %v1753_v7, 4  ;;  %v7802_v11 = vadd.f32 %v7726_v46, %v7469_v54 }
 0x11e   : > { %v1729_v24 = vshrl.u32 %v1524_v17, 16  ;;  %v1758_v31 = vrot.slane %v1756_v36, 5  ;;  %v1447_v58 = vld [vmem:[#allocation2 + $0x88] sm:$0xf]  ;;  %v7804_v9 = vrot.slane %v1721_v35, 4  ;;  %v1125_v28 = vshll.u32 %v7780_v60, 16 }
 0x11f   : > { %v1528_v29 = vld [vmem:[#allocation2 + $0x88] sm:$0xf]  ;;  %v1732_v13 = vshll.u32 %v1524_v17, 16  ;;  %1484 = vst.msk [vmem:[#allocation3 + $0xd4] sm:$0xf] %vm332_vm2, %v1447_v58  ;;  %v9485_v18 = vshll.u32 %v7657_v61, 16  ;;  %v7824_v61 = vadd.f32 %v7469_v54, %v7746_v44 }
 0x120   : > { %9484 = vst [vmem:[#allocation24_spill] sm:$0xff] %v7804_v9  ;;  %v1731_v47 = vrot.slane %v1729_v24, 4  ;;  %v7808_v1 = vld [vmem:[#allocation2 + $0x78] sm:$0xf]  ;;  %v7815_v7 = vrot.slane %v1122_v32, 7  ;;  %v1153_v46 = vshrl.u32 %v7795_v59, 16  ;;  %v1759_v17 = vor.u32 %v1758_v31, %v1755_v3 }
 0x121   : > { %v7813_v36 = vor.u32 %v9485_v18, %v7716_v27  ;;  %v1762_v34 = vshll.u32 %v1528_v29, 16  ;;  %v1445_v35 = vld [vmem:[#allocation2 + $0x78] sm:$0xf]  ;;  %v7818_v6 = vrot.slane %v1697_v53, 4  ;;  %v1734_v60 = vrot.slane %v1732_v13, 5  ;;  %v7826_v27 = vpop.f32.mrf.mxu0  ;;  %v7033_v32 = vld [vmem:[#allocation3 + $0xc0] sm:$0xff]  }
 0x122   : > { %v7031_v9 = vld [vmem:[#allocation3 + $0xb8] sm:$0xff]   ;;  %1482 = vst.msk [vmem:[#allocation3 + $0xcc] sm:$0xf] %vm332_vm2, %v1445_v35  ;;  %v1156_v18 = vshll.u32 %v7795_v59, 16  ;;  %v1766_v15 = vshrl.u32 %v1528_v29, 16  ;;  %v1131_v53 = vshrl.u32 %v7808_v1, 16 }
 0x123   : > { %9486 = vst [vmem:[#allocation25_spill] sm:$0xff] %v7818_v6  ;;  %v1525_v58 = vld [vmem:[#allocation2 + $0x78] sm:$0xf]  ;;  %v7830_v6 = vld [vmem:[#allocation2 + $0xa4] sm:$0xf]  ;;  %6589 = vmatmul.mubr.msk.bf16.gmra.mxu1 %vm498_vm1, %v7031_v9  ;;  %v9487_v13 = vshll.u32 %v7681_v5, 16  ;;  %v1735_v24 = vor.u32 %v1734_v60, %v1731_v47 }
 0x124   : > { %v7836_v44 = vrot.slane %v1762_v34, 5  ;;  %v1738_v0 = vshll.u32 %v1525_v58, 16  ;;  %v1450_v8 = vld [vmem:[#allocation2 + $0xa4] sm:$0xf]  ;;  %6592 = vmatprep.mubr.msk.bf16.mxu1 %vm498_vm1, %v7033_v32  ;;  %v1155_v29 = vrot.slane %v1153_v46, 7  ;;  %v1768_v3 = vrot.slane %v1766_v15, 4  ;;  %v681_v46 = vpop.f32.mrf.mxu0 }
 0x125   : > { %v1048_v35 = vor.u32 %v9487_v13, %v7730_v56  ;;  %v1533_v4 = vld [vmem:[#allocation2 + $0xa4] sm:$0xf]  ;;  %v1742_v31 = vshrl.u32 %v1525_v58, 16  ;;  %1487 = vst.msk [vmem:[#allocation3 + $0xe0] sm:$0xf] %vm332_vm2, %v1450_v8  ;;  %v9489_v9 = vshll.u32 %v7712_v10, 16 }
 0x126   : > { %9488 = vst [vmem:[#allocation26_spill] sm:$0xff] %v7836_v44  ;;  %v9490_v56 = vshll.u32 %v7723_v30, 16  ;;  %v1188_v34 = vshrl.u32 %v7830_v6, 16  ;;  %v1801_v60 = vshrl.u32 %v1533_v4, 16  ;;  %v933_v32 = vld [vmem:[#allocation2 + $0x94] sm:$0xf] }
 0x127   : > { %v7844_v5 = vor.u32 %v9489_v9, %v7735_v63  ;;  %v1448_v13 = vld [vmem:[#allocation2 + $0x94] sm:$0xf]  ;;  %v7852_v15 = vrot.slane %v1759_v17, 4  ;;  %v7854_v58 = vrot.slane %v1735_v24, 4  ;;  %v1133_v8 = vrot.slane %v1131_v53, 7 }
 0x128   : > { %v7849_v47 = vor.u32 %v9490_v56, %v7740_v33  ;;  %v1134_v10 = vshll.u32 %v7808_v1, 16  ;;  %1485 = vst.msk [vmem:[#allocation3 + $0xd8] sm:$0xf] %vm332_vm2, %v1448_v13  ;;  %v1769_v9 = vor.u32 %v1768_v3, %v7836_v44  ;;  %v7859_v30 = vrot.slane %v1738_v0, 5 }
 0x129   : > { %9491 = vst [vmem:[#allocation27_spill] sm:$0xff] %v7852_v15  ;;  %v1804_v59 = vshll.u32 %v1533_v4, 16  ;;  %v9492_v52 = vshll.u32 %v7737_v19, 16  ;;  %v9493_v24 = vshll.u32 %v7749_v16, 16  ;;  %v7870_v53 = vrot.slane %v1742_v31, 4 }
 0x12a   : > { %v1166_v1 = vshrl.u32 %v933_v32, 16  ;;  %v9494_v3 = vshll.u32 %v7760_v45, 16  ;;  %v7878_v13 = vor.u32 %v1125_v28, %v7815_v7  ;;  %v7880_v4 = vrot.slane %v1188_v34, 7 }
 0x12b   : > { %v7865_v12 = vor.u32 %v9492_v52, %v7771_v42  ;;  %v1092_v17 = vor.u32 %v9493_v24, %v7786_v21  ;;  %v7882_v19 = vrot.slane %v1801_v60, 4  ;;  %v7884_v52 = vld [vmem:[#allocation2 + $0x94] sm:$0xf]  ;;  %v6573_v42 = vpop.f32.mrf.mxu0  ;;  %v1169_v16 = vshll.u32 %v933_v32, 16  ;;  %v7035_v32 = vld [vmem:[#allocation3 + $0xc8] sm:$0xff]  }
 0x12c   : > { %v7875_v0 = vor.u32 %v9494_v3, %v7792_v51  ;;  %v731_v21 = vmax.f32 %v7764_v50, 0.0  ;;  %v729_v31 = vmax.f32 %v7784_v2, 0.0  ;;  %v734_v24 = vmax.f32 %v7802_v11, 0.0  ;;  %6593 = vmatmul.mubr.msk.bf16.gmra.mxu1 %vm498_vm1, %v7035_v32 }
 0x12d   : > { %v7889_v45 = vor.u32 %v1156_v18, %v1155_v29  ;;  %v7891_v3 = vrot.slane %v1769_v9, 4  ;;  %v7893_v28 = vor.u32 %v1134_v10, %v1133_v8  ;;  %v7895_v34 = vrot.slane %v1804_v59, 5  ;;  %v684_v29 = vpop.f32.mrf.mxu0  ;;  %v7037_v9 = vld [vmem:[#allocation3 + $0xd0] sm:$0xff]  }
 0x12e   : > { %v7897_v60 = vrot.slane %v1166_v1, 7  ;;  %v6326_v56 = vpack.c.bf16 %v731_v21, %v731_v21  ;;  %v6324_v15 = vpack.c.bf16 %v729_v31, %v729_v31  ;;  %v6329_v44 = vpack.c.bf16 %v734_v24, %v734_v24  ;;  %6596 = vmatprep.mubr.msk.bf16.mxu1 %vm498_vm1, %v7037_v9 }
 0x12f   : > { %9495 = vst [vmem:[#allocation28_spill] sm:$0xff] %v7891_v3  ;;  %v1777_v50 = vshrl.u32 %v7884_v52, 16  ;;  %v732_v2 = vmax.f32 %v7824_v61, 0.0  ;;  %v677_v11 = vadd.f32 %v7769_v20, %v7469_v54  ;;  %v669_v18 = vadd.f32 %v7469_v54, %v7797_v62 }
 0x130   : > { %v1780_v59 = vshll.u32 %v7884_v52, 16  ;;  %892 = vst.msk [vmem:[#allocation2 + $0xa8] sm:$0xf] %vm332_vm2, %v6326_v56  ;;  %890 = vst.msk [vmem:[#allocation2 + $0x98] sm:$0xf] %vm332_vm2, %v6324_v15  ;;  %v9496_v8 = vrot.slane %v7621_v57, 4  ;;  %v690_v10 = vadd.f32 %v7826_v27, %v7469_v54  ;;  %v682_v57 = vadd.f32 %v7469_v54, %v681_v46 }
 0x131   : > { %895 = vst.msk [vmem:[#allocation2 + $0xc4] sm:$0xf] %vm332_vm2, %v6329_v44  ;;  %v9497_v20 = vrot.slane %v7591_v43, 4  ;;  %v6327_v15 = vpack.c.bf16 %v732_v2, %v732_v2  ;;  %v735_v56 = vmax.f32 %v677_v11, 0.0  ;;  %v733_v44 = vmax.f32 %v669_v18, 0.0 }
 0x132   : > { %v1049_v61 = vsel %vm7451_vm5, %v9496_v8, %v1048_v35  ;;  %v7925_v43 = vor.u32 %v1169_v16, %v7897_v60  ;;  %v738_v35 = vmax.f32 %v690_v10, 0.0  ;;  %v736_v54 = vmax.f32 %v682_v57, 0.0 }
 0x133   : > { %v1071_v62 = vsel %vm7451_vm5, %v9497_v20, %v7813_v36  ;;  %1401 = vst.msk [vmem:[#allocation3 + $0x1c] sm:$0xf] %vm332_vm2, %v1049_v61  ;;  %v7930_v36 = vld [vmem:[%s9442_s2] ss:$0 sm:$0xff]  ;;  %893 = vst.msk [vmem:[#allocation2 + $0xb4] sm:$0xf] %vm332_vm2, %v6327_v15  ;;  %v6330_v52 = vpack.c.bf16 %v735_v56, %v735_v56  ;;  %v6328_v21 = vpack.c.bf16 %v733_v44, %v733_v44 }
 0x134   : > { %1403 = vst.msk [vmem:[#allocation3 + $0x24] sm:$0xf] %vm332_vm2, %v1071_v62  ;;  %v693_v27 = vadd.f32 %v7930_v36, %v6573_v42  ;;  %v685_v1 = vadd.f32 %v7930_v36, %v684_v29  ;;  %v1084_v46 = vsel %vm7451_vm5, %v7486_v22, %v7849_v47  ;;  %v6333_v16 = vpack.c.bf16 %v738_v35, %v738_v35 }
 0x135   : > { %v9498_v32 = vrot.slane %v7740_v33, 4  ;;  %1404 = vst.msk [vmem:[#allocation3 + $0x28] sm:$0xf] %vm332_vm2, %v1084_v46  ;;  %v7945_v2 = vrot.slane %v1777_v50, 4  ;;  %896 = vst.msk [vmem:[#allocation2 + $0xc8] sm:$0xf] %vm332_vm2, %v6330_v52  ;;  %v6331_v11 = vpack.c.bf16 %v736_v54, %v736_v54  ;;  %v1106_v22 = vsel %vm7451_vm5, %v7490_v25, %v7844_v5 }
 0x136   : > { %v739_v31 = vmax.f32 %v693_v27, 0.0  ;;  %v737_v24 = vmax.f32 %v685_v1, 0.0  ;;  %894 = vst.msk [vmem:[#allocation2 + $0xb8] sm:$0xf] %vm332_vm2, %v6328_v21  ;;  %v9499_v33 = vrot.slane %v7735_v63, 4  ;;  %v1745_v50 = vor.u32 %v7870_v53, %v7859_v30 }
 0x137   : > { %v1093_v42 = vsel %vm7451_vm5, %v9498_v32, %v1092_v17  ;;  %v7959_v17 = vpop.f32.mrf.mxu0  ;;  %v9500_v18 = vshll.u32 %v7830_v6, 16  ;;  %899 = vst.msk [vmem:[#allocation2 + $0xe4] sm:$0xf] %vm332_vm2, %v6333_v16  ;;  %1406 = vst.msk [vmem:[#allocation3 + $0x30] sm:$0xf] %vm332_vm2, %v1106_v22  ;;  %v1782_v25 = vrot.slane %v1780_v59, 5  ;;  %v1128_v5 = vsel %vm7451_vm5, %v7495_v37, %v7878_v13 }
 0x138   : > { %1405 = vst.msk [vmem:[#allocation3 + $0x2c] sm:$0xf] %vm332_vm2, %v1093_v42  ;;  %v1115_v47 = vsel %vm7451_vm5, %v9499_v33, %v7865_v12  ;;  %v6334_v8 = vpack.c.bf16 %v739_v31, %v739_v31  ;;  %v6332_v61 = vpack.c.bf16 %v737_v24, %v737_v24  ;;  %v1451_v63 = vld [vmem:[#allocation2 + $0xa8] sm:$0xf]  ;;  %897 = vst.msk [vmem:[#allocation2 + $0xd4] sm:$0xf] %vm332_vm2, %v6331_v11 }
 0x139   : > { %v1193_v29 = vor.u32 %v9500_v18, %v7880_v4  ;;  %1407 = vst.msk [vmem:[#allocation3 + $0x34] sm:$0xf] %vm332_vm2, %v1115_v47  ;;  %v1534_v12 = vld [vmem:[#allocation2 + $0xa8] sm:$0xf]  ;;  %v9501_v6 = vrot.slane %v7815_v7, 4  ;;  %v1150_v59 = vsel %vm7451_vm5, %v7492_v26, %v7875_v0  ;;  %v1807_v62 = vor.u32 %v7895_v34, %v7882_v19  ;;  %v7996_v19 = vpop.f32.mrf.mxu0 }
 0x13a   : > { %v7986_v10 = vld [vmem:[#allocation2 + $0xa8] sm:$0xf]  ;;  %1488 = vst.msk [vmem:[#allocation3 + $0xe4] sm:$0xf] %vm332_vm2, %v1451_v63  ;;  %v1810_v37 = vshll.u32 %v1534_v12, 16  ;;  %v1814_v13 = vshrl.u32 %v1534_v12, 16  ;;  %v1172_v9 = vsel %vm7451_vm5, %v7497_v38, %v7925_v43 }
 0x13b   : > { %v1137_v53 = vsel %vm7451_vm5, %v9501_v6, %v7893_v28  ;;  %900 = vst.msk [vmem:[#allocation2 + $0xe8] sm:$0xf] %vm332_vm2, %v6334_v8  ;;  %898 = vst.msk [vmem:[#allocation2 + $0xd8] sm:$0xf] %vm332_vm2, %v6332_v61  ;;  %v7994_v26 = vld [vmem:[#allocation2 + $0x98] sm:$0xf]  ;;  %v1194_v46 = vsel %vm7451_vm5, %v7499_v40, %v1193_v29  ;;  %v6577_v11 = vpop.f32.mrf.mxu0 }
 0x13c   : > { %1408 = vst.msk [vmem:[#allocation3 + $0x38] sm:$0xf] %vm332_vm2, %v1128_v5  ;;  %1409 = vst.msk [vmem:[#allocation3 + $0x3c] sm:$0xf] %vm332_vm2, %v1137_v53  ;;  %v1449_v7 = vld [vmem:[#allocation2 + $0x98] sm:$0xf]  ;;  %v8048_v53 = vadd.f32 %v7930_v36, %v7959_v17 }
 0x13d   : > { %1410 = vst.msk [vmem:[#allocation3 + $0x40] sm:$0xf] %vm332_vm2, %v1150_v59  ;;  %v1531_v0 = vld [vmem:[#allocation2 + $0x98] sm:$0xf]  ;;  %v9502_v28 = vrot.slane %v7792_v51, 4  ;;  %v8007_v15 = vrot.slane %v1745_v50, 4 }
 0x13e   : > { %v8009_v56 = vrot.slane %v1810_v37, 5  ;;  %v1816_v44 = vrot.slane %v1814_v13, 4  ;;  %1486 = vst.msk [vmem:[#allocation3 + $0xdc] sm:$0xf] %vm332_vm2, %v1449_v7  ;;  %v1786_v57 = vshll.u32 %v1531_v0, 16  ;;  %v1197_v38 = vshrl.u32 %v7986_v10, 16  ;;  %v700_v13 = vpop.f32.mrf.mxu0 }
 0x13f   : > { %v1159_v34 = vsel %vm7451_vm5, %v9502_v28, %v7889_v45  ;;  %v8012_v35 = vld [vmem:[#allocation2 + $0xc4] sm:$0xf]  ;;  %1412 = vst.msk [vmem:[#allocation3 + $0x48] sm:$0xf] %vm332_vm2, %v1172_v9  ;;  %v1783_v45 = vor.u32 %v1782_v25, %v7945_v2  ;;  %v1790_v43 = vshrl.u32 %v1531_v0, 16  ;;  %v8019_v1 = vrot.slane %v1807_v62, 4 }
 0x140   : > { %1411 = vst.msk [vmem:[#allocation3 + $0x44] sm:$0xf] %vm332_vm2, %v1159_v34  ;;  %v1454_v27 = vld [vmem:[#allocation2 + $0xc4] sm:$0xf]  ;;  %v8022_v21 = vld [vmem:[#allocation2 + $0xb4] sm:$0xf]  ;;  %v1817_v16 = vor.u32 %v1816_v44, %v8009_v56 }
 0x141   : > { %1491 = vst.msk [vmem:[#allocation3 + $0xf0] sm:$0xf] %vm332_vm2, %v1454_v27  ;;  %v1539_v52 = vld [vmem:[#allocation2 + $0xc4] sm:$0xf]  ;;  %v7030_v54 = vld [vmem:[#allocation3 + $0x18] sm:$0xff]   ;;  %v1175_v31 = vshrl.u32 %v7994_v26, 16 }
 0x142   : > { %v1232_v24 = vshrl.u32 %v8012_v35, 16  ;;  %v1849_v32 = vshrl.u32 %v1539_v52, 16  ;;  %v1452_v42 = vld [vmem:[#allocation2 + $0xb4] sm:$0xf]  ;;  %v7032_v2 = vld [vmem:[#allocation3 + $0x20] sm:$0xff]   ;;  %v8031_v22 = vrot.slane %v1786_v57, 5  ;;  %6619 = vmatmul.mubr.msk.bf16.gmra.mxu0 %vm498_vm1, %v7030_v54  ;;  %v8065_v57 = vadd.f32 %v7930_v36, %v7996_v19 }
 0x143   : > { %1414 = vst.msk [vmem:[#allocation3 + $0x50] sm:$0xf] %vm332_vm2, %v1194_v46  ;;  %v1792_v33 = vrot.slane %v1790_v43, 4  ;;  %v1852_v47 = vshll.u32 %v1539_v52, 16  ;;  %v1210_v50 = vshrl.u32 %v8022_v21, 16  ;;  %v8036_v18 = vrot.slane %v1783_v45, 4  ;;  %6622 = vmatprep.mubr.msk.bf16.mxu0 %vm498_vm1, %v7032_v2 }
 0x144   : > { %1489 = vst.msk [vmem:[#allocation3 + $0xe8] sm:$0xf] %vm332_vm2, %v1452_v42  ;;  %v1536_v40 = vld [vmem:[#allocation2 + $0xb4] sm:$0xf]  ;;  %v1199_v29 = vrot.slane %v1197_v38, 7  ;;  %v1200_v8 = vshll.u32 %v7986_v10, 16  ;;  %v8068_v45 = vadd.f32 %v7930_v36, %v6577_v11  ;;  %v8073_v52 = vadd.f32 %v7930_v36, %v700_v13 }
 0x145   : > { %v1178_v61 = vshll.u32 %v7994_v26, 16  ;;  %v1455_v25 = vld [vmem:[#allocation2 + $0xc8] sm:$0xf]  ;;  %v1825_v63 = vshrl.u32 %v1536_v40, 16  ;;  %v1828_v12 = vshll.u32 %v1536_v40, 16  ;;  %v1177_v59 = vrot.slane %v1175_v31, 7 }
 0x146   : > { %v8041_v5 = vld [vmem:[#allocation2 + $0xc8] sm:$0xf]  ;;  %1492 = vst.msk [vmem:[#allocation3 + $0xf4] sm:$0xf] %vm332_vm2, %v1455_v25  ;;  %v8050_v62 = vrot.slane %v1232_v24, 7  ;;  %v1851_v10 = vrot.slane %v1849_v32, 4  ;;  %v1793_v7 = vor.u32 %v1792_v33, %v8031_v22  ;;  %v8070_v38 = vor.u32 %v1200_v8, %v1199_v29 }
 0x147   : > { %v8044_v6 = vld [vmem:[#allocation2 + $0xc8] sm:$0xf]  ;;  %v1854_v37 = vrot.slane %v1852_v47, 5  ;;  %v8052_v26 = vrot.slane %v1817_v16, 4  ;;  %v1235_v0 = vshll.u32 %v8012_v35, 16  ;;  %v8056_v28 = vrot.slane %v1210_v50, 7 }
 0x148   : > { %v1453_v34 = vld [vmem:[#allocation2 + $0xb8] sm:$0xf]  ;;  %v1241_v9 = vshrl.u32 %v8041_v5, 16  ;;  %v1858_v17 = vshll.u32 %v8044_v6, 16  ;;  %v1827_v35 = vrot.slane %v1825_v63, 4  ;;  %v1830_v43 = vrot.slane %v1828_v12, 5 }
 0x149   : > { %9503 = vst [vmem:[#allocation29_spill] sm:$0xff] %v8052_v26  ;;  %v8060_v44 = vld [vmem:[#allocation2 + $0xb8] sm:$0xf]  ;;  %1490 = vst.msk [vmem:[#allocation3 + $0xec] sm:$0xf] %vm332_vm2, %v1453_v34  ;;  %v8075_v54 = vor.u32 %v1178_v61, %v1177_v59  ;;  %v1855_v16 = vor.u32 %v1854_v37, %v1851_v10  ;;  %v1213_v31 = vshll.u32 %v8022_v21, 16  ;;  %v8085_v33 = vor.u32 %v1235_v0, %v8050_v62 }
 0x14a   : > { %v1537_v27 = vld [vmem:[#allocation2 + $0xb8] sm:$0xf]  ;;  %v948_v19 = vld [vmem:[#allocation2 + $0xe4] sm:$0xf]  ;;  %v8079_v32 = vrot.slane %v1793_v7, 4  ;;  %v1244_v2 = vshll.u32 %v8041_v5, 16  ;;  %v1831_v8 = vor.u32 %v1830_v43, %v1827_v35 }
 0x14b   : > { %v1458_v24 = vld [vmem:[#allocation2 + $0xe4] sm:$0xf]  ;;  %v1276_v11 = vshrl.u32 %v948_v19, 16  ;;  %v1243_v47 = vrot.slane %v1241_v9, 7  ;;  %v1219_v50 = vshrl.u32 %v8060_v44, 16  ;;  %v1834_v40 = vshll.u32 %v1537_v27, 16 }
 0x14c   : > { %9504 = vst [vmem:[#allocation30_spill] sm:$0xff] %v8079_v32  ;;  %1495 = vst.msk [vmem:[#allocation3 + $0x100] sm:$0xf] %vm332_vm2, %v1458_v24  ;;  %v1545_v36 = vld [vmem:[#allocation2 + $0xe4] sm:$0xf]  ;;  %v7034_v29 = vld [vmem:[#allocation3 + $0x28] sm:$0xff]   ;;  %v8096_v0 = vor.u32 %v1213_v31, %v8056_v28 }
 0x14d   : > { %v945_v21 = vld [vmem:[#allocation2 + $0xd4] sm:$0xf]  ;;  %v8088_v61 = vrot.slane %v1858_v17, 5  ;;  %v1838_v25 = vshrl.u32 %v1537_v27, 16  ;;  %v8090_v59 = vrot.slane %v1855_v16, 4  ;;  %v1897_v37 = vshrl.u32 %v1545_v36, 16  ;;  %6623 = vmatmul.mubr.msk.bf16.gmra.mxu0 %vm498_vm1, %v7034_v29 }
 0x14e   : > { %v1254_v63 = vshrl.u32 %v945_v21, 16  ;;  %v1456_v12 = vld [vmem:[#allocation2 + $0xd4] sm:$0xf]  ;;  %v1900_v13 = vshll.u32 %v1545_v36, 16  ;;  %v1222_v34 = vshll.u32 %v8060_v44, 16  ;;  %v8099_v9 = vrot.slane %v1276_v11, 7 }
 0x14f   : > { %v7036_v5 = vld [vmem:[#allocation3 + $0x30] sm:$0xff]   ;;  %1493 = vst.msk [vmem:[#allocation3 + $0xf8] sm:$0xf] %vm332_vm2, %v1456_v12  ;;  %v949_v35 = vld [vmem:[#allocation2 + $0xe8] sm:$0xf]  ;;  %v7039_v43 = vld [vmem:[#allocation3 + $0xd8] sm:$0xff]  }
 0x150   : > { %v1542_v7 = vld [vmem:[#allocation2 + $0xd4] sm:$0xf]  ;;  %v8101_v17 = vrot.slane %v1254_v63, 7  ;;  %6626 = vmatprep.mubr.msk.bf16.mxu0 %vm498_vm1, %v7036_v5  ;;  %v1221_v27 = vrot.slane %v1219_v50, 7  ;;  %v8104_v16 = vrot.slane %v1834_v40, 5  ;;  %v1285_v36 = vshrl.u32 %v949_v35, 16  ;;  %6597 = vmatmul.mubr.msk.bf16.gmra.mxu1 %vm498_vm1, %v7039_v43 }
 0x151   : > { %v1873_v24 = vshrl.u32 %v1542_v7, 16  ;;  %v1459_v12 = vld [vmem:[#allocation2 + $0xe8] sm:$0xf]  ;;  %v8106_v29 = vrot.slane %v1831_v8, 4  ;;  %v8108_v31 = vrot.slane %v1838_v25, 4  ;;  %v1279_v10 = vshll.u32 %v948_v19, 16 }
 0x152   : > { %v1876_v44 = vshll.u32 %v1542_v7, 16  ;;  %1496 = vst.msk [vmem:[#allocation3 + $0x104] sm:$0xf] %vm332_vm2, %v1459_v12  ;;  %v946_v11 = vld [vmem:[#allocation2 + $0xd8] sm:$0xf]  ;;  %v1246_v63 = vor.u32 %v1244_v2, %v1243_v47  ;;  %v1899_v5 = vrot.slane %v1897_v37, 4  ;;  %v1224_v7 = vor.u32 %v1222_v34, %v1221_v27 }
 0x153   : > { %v1902_v46 = vrot.slane %v1900_v13, 5  ;;  %v1257_v50 = vshll.u32 %v945_v21, 16  ;;  %v1457_v40 = vld [vmem:[#allocation2 + $0xd8] sm:$0xf]  ;;  %v1283_v20 = vrot.slane %v8099_v9, 4  ;;  %v1261_v8 = vrot.slane %v8101_v17, 4 }
 0x154   : > { %v7038_v42 = vld [vmem:[#allocation3 + $0x38] sm:$0xff]   ;;  %v1287_v51 = vrot.slane %v1285_v36, 7  ;;  %v8114_v25 = vld [vmem:[#allocation2 + $0xe8] sm:$0xf]  ;;  %v1263_v19 = vshrl.u32 %v946_v11, 16  ;;  %v1281_v12 = vor.u32 %v1279_v10, %v8099_v9  ;;  %v8118_v43 = vrot.slane %v1873_v24, 4 }
 0x155   : > { %1494 = vst.msk [vmem:[#allocation3 + $0xfc] sm:$0xf] %vm332_vm2, %v1457_v40  ;;  %v1288_v2 = vshll.u32 %v949_v35, 16  ;;  %v8120_v47 = vrot.slane %v1876_v44, 5  ;;  %v1266_v37 = vshll.u32 %v946_v11, 16  ;;  %v742_v13 = vmax.f32 %v8048_v53, 0.0  ;;  %6627 = vmatmul.mubr.msk.bf16.gmra.mxu0 %vm498_vm1, %v7038_v42 }
 0x156   : > { %v1265_v21 = vrot.slane %v1263_v19, 7  ;;  %v1903_v26 = vor.u32 %v1902_v46, %v1899_v5  ;;  %v1259_v36 = vor.u32 %v1257_v50, %v8101_v17  ;;  %v8124_v32 = vld [vmem:[#allocation2 + $0xd8] sm:$0xf]  ;;  %v740_v3 = vmax.f32 %v8065_v57, 0.0  ;;  %v7040_v24 = vld [vmem:[#allocation3 + $0x40] sm:$0xff]   ;;  %v7045_v40 = vld [vmem:[#allocation3 + $0xf0] sm:$0xff]  }
 0x157   : > { %v743_v34 = vmax.f32 %v8068_v45, 0.0  ;;  %v1290_v10 = vor.u32 %v1288_v2, %v1287_v51  ;;  %v1906_v9 = vshll.u32 %v8114_v25, 16  ;;  %v6337_v27 = vpack.c.bf16 %v742_v13, %v742_v13  ;;  %v7041_v46 = vld [vmem:[#allocation3 + $0xe0] sm:$0xff]   ;;  %6630 = vmatprep.mubr.msk.bf16.mxu0 %vm498_vm1, %v7040_v24  ;;  %v8171_v50 = vld [vmem:[%s9443_s3 + $0x14] sm:$0xf]  ;;  %v9511_v19 = vld [vmem:[#allocation16_spill] sm:$0xff] }
 0x158   : > { %v1268_v35 = vor.u32 %v1266_v37, %v1265_v21  ;;  %v6335_v44 = vpack.c.bf16 %v740_v3, %v740_v3  ;;  %v741_v53 = vmax.f32 %v8073_v52, 0.0  ;;  %v9505_v17 = vrot.slane %v7897_v60, 4  ;;  %v7043_v3 = vld [vmem:[#allocation3 + $0xe8] sm:$0xff]   ;;  %6600 = vmatprep.mubr.msk.bf16.mxu1 %vm498_vm1, %v7041_v46  ;;  %v9516_v37 = vld [vmem:[#allocation9_spill] sm:$0xff]  ;;  %v7101_v39 = vld [vmem:[#allocation3 + $0xd8] sm:$0xff]  }
 0x159   : > { %v6338_v11 = vpack.c.bf16 %v743_v34, %v743_v34  ;;  %v1879_v45 = vor.u32 %v8120_v47, %v8118_v43  ;;  %v1882_v51 = vshll.u32 %v8124_v32, 16  ;;  %903 = vst.msk [vmem:[#allocation2 + $0x104] sm:$0xf] %vm332_vm2, %v6337_v27  ;;  %v9506_v52 = vrot.slane %v7880_v4, 4  ;;  %6601 = vmatmul.mubr.msk.bf16.gmra.mxu1 %vm498_vm1, %v7043_v3  ;;  %v9514_v2 = vld [vmem:[#allocation14_spill] sm:$0xff]  ;;  %v9515_v47 = vld [vmem:[#allocation15_spill] sm:$0xff] }
 0x15a   : > { %v1181_v57 = vsel %vm7451_vm5, %v9505_v17, %v8075_v54  ;;  %v1216_v54 = vsel %vm7451_vm5, %v7505_v48, %v8096_v0  ;;  %901 = vst.msk [vmem:[#allocation2 + $0xf4] sm:$0xf] %vm332_vm2, %v6335_v44  ;;  %v6336_v42 = vpack.c.bf16 %v741_v53, %v741_v53  ;;  %v9507_v5 = vrot.slane %v8056_v28, 4  ;;  %6604 = vmatprep.mubr.msk.bf16.mxu1 %vm498_vm1, %v7045_v40  ;;  %v9517_v13 = vld [vmem:[#allocation18_spill] sm:$0xff]  ;;  %v9520_v53 = vld [vmem:[#allocation7_spill] sm:$0xff] }
 0x15b   : > { %1413 = vst.msk [vmem:[#allocation3 + $0x4c] sm:$0xf] %vm332_vm2, %v1181_v57  ;;  %v1203_v60 = vsel %vm7451_vm5, %v9506_v52, %v8070_v38  ;;  %904 = vst.msk [vmem:[#allocation2 + $0x108] sm:$0xf] %vm332_vm2, %v6338_v11  ;;  %v1238_v48 = vsel %vm7451_vm5, %v7501_v41, %v8085_v33  ;;  %v9508_v38 = vrot.slane %v8050_v62, 4  ;;  %v8173_v28 = vrot.slane %v1903_v26, 4 }
 0x15c   : > { %1415 = vst.msk [vmem:[#allocation3 + $0x54] sm:$0xf] %vm332_vm2, %v1203_v60  ;;  %v1225_v4 = vsel %vm7451_vm5, %v9507_v5, %v1224_v7  ;;  %1416 = vst.msk [vmem:[#allocation3 + $0x58] sm:$0xf] %vm332_vm2, %v1216_v54  ;;  %v1260_v41 = vsel %vm7451_vm5, %v7511_v55, %v1259_v36  ;;  %v1269_v62 = vsel %vm7451_vm5, %v1261_v8, %v1268_v35  ;;  %v9510_v8 = vld [vmem:[#allocation17_spill] sm:$0xff]  ;;  %v9512_v7 = vld [vmem:[#allocation11_spill] sm:$0xff] }
 0x15d   : > { %v1247_v0 = vsel %vm7451_vm5, %v9508_v38, %v1246_v63  ;;  %1417 = vst.msk [vmem:[#allocation3 + $0x5c] sm:$0xf] %vm332_vm2, %v1225_v4  ;;  %1418 = vst.msk [vmem:[#allocation3 + $0x60] sm:$0xf] %vm332_vm2, %v1238_v48  ;;  %v1282_v26 = vsel %vm7451_vm5, %v7507_v49, %v1281_v12  ;;  %v1291_v33 = vsel %vm7451_vm5, %v1283_v20, %v1290_v10  ;;  %v9513_v12 = vld [vmem:[#allocation19_spill] sm:$0xff]  ;;  %v9518_v34 = vld [vmem:[#allocation22_spill] sm:$0xff] }
 0x15e   : > { %1419 = vst.msk [vmem:[#allocation3 + $0x64] sm:$0xf] %vm332_vm2, %v1247_v0  ;;  %902 = vst.msk [vmem:[#allocation2 + $0xf8] sm:$0xf] %vm332_vm2, %v6336_v42  ;;  %v1631_v63 = vsel %vm7582_vm8, %v7609_v14, %v7488_v23  ;;  %v1645_v49 = vsel %vm7582_vm8, %v9511_v19, %v9510_v8  ;;  %v1655_v43 = vsel %vm7582_vm8, %v9513_v12, %v9512_v7  ;;  %v7167_v20 = vld [vmem:[%s9443_s3 + $0xc] sm:$0xf] }
 0x15f   : > { %1420 = vst.msk [vmem:[#allocation3 + $0x68] sm:$0xf] %vm332_vm2, %v1260_v41  ;;  %1421 = vst.msk [vmem:[#allocation3 + $0x6c] sm:$0xf] %vm332_vm2, %v1269_v62  ;;  %v3238_v23 = vsel %vm547_vm0, %v7167_v20, 0  ;;  %v1669_v21 = vsel %vm7582_vm8, %v9515_v47, %v9514_v2  ;;  %v1679_v36 = vsel %vm7582_vm8, %v9517_v13, %v9516_v37  ;;  %v9519_v10 = vld [vmem:[#allocation23_spill] sm:$0xff]  ;;  %v1741_v42 = vsel %vm7582_vm8, %v7854_v58, %v7859_v30 }
 0x160   : > { %1422 = vst.msk [vmem:[#allocation3 + $0x70] sm:$0xf] %vm332_vm2, %v1282_v26  ;;  %1423 = vst.msk [vmem:[#allocation3 + $0x74] sm:$0xf] %vm332_vm2, %v1291_v33  ;;  %v8211_v14 = vld [vmem:[#allocation2 + $0xc] sm:$0x1]  ;;  %v1693_v35 = vsel %vm7582_vm8, %v9519_v10, %v9518_v34  ;;  %6681 = vmatpush3.bf16.msra.mxu0 %v3238_v23  ;;  %v1841_v5 = vor.u32 %v8108_v31, %v8104_v16  ;;  %v1789_v30 = vsel %vm7582_vm8, %v8036_v18, %v8031_v22 }
 0x161   : > { %2034 = vst.msk [vmem:[#allocation3 + $0x134] sm:$0xf] %vm332_vm2, %v1631_v63  ;;  %2035 = vst.msk [vmem:[#allocation3 + $0x138] sm:$0xf] %vm332_vm2, %v1645_v49  ;;  %v8228_v27 = vrot.slane %v1879_v45, 4  ;;  %v8230_v24 = vrot.slane %v1906_v9, 5  ;;  %6958 = vmatprep.subr.msk.bf16.mxu0 %vm547_vm0, %v8171_v50  ;;  %v1813_v18 = vsel %vm7582_vm8, %v8019_v1, %v8009_v56 }
 0x162   : > { %2036 = vst.msk [vmem:[#allocation3 + $0x13c] sm:$0xf] %vm332_vm2, %v1655_v43  ;;  %v8232_v44 = vrot.slane %v1882_v51, 5  ;;  %v7047_v11 = vld [vmem:[#allocation3 + $0xf8] sm:$0xff]   ;;  %v9521_v46 = vshrl.u32 %v9520_v53, 16  ;;  %v9522_v57 = vshll.u32 %v9520_v53, 16  ;;  %v1837_v43 = vsel %vm7582_vm8, %v8106_v29, %v8104_v16 }
 0x163   : > { %2037 = vst.msk [vmem:[#allocation3 + $0x140] sm:$0xf] %vm332_vm2, %v1669_v21  ;;  %2038 = vst.msk [vmem:[#allocation3 + $0x144] sm:$0xf] %vm332_vm2, %v1679_v36  ;;  %v9523_v9 = vld [vmem:[#allocation8_spill] sm:$0xff]  ;;  %v9526_v60 = vld [vmem:[#allocation21_spill] sm:$0xff]  ;;  %6605 = vmatmul.mubr.msk.bf16.gmra.mxu1 %vm498_vm1, %v7047_v11 }
 0x164   : > { %v8236_v17 = vrot.slane %v9521_v46, 4  ;;  %2039 = vst.msk [vmem:[#allocation3 + $0x148] sm:$0xf] %vm332_vm2, %v1693_v35  ;;  %v8243_v45 = vrot.slane %v9522_v57, 5  ;;  %v9524_v3 = vshll.u32 %v9523_v9, 16  ;;  %v9525_v52 = vld [vmem:[#allocation20_spill] sm:$0xff] }
 0x165   : > { %v1717_v54 = vsel %vm7582_vm8, %v9526_v60, %v9525_v52  ;;  %v8261_v4 = vld [vmem:[#allocation2 + $0x104] sm:$0xf]  ;;  %2043 = vst.msk [vmem:[#allocation3 + $0x158] sm:$0xf] %vm332_vm2, %v1741_v42  ;;  %v9527_v40 = vld [vmem:[#allocation26_spill] sm:$0xff]  ;;  %v9528_v41 = vld [vmem:[#allocation27_spill] sm:$0xff] }
 0x166   : > { %v8247_v51 = vrot.slane %v9524_v3, 5  ;;  %v1462_v48 = vld [vmem:[#allocation2 + $0x104] sm:$0xf]  ;;  %2041 = vst.msk [vmem:[#allocation3 + $0x150] sm:$0xf] %vm332_vm2, %v1717_v54  ;;  %v1765_v58 = vsel %vm7582_vm8, %v9528_v41, %v9527_v40  ;;  %v1320_v62 = vshrl.u32 %v8261_v4, 16  ;;  %v1567_v11 = vor.u32 %v8243_v45, %v8236_v17 }
 0x167   : > { %v1551_v38 = vld [vmem:[#allocation2 + $0x104] sm:$0xf]  ;;  %1499 = vst.msk [vmem:[#allocation3 + $0x110] sm:$0xf] %vm332_vm2, %v1462_v48  ;;  %v951_v63 = vld [vmem:[#allocation2 + $0xf4] sm:$0xf] }
 0x168   : > { %v7049_v0 = vld [vmem:[#allocation3 + $0x100] sm:$0xff]   ;;  %v1945_v26 = vshrl.u32 %v1551_v38, 16  ;;  %v1948_v33 = vshll.u32 %v1551_v38, 16  ;;  %v9529_v8 = vshrl.u32 %v9523_v9, 16  ;;  %2045 = vst.msk [vmem:[#allocation3 + $0x160] sm:$0xf] %vm332_vm2, %v1765_v58 }
 0x169   : > { %2047 = vst.msk [vmem:[#allocation3 + $0x168] sm:$0xf] %vm332_vm2, %v1789_v30  ;;  %v1298_v49 = vshrl.u32 %v951_v63, 16  ;;  %v1460_v7 = vld [vmem:[#allocation2 + $0xf4] sm:$0xf]  ;;  %v1580_v22 = vshll.u32 %v8211_v14, 16  ;;  %6608 = vmatprep.mubr.msk.bf16.mxu1 %vm498_vm1, %v7049_v0 }
 0x16a   : > { %v8277_v19 = vrot.slane %v9529_v8, 4  ;;  %v1548_v12 = vld [vmem:[#allocation2 + $0xf4] sm:$0xf]  ;;  %v1947_v20 = vrot.slane %v1945_v26, 4  ;;  %v1950_v23 = vrot.slane %v1948_v33, 5  ;;  %v1301_v2 = vshll.u32 %v951_v63, 16 }
 0x16b   : > { %1497 = vst.msk [vmem:[#allocation3 + $0x108] sm:$0xf] %vm332_vm2, %v1460_v7  ;;  %v1921_v47 = vshrl.u32 %v1548_v12, 16  ;;  %v955_v21 = vld [vmem:[#allocation2 + $0x108] sm:$0xf]  ;;  %v8294_v37 = vrot.slane %v1320_v62, 7  ;;  %v1861_v7 = vsel %vm7582_vm8, %v8090_v59, %v8088_v61  ;;  %v1885_v59 = vsel %vm7582_vm8, %v8228_v27, %v8232_v44 }
 0x16c   : > { %2049 = vst.msk [vmem:[#allocation3 + $0x170] sm:$0xf] %vm332_vm2, %v1813_v18  ;;  %2051 = vst.msk [vmem:[#allocation3 + $0x178] sm:$0xf] %vm332_vm2, %v1837_v43  ;;  %v1300_v56 = vrot.slane %v1298_v49, 7  ;;  %v1924_v1 = vshll.u32 %v1548_v12, 16  ;;  %v1951_v29 = vor.u32 %v1950_v23, %v1947_v20  ;;  %v1577_v53 = vor.u32 %v8277_v19, %v8247_v51 }
 0x16d   : > { %v1329_v13 = vshrl.u32 %v955_v21, 16  ;;  %v1463_v36 = vld [vmem:[#allocation2 + $0x108] sm:$0xf]  ;;  %v1923_v34 = vrot.slane %v1921_v47, 4  ;;  %v952_v35 = vld [vmem:[#allocation2 + $0xf8] sm:$0xf] }
 0x16e   : > { %1500 = vst.msk [vmem:[#allocation3 + $0x114] sm:$0xf] %vm332_vm2, %v1463_v36  ;;  %v1552_v10 = vld [vmem:[#allocation2 + $0x108] sm:$0xf]  ;;  %v1303_v46 = vor.u32 %v1301_v2, %v1300_v56  ;;  %v1926_v57 = vrot.slane %v1924_v1, 5  ;;  %v1332_v3 = vshll.u32 %v955_v21, 16 }
 0x16f   : > { %v1331_v9 = vrot.slane %v1329_v13, 7  ;;  %v1461_v52 = vld [vmem:[#allocation2 + $0xf8] sm:$0xf]  ;;  %v7042_v60 = vld [vmem:[#allocation3 + $0x48] sm:$0xff]   ;;  %v1952_v54 = vrot.slane %v1951_v29, 4  ;;  %v1954_v42 = vshll.u32 %v1552_v10, 16 }
 0x170   : > { %v1958_v48 = vshrl.u32 %v1552_v10, 16  ;;  %v1307_v38 = vshrl.u32 %v952_v35, 16  ;;  %1498 = vst.msk [vmem:[#allocation3 + $0x10c] sm:$0xf] %vm332_vm2, %v1461_v52  ;;  %v8303_v0 = vld [vmem:[#allocation2 + $0xf8] sm:$0xf]  ;;  %v1927_v17 = vor.u32 %v1926_v57, %v1923_v34  ;;  %6631 = vmatmul.mubr.msk.bf16.gmra.mxu0 %vm498_vm1, %v7042_v60 }
 0x171   : > { %v1327_v40 = vrot.slane %v8294_v37, 4  ;;  %v1334_v45 = vor.u32 %v1332_v3, %v1331_v9  ;;  %v1930_v41 = vshll.u32 %v8303_v0, 16  ;;  %v1956_v58 = vrot.slane %v1954_v42, 5  ;;  %v7044_v33 = vld [vmem:[#allocation3 + $0x50] sm:$0xff]   ;;  %v9530_v19 = vld [vmem:[#allocation12_spill] sm:$0xff]  ;;  %v7048_v9 = vld [vmem:[#allocation3 + $0x60] sm:$0xff]  }
 0x172   : > { %v1960_v30 = vrot.slane %v1958_v48, 4  ;;  %v1309_v62 = vrot.slane %v1307_v38, 7  ;;  %v1310_v26 = vshll.u32 %v952_v35, 16  ;;  %v1928_v63 = vrot.slane %v1927_v17, 4  ;;  %6634 = vmatprep.mubr.msk.bf16.mxu0 %vm498_vm1, %v7044_v33  ;;  %2053 = vst.msk [vmem:[#allocation3 + $0x180] sm:$0xf] %vm332_vm2, %v1861_v7 }
 0x173   : > { %v8308_v8 = vrot.slane %v1930_v41, 5  ;;  %v1304_v49 = vsel %vm7451_vm5, %v9530_v19, %v1303_v46  ;;  %v1305_v12 = vrot.slane %v1300_v56, 4  ;;  %v1957_v18 = vsel %vm7582_vm8, %v1952_v54, %v1956_v58  ;;  %v7046_v23 = vld [vmem:[#allocation3 + $0x58] sm:$0xff]   ;;  %v1523_v21 = vld [vmem:[#allocation2 + $0x6c] sm:$0x1]  ;;  %v9533_v48 = vld [vmem:[#allocation25_spill] sm:$0xff] }
 0x174   : > { %v1961_v43 = vor.u32 %v1960_v30, %v1956_v58  ;;  %v1312_v20 = vor.u32 %v1310_v26, %v1309_v62  ;;  %1424 = vst.msk [vmem:[#allocation3 + $0x78] sm:$0xf] %vm332_vm2, %v1304_v49  ;;  %2061 = vst.msk [vmem:[#allocation3 + $0x1a0] sm:$0xf] %vm332_vm2, %v1957_v18  ;;  %v1568_v2 = vrot.slane %v1567_v11, 4  ;;  %v1909_v56 = vsel %vm7582_vm8, %v8173_v28, %v8230_v24  ;;  %v9532_v46 = vld [vmem:[#allocation10_spill] sm:$0xff] }
 0x175   : > { %v1520_v47 = vld [vmem:[#allocation2 + $0x5c] sm:$0x1]  ;;  %v1933_v1 = vsel %vm7582_vm8, %v1928_v63, %v8308_v8  ;;  %v9531_v13 = vshrl.u32 %v8044_v6, 16  ;;  %2055 = vst.msk [vmem:[#allocation3 + $0x188] sm:$0xf] %vm332_vm2, %v1885_v59  ;;  %v1335_v28 = vsel %vm7451_vm5, %v1327_v40, %v1334_v45  ;;  %v1578_v10 = vrot.slane %v1577_v53, 4 }
 0x176   : > { %v1962_v29 = vrot.slane %v1961_v43, 4  ;;  %v1313_v34 = vsel %vm7451_vm5, %v1305_v12, %v1312_v20  ;;  %2057 = vst.msk [vmem:[#allocation3 + $0x190] sm:$0xf] %vm332_vm2, %v1909_v56  ;;  %2059 = vst.msk [vmem:[#allocation3 + $0x198] sm:$0xf] %vm332_vm2, %v1933_v1  ;;  %v1573_v6 = vsel %vm7582_vm8, %v1568_v2, %v8247_v51  ;;  %v8353_v35 = vrot.slane %v1841_v5, 4 }
 0x177   : > { %v8336_v36 = vrot.slane %v9531_v13, 4  ;;  %v7051_v27 = vld [vmem:[#allocation3 + $0x108] sm:$0xff]   ;;  %1425 = vst.msk [vmem:[#allocation3 + $0x7c] sm:$0xf] %vm332_vm2, %v1313_v34  ;;  %1427 = vst.msk [vmem:[#allocation3 + $0x84] sm:$0xf] %vm332_vm2, %v1335_v28 }
 0x178   : > { %v1910_v11 = vshrl.u32 %v8114_v25, 16  ;;  %v1967_v57 = vsel %vm7582_vm8, %v1962_v29, %v9532_v46  ;;  %v1582_v3 = vrot.slane %v1580_v22, 5  ;;  %2029 = vst.msk [vmem:[#allocation3 + $0x120] sm:$0xf] %vm332_vm2, %v1573_v6  ;;  %6635 = vmatmul.mubr.msk.bf16.gmra.mxu0 %vm498_vm1, %v7046_v23  ;;  %6609 = vmatmul.mubr.msk.bf16.gmra.mxu1 %vm498_vm1, %v7051_v27  ;;  %v1526_v16 = vld [vmem:[#allocation2 + $0x7c] sm:$0x1] }
 0x179   : > { %2062 = vst.msk [vmem:[#allocation3 + $0x1a4] sm:$0xf] %vm332_vm2, %v1967_v57  ;;  %v1886_v31 = vshrl.u32 %v8124_v32, 16  ;;  %6638 = vmatprep.mubr.msk.bf16.mxu0 %vm498_vm1, %v7048_v9  ;;  %v1700_v51 = vshll.u32 %v1520_v47, 16  ;;  %v1724_v5 = vshll.u32 %v1523_v21, 16  ;;  %v7050_v53 = vld [vmem:[#allocation3 + $0x68] sm:$0xff]   ;;  %v1865_v12 = vor.u32 %v8336_v36, %v8088_v61 }
 0x17a   : > { %v1583_v25 = vsel %vm7582_vm8, %v1578_v10, %v1582_v3  ;;  %v1529_v14 = vld [vmem:[#allocation2 + $0x8c] sm:$0x1]  ;;  %v1912_v22 = vrot.slane %v1910_v11, 4  ;;  %v1532_v54 = vld [vmem:[#allocation2 + $0x9c] sm:$0x1]  ;;  %v1748_v17 = vshll.u32 %v1526_v16, 16 }
 0x17b   : > { %2030 = vst.msk [vmem:[#allocation3 + $0x124] sm:$0xf] %vm332_vm2, %v1583_v25  ;;  %v1702_v52 = vrot.slane %v1700_v51, 5  ;;  %v1726_v60 = vrot.slane %v1724_v5, 5  ;;  %v1888_v42 = vrot.slane %v1886_v31, 4  ;;  %v9534_v38 = vld [vmem:[#allocation24_spill] sm:$0xff] }
 0x17c   : > { %v1535_v45 = vld [vmem:[#allocation2 + $0xac] sm:$0x1]  ;;  %v7052_v41 = vld [vmem:[#allocation3 + $0x70] sm:$0xff]   ;;  %v1750_v62 = vrot.slane %v1748_v17, 5  ;;  %v1772_v26 = vshll.u32 %v1529_v14, 16  ;;  %v1934_v63 = vshrl.u32 %v8303_v0, 16  ;;  %v1913_v47 = vor.u32 %v1912_v22, %v8230_v24 }
 0x17d   : > { %v1703_v32 = vsel %vm7582_vm8, %v9533_v48, %v1702_v52  ;;  %v1727_v40 = vsel %vm7582_vm8, %v9534_v38, %v1726_v60  ;;  %v7168_v58 = vld [vmem:[%s9443_s3 + $0x10] sm:$0xf]  ;;  %v1538_v33 = vld [vmem:[#allocation2 + $0xbc] sm:$0x1]  ;;  %v7055_v19 = vld [vmem:[#allocation3 + $0x128] sm:$0xff]   ;;  %v1796_v49 = vshll.u32 %v1532_v54, 16  ;;  %v1889_v21 = vor.u32 %v1888_v42, %v8232_v44 }
 0x17e   : > { %2040 = vst.msk [vmem:[#allocation3 + $0x14c] sm:$0xf] %vm332_vm2, %v1703_v32  ;;  %2042 = vst.msk [vmem:[#allocation3 + $0x154] sm:$0xf] %vm332_vm2, %v1727_v40  ;;  %v3597_v30 = vsel %vm547_vm0, %v7168_v58, 0  ;;  %v7057_v43 = vld [vmem:[#allocation3 + $0x130] sm:$0xff]   ;;  %v1751_v20 = vsel %vm7582_vm8, %v8007_v15, %v1750_v62 }
 0x17f   : > { %v1541_v7 = vld [vmem:[#allocation2 + $0xcc] sm:$0x1]  ;;  %v1774_v23 = vrot.slane %v1772_v26, 5  ;;  %2044 = vst.msk [vmem:[#allocation3 + $0x15c] sm:$0xf] %vm332_vm2, %v1751_v20  ;;  %v1798_v0 = vrot.slane %v1796_v49, 5 }
 0x180   : > { %6639 = vmatmul.mubr.msk.bf16.gmra.mxu0 %vm498_vm1, %v7050_v53  ;;  %v1820_v2 = vshll.u32 %v1535_v45, 16  ;;  %v9535_v61 = vld [vmem:[#allocation28_spill] sm:$0xff]  ;;  %v1936_v1 = vrot.slane %v1934_v63, 4  ;;  %v9536_v15 = vld [vmem:[#allocation30_spill] sm:$0xff]  ;;  %v1844_v29 = vshll.u32 %v1538_v33, 16  ;;  %v1866_v34 = vrot.slane %v1865_v12, 4 }
 0x181   : > { %6642 = vmatprep.mubr.msk.bf16.mxu0 %vm498_vm1, %v7052_v41  ;;  %v1775_v59 = vsel %vm7582_vm8, %v9535_v61, %v1774_v23  ;;  %v1544_v56 = vld [vmem:[#allocation2 + $0xdc] sm:$0x1]  ;;  %v1799_v36 = vsel %vm7582_vm8, %v9536_v15, %v1798_v0  ;;  %v1547_v44 = vld [vmem:[#allocation2 + $0xec] sm:$0x1]  ;;  %v1868_v28 = vshll.u32 %v1541_v7, 16  ;;  %v9537_v6 = vld [vmem:[#allocation29_spill] sm:$0xff] }
 0x182   : > { %v7054_v18 = vld [vmem:[#allocation3 + $0x120] sm:$0xff]   ;;  %v7053_v13 = vld [vmem:[#allocation3 + $0x78] sm:$0xff]   ;;  %2046 = vst.msk [vmem:[#allocation3 + $0x164] sm:$0xf] %vm332_vm2, %v1775_v59  ;;  %v1822_v24 = vrot.slane %v1820_v2, 5  ;;  %v7056_v27 = vld [vmem:[#allocation3 + $0x8] sm:$0xff]   ;;  %v1937_v16 = vor.u32 %v1936_v1, %v8308_v8 }
 0x183   : > { %6648 = vmatprep.mubr.msk.bf16.mxu1 %vm498_vm1, %v7054_v18  ;;  %2048 = vst.msk [vmem:[#allocation3 + $0x16c] sm:$0xf] %vm332_vm2, %v1799_v36  ;;  %v1846_v11 = vrot.slane %v1844_v29, 5  ;;  %v1914_v46 = vrot.slane %v1913_v47, 4  ;;  %v1870_v57 = vrot.slane %v1868_v28, 5  ;;  %v1890_v3 = vrot.slane %v1889_v21, 4 }
 0x184   : > { %6649 = vmatmul.mubr.msk.bf16.vlgmr.msra.gmra.mxu1 %vm498_vm1, %v7055_v19  ;;  %v1823_v10 = vsel %vm7582_vm8, %v9537_v6, %v1822_v24  ;;  %v1550_v9 = vld [vmem:[#allocation2 + $0xfc] sm:$0x1]  ;;  %v1892_v25 = vshll.u32 %v1544_v56, 16  ;;  %v1323_v51 = vshll.u32 %v8261_v4, 16  ;;  %v1916_v14 = vshll.u32 %v1547_v44, 16  ;;  %v7061_v52 = vld [vmem:[#allocation3 + $0x140] sm:$0xff]  }
 0x185   : > { %6715 = vmatpush3.bf16.msra.mxu1 %v3597_v30  ;;  %6652 = vmatprep.mubr.msk.bf16.mxu1 %vm498_vm1, %v7057_v43  ;;  %2050 = vst.msk [vmem:[#allocation3 + $0x174] sm:$0xf] %vm332_vm2, %v1823_v10  ;;  %v1847_v31 = vsel %vm7582_vm8, %v8353_v35, %v1846_v11  ;;  %v1871_v5 = vsel %vm7582_vm8, %v1866_v34, %v1870_v57  ;;  %v7059_v22 = vld [vmem:[#allocation3 + $0x138] sm:$0xff]   ;;  %v953_v53 = vld [vmem:[#allocation2 + $0x100] sm:$0x8]  ;;  %v1938_v54 = vrot.slane %v1937_v16, 4 }
 0x186   : > { %2052 = vst.msk [vmem:[#allocation3 + $0x17c] sm:$0xf] %vm332_vm2, %v1847_v31  ;;  %2054 = vst.msk [vmem:[#allocation3 + $0x184] sm:$0xf] %vm332_vm2, %v1871_v5  ;;  %v1894_v8 = vrot.slane %v1892_v25, 5  ;;  %v1918_v60 = vrot.slane %v1916_v14, 5  ;;  %v1325_v40 = vor.u32 %v1323_v51, %v8294_v37 }
 0x187   : > { %v1940_v35 = vshll.u32 %v1550_v9, 16  ;;  %v7058_v48 = vld [vmem:[#allocation3 + $0x10] sm:$0xff]   ;;  %v3956_v38 = vsel %vm547_vm0, %v8171_v50, 0  ;;  %v7060_v17 = vld [vmem:[#allocation3 + $0x18] sm:$0xff]   ;;  %v1315_v45 = vshrl.u32 %v953_v53, 16  ;;  %v7063_v37 = vld [vmem:[#allocation3 + $0x148] sm:$0xff]  }
 0x188   : > { %6643 = vmatmul.mubr.msk.bf16.gmra.mxu0 %vm498_vm1, %v7053_v13  ;;  %v1895_v4 = vsel %vm7582_vm8, %v1890_v3, %v1894_v8  ;;  %v1919_v42 = vsel %vm7582_vm8, %v1914_v46, %v1918_v60  ;;  %v6167_v41 = vld [vmem:[%s9443_s3 + $0x18] sm:$0xf]  ;;  %v7065_v30 = vld [vmem:[#allocation3 + $0x150] sm:$0xff]   ;;  %v7062_v26 = vld [vmem:[#allocation3 + $0x20] sm:$0xff]  }
 0x189   : > { %6682 = vmatprep.mubr.msk.bf16.mxu0 %vm498_vm1, %v7056_v27  ;;  %2056 = vst.msk [vmem:[#allocation3 + $0x18c] sm:$0xf] %vm332_vm2, %v1895_v4  ;;  %2058 = vst.msk [vmem:[#allocation3 + $0x194] sm:$0xf] %vm332_vm2, %v1919_v42  ;;  %v1942_v32 = vrot.slane %v1940_v35, 5  ;;  %6959 = vmatprep.subr.msk.bf16.mxu1 %vm547_vm0, %v6167_v41  ;;  %v5968_v50 = vrot.slane %v1315_v45, 11 }
 0x18a   : > { %v7064_v33 = vld [vmem:[#allocation3 + $0x28] sm:$0xff]   ;;  %v7067_v63 = vld [vmem:[#allocation3 + $0x158] sm:$0xff]   ;;  %v7069_v19 = vld [vmem:[#allocation3 + $0x160] sm:$0xff]   ;;  %v4315_v44 = vsel %vm547_vm0, %v6167_v41, 0 }
 0x18b   : > { %v1943_v58 = vsel %vm7582_vm8, %v1938_v54, %v1942_v32  ;;  %v1326_v62 = vsel %vm7451_vm5, %v5968_v50, %v1325_v40  ;;  %v7066_v49 = vld [vmem:[#allocation3 + $0x30] sm:$0xff]   ;;  %v7068_v7 = vld [vmem:[#allocation3 + $0x38] sm:$0xff]   ;;  %v7071_v12 = vld [vmem:[#allocation3 + $0x168] sm:$0xff]  }
 0x18c   : > { %6653 = vmatmul.mubr.msk.bf16.gmra.mxu1 %vm498_vm1, %v7059_v22  ;;  %2060 = vst.msk [vmem:[#allocation3 + $0x19c] sm:$0xf] %vm332_vm2, %v1943_v58  ;;  %1426 = vst.msk [vmem:[#allocation3 + $0x80] sm:$0xf] %vm332_vm2, %v1326_v62  ;;  %v7073_v18 = vld [vmem:[#allocation3 + $0x170] sm:$0xff]   ;;  %v7070_v43 = vld [vmem:[#allocation3 + $0x40] sm:$0xff]  }
 0x18d   : > { %6656 = vmatprep.mubr.msk.bf16.mxu1 %vm498_vm1, %v7061_v52  ;;  %v7072_v20 = vld [vmem:[#allocation3 + $0x48] sm:$0xff]   ;;  %v7075_v23 = vld [vmem:[#allocation3 + $0x178] sm:$0xff]   ;;  %v7077_v0 = vld [vmem:[#allocation3 + $0x180] sm:$0xff]  }
 0x18e   : > { %v7074_v2 = vld [vmem:[#allocation3 + $0x50] sm:$0xff]   ;;  %v7076_v47 = vld [vmem:[#allocation3 + $0x58] sm:$0xff]   ;;  %v7078_v56 = vld [vmem:[#allocation3 + $0x60] sm:$0xff]  }
 0x18f   : > { %v6200_v21 = vld [vmem:[%s9443_s3 + $0x1c] sm:$0xf]  ;;  %v7080_v1 = vld [vmem:[#allocation3 + $0x68] sm:$0xff]   ;;  %v7082_v36 = vld [vmem:[#allocation3 + $0x70] sm:$0xff]  }
 0x190   : > { %6683 = vmatmul.mubr.msk.bf16.vlgmr.msra.gmra.mxu0 %vm498_vm1, %v7058_v48  ;;  %v7079_v61 = vld [vmem:[#allocation3 + $0x188] sm:$0xff]   ;;  %v7081_v59 = vld [vmem:[#allocation3 + $0x190] sm:$0xff]   ;;  %v7085_v15 = vld [vmem:[#allocation3 + $0x98] sm:$0xff]   ;;  %v4674_v16 = vsel %vm547_vm0, %v6200_v21, 0 }
 0x191   : > { %6686 = vmatprep.mubr.msk.bf16.mxu0 %vm498_vm1, %v7060_v17  ;;  %6749 = vmatpush3.bf16.msra.mxu0 %v3956_v38  ;;  %v7084_v24 = vld [vmem:[#allocation3 + $0x78] sm:$0xff]   ;;  %v7087_v29 = vld [vmem:[#allocation3 + $0xa0] sm:$0xff]   ;;  %v7089_v34 = vld [vmem:[#allocation3 + $0xa8] sm:$0xff]  }
 0x192   : > { %6960 = vmatprep.subr.msk.bf16.mxu0 %vm547_vm0, %v6200_v21  ;;  %v8474_v28 = vld [vmem:[%s9443_s3 + $0x20] sm:$0xf]  ;;  %v7088_v6 = vld [vmem:[#allocation3 + $0x128] sm:$0xff]   ;;  %v7091_v10 = vld [vmem:[#allocation3 + $0xb0] sm:$0xff]  }
 0x193   : > { %v7083_v13 = vld [vmem:[#allocation3 + $0x198] sm:$0xff]   ;;  %v7086_v27 = vld [vmem:[#allocation3 + $0x80] sm:$0xff]   ;;  %v7090_v46 = vld [vmem:[#allocation3 + $0x130] sm:$0xff]  }
 0x194   : > { %6657 = vmatmul.mubr.msk.bf16.gmra.mxu1 %vm498_vm1, %v7063_v37  ;;  %v7093_v11 = vld [vmem:[#allocation3 + $0xb8] sm:$0xff]   ;;  %v956_v9 = vld [vmem:[#allocation2 + $0x110] sm:$0x8]  ;;  %v957_v3 = vld [vmem:[#allocation2 + $0x114] sm:$0xf] }
 0x195   : > { %6660 = vmatprep.mubr.msk.bf16.mxu1 %vm498_vm1, %v7065_v30  ;;  %v7092_v57 = vld [vmem:[#allocation3 + $0x138] sm:$0xff]   ;;  %v1337_v25 = vshrl.u32 %v956_v9, 16  ;;  %v1342_v51 = vshrl.u32 %v957_v3, 16  ;;  %v1345_v5 = vshll.u32 %v957_v3, 16  ;;  %v1464_v60 = vld [vmem:[#allocation2 + $0x114] sm:$0xf] }
 0x196   : > { %v958_v31 = vld [vmem:[#allocation2 + $0x118] sm:$0xf]  ;;  %v7095_v4 = vld [vmem:[#allocation3 + $0xc0] sm:$0xff]   ;;  %1501 = vst.msk [vmem:[#allocation3 + $0x118] sm:$0xf] %vm332_vm2, %v1464_v60  ;;  %v7097_v48 = vld [vmem:[#allocation3 + $0xc8] sm:$0xff]  }
 0x197   : > { %v1351_v14 = vshrl.u32 %v958_v31, 16  ;;  %v1354_v22 = vshll.u32 %v958_v31, 16  ;;  %v5969_v8 = vrot.slane %v1337_v25, 11  ;;  %v1344_v53 = vrot.slane %v1342_v51, 7  ;;  %v1465_v54 = vld [vmem:[#allocation2 + $0x118] sm:$0xf] }
 0x198   : > { %6687 = vmatmul.mubr.msk.bf16.gmra.mxu0 %vm498_vm1, %v7062_v26  ;;  %1502 = vst.msk [vmem:[#allocation3 + $0x11c] sm:$0xf] %vm332_vm2, %v1465_v54  ;;  %v7094_v45 = vld [vmem:[#allocation3 + $0x140] sm:$0xff]   ;;  %v7096_v41 = vld [vmem:[#allocation3 + $0x148] sm:$0xff]   ;;  %v7099_v62 = vld [vmem:[#allocation3 + $0xd0] sm:$0xff]  }
 0x199   : > { %6690 = vmatprep.mubr.msk.bf16.mxu0 %vm498_vm1, %v7064_v33  ;;  %v1353_v52 = vrot.slane %v1351_v14, 7  ;;  %v1347_v35 = vor.u32 %v1345_v5, %v1344_v53  ;;  %v1349_v42 = vrot.slane %v1344_v53, 4  ;;  %v1555_v9 = vld [vmem:[#allocation2 + $0x118] sm:$0xf]  ;;  %v1556_v3 = vld [vmem:[#allocation2 + $0x11c] sm:$0x1] }
 0x19a   : > { %v1978_v51 = vshll.u32 %v1555_v9, 16  ;;  %v1982_v5 = vshrl.u32 %v1555_v9, 16  ;;  %v7121_v14 = vld [vmem:[#allocation3 + $0x20] sm:$0xff]   ;;  %v7124_v55 = vld [vmem:[#allocation3 + $0xb0] sm:$0xff]  }
 0x19b   : > { %v1356_v38 = vor.u32 %v1354_v22, %v1353_v52  ;;  %v1348_v40 = vsel %vm7451_vm5, %v5969_v8, %v1347_v35  ;;  %v1988_v22 = vshll.u32 %v1556_v3, 16  ;;  %v7118_v54 = vld [vmem:[#allocation3 + $0x1a0] sm:$0xff]  }
 0x19c   : > { %6661 = vmatmul.mubr.msk.bf16.gmra.mxu1 %vm498_vm1, %v7067_v63  ;;  %1428 = vst.msk [vmem:[#allocation3 + $0x88] sm:$0xf] %vm332_vm2, %v1348_v40  ;;  %v1980_v52 = vrot.slane %v1978_v51, 5 }
 0x19d   : > { %6664 = vmatprep.mubr.msk.bf16.mxu1 %vm498_vm1, %v7069_v19  ;;  %v1357_v17 = vsel %vm7451_vm5, %v1349_v42, %v1356_v38  ;;  %v1990_v42 = vrot.slane %v1988_v22, 5 }
 0x19e   : > { %1429 = vst.msk [vmem:[#allocation3 + $0x8c] sm:$0xf] %vm332_vm2, %v1357_v17 }
 0x1a0   : > { %6691 = vmatmul.mubr.msk.bf16.gmra.mxu0 %vm498_vm1, %v7066_v49  ;;  %v7098_v49 = vld [vmem:[#allocation3 + $0x150] sm:$0xff]  }
 0x1a1   : > { %6694 = vmatprep.mubr.msk.bf16.mxu0 %vm498_vm1, %v7068_v7  ;;  %v7100_v7 = vld [vmem:[#allocation3 + $0x158] sm:$0xff]  }
 0x1a4   : > { %6665 = vmatmul.mubr.msk.bf16.gmra.mxu1 %vm498_vm1, %v7071_v12  ;;  %v7103_v12 = vld [vmem:[#allocation3 + $0xe0] sm:$0xff]  }
 0x1a5   : > { %6668 = vmatprep.mubr.msk.bf16.mxu1 %vm498_vm1, %v7073_v18  ;;  %v7105_v18 = vld [vmem:[#allocation3 + $0xe8] sm:$0xff]  }
 0x1a8   : > { %6695 = vmatmul.mubr.msk.bf16.gmra.mxu0 %vm498_vm1, %v7070_v43 }
 0x1a9   : > { %6698 = vmatprep.mubr.msk.bf16.mxu0 %vm498_vm1, %v7072_v20  ;;  %v7102_v20 = vld [vmem:[#allocation3 + $0x160] sm:$0xff]  }
 0x1ac   : > { %6669 = vmatmul.mubr.msk.bf16.gmra.mxu1 %vm498_vm1, %v7075_v23  ;;  %v7104_v23 = vld [vmem:[#allocation3 + $0x168] sm:$0xff]  }
 0x1ad   : > { %6672 = vmatprep.mubr.msk.bf16.mxu1 %vm498_vm1, %v7077_v0 }
 0x1b0   : > { %6699 = vmatmul.mubr.msk.bf16.gmra.mxu0 %vm498_vm1, %v7074_v2  ;;  %v7107_v2 = vld [vmem:[#allocation3 + $0xf0] sm:$0xff]  }
 0x1b1   : > { %6702 = vmatprep.mubr.msk.bf16.mxu0 %vm498_vm1, %v7076_v47  ;;  %v7109_v47 = vld [vmem:[#allocation3 + $0xf8] sm:$0xff]  }
 0x1b4   : > { %6673 = vmatmul.mubr.msk.bf16.gmra.mxu1 %vm498_vm1, %v7079_v61  ;;  %v7106_v61 = vld [vmem:[#allocation3 + $0x170] sm:$0xff]  }
 0x1b5   : > { %6676 = vmatprep.mubr.msk.bf16.mxu1 %vm498_vm1, %v7081_v59  ;;  %v7108_v59 = vld [vmem:[#allocation3 + $0x178] sm:$0xff]  }
 0x1b8   : > { %6703 = vmatmul.mubr.msk.bf16.gmra.mxu0 %vm498_vm1, %v7078_v56 }
 0x1b9   : > { %6706 = vmatprep.mubr.msk.bf16.mxu0 %vm498_vm1, %v7080_v1  ;;  %v7111_v1 = vld [vmem:[#allocation3 + $0x100] sm:$0xff]  }
 0x1bb   : > { %v6582_v32 = vpop.f32.mrf.mxu1 }
 0x1bc   : > { %6677 = vmatmul.mubr.msk.bf16.gmra.mxu1 %vm498_vm1, %v7083_v13  ;;  %v7113_v13 = vld [vmem:[#allocation3 + $0x108] sm:$0xff]  }
 0x1bd   : > { %6716 = vmatprep.mubr.msk.bf16.mxu1 %vm498_vm1, %v7085_v15  ;;  %v2297_v58 = vpop.f32.mrf.mxu1 }
 0x1bf   : > { %v6583_v33 = vpop.f32.mrf.mxu1 }
 0x1c0   : > { %6707 = vmatmul.mubr.msk.bf16.gmra.mxu0 %vm498_vm1, %v7082_v36  ;;  %v7110_v36 = vld [vmem:[#allocation3 + $0x180] sm:$0xff]  }
 0x1c1   : > { %6710 = vmatprep.mubr.msk.bf16.mxu0 %vm498_vm1, %v7084_v24  ;;  %v8511_v43 = vpop.f32.mrf.mxu1  ;;  %v7112_v24 = vld [vmem:[#allocation3 + $0x188] sm:$0xff]  }
 0x1c2   : > { %v6616_v50 = vpop.f32.mrf.mxu0 }
 0x1c3   : > { %v8498_v37 = vadd.f32 %v6616_v50, %v6582_v32  ;;  %v7125_v50 = vld [vmem:[#allocation3 + $0x30] sm:$0xff]  }
 0x1c4   : > { %6717 = vmatmul.mubr.msk.bf16.vlgmr.msra.gmra.mxu1 %vm498_vm1, %v7087_v29  ;;  %v2589_v30 = vpop.f32.mrf.mxu0 }
 0x1c5   : > { %6783 = vmatpush3.bf16.msra.mxu1 %v4315_v44  ;;  %6720 = vmatprep.mubr.msk.bf16.mxu1 %vm498_vm1, %v7089_v34  ;;  %v8501_v26 = vadd.f32 %v2589_v30, %v2297_v58  ;;  %v7115_v44 = vld [vmem:[#allocation3 + $0x110] sm:$0xff]  }
 0x1c6   : > { %6961 = vmatprep.subr.msk.bf16.mxu1 %vm547_vm0, %v8474_v28  ;;  %v6617_v63 = vpop.f32.mrf.mxu0  ;;  %v7117_v34 = vld [vmem:[#allocation3 + $0x10] sm:$0xff]  }
 0x1c7   : > { %v8504_v19 = vadd.f32 %v6617_v63, %v6583_v33  ;;  %v7122_v63 = vld [vmem:[#allocation3 + $0xa8] sm:$0xff]  }
 0x1c8   : > { %6711 = vmatmul.mubr.msk.bf16.gmra.mxu0 %vm498_vm1, %v7086_v27  ;;  %v8545_v32 = vpop.f32.mrf.mxu0 }
 0x1c9   : > { %6750 = vmatprep.mubr.msk.bf16.mxu0 %vm498_vm1, %v7088_v6  ;;  %v7114_v6 = vld [vmem:[#allocation3 + $0x190] sm:$0xff]  }
 0x1cc   : > { %6721 = vmatmul.mubr.msk.bf16.gmra.mxu1 %vm498_vm1, %v7091_v10  ;;  %v7116_v10 = vld [vmem:[#allocation3 + $0x198] sm:$0xff]  }
 0x1cd   : > { %6724 = vmatprep.mubr.msk.bf16.mxu1 %vm498_vm1, %v7093_v11  ;;  %v5033_v11 = vsel %vm547_vm0, %v8474_v28, 0  ;;  %v1984_v28 = vrot.slane %v1982_v5, 4  ;;  %v7137_v5 = vld [vmem:[#allocation3 + $0x60] sm:$0xff]  }
 0x1cf   : > { %v1985_v35 = vor.u32 %v1984_v28, %v1980_v52  ;;  %v7134_v28 = vld [vmem:[#allocation3 + $0xd8] sm:$0xff]  }
 0x1d0   : > { %6751 = vmatmul.mubr.msk.bf16.vlgmr.msra.gmra.mxu0 %vm498_vm1, %v7090_v46 }
 0x1d1   : > { %6754 = vmatprep.mubr.msk.bf16.mxu0 %vm498_vm1, %v7092_v57  ;;  %6817 = vmatpush3.bf16.msra.mxu0 %v4674_v16  ;;  %v1554_v57 = vld [vmem:[#allocation2 + $0x114] sm:$0xf]  ;;  %v7119_v16 = vld [vmem:[#allocation3 + $0x18] sm:$0xff]   ;;  %v1986_v40 = vrot.slane %v1985_v35, 4  ;;  %v7139_v35 = vld [vmem:[#allocation3 + $0x68] sm:$0xff]  }
 0x1d2   : > { %v1969_v31 = vshrl.u32 %v1554_v57, 16  ;;  %v1972_v25 = vshll.u32 %v1554_v57, 16  ;;  %v7130_v57 = vld [vmem:[#allocation3 + $0xc8] sm:$0xff]  }
 0x1d3   : > { %v1991_v58 = vsel %vm7582_vm8, %v1986_v40, %v1990_v42  ;;  %v7141_v42 = vld [vmem:[#allocation3 + $0x70] sm:$0xff]   ;;  %v7138_v40 = vld [vmem:[#allocation3 + $0xe8] sm:$0xff]  }
 0x1d4   : > { %6725 = vmatmul.mubr.msk.bf16.gmra.mxu1 %vm498_vm1, %v7095_v4  ;;  %v1971_v8 = vrot.slane %v1969_v31, 4  ;;  %v1974_v53 = vrot.slane %v1972_v25, 5  ;;  %2064 = vst.msk [vmem:[#allocation3 + $0x1ac] sm:$0xf] %vm332_vm2, %v1991_v58  ;;  %v7135_v25 = vld [vmem:[#allocation3 + $0x58] sm:$0xff]  }
 0x1d5   : > { %6728 = vmatprep.mubr.msk.bf16.mxu1 %vm498_vm1, %v7097_v48  ;;  %v8515_v0 = vpop.f32.mrf.mxu1  ;;  %v7120_v48 = vld [vmem:[#allocation3 + $0xa0] sm:$0xff]  }
 0x1d6   : > { %v1975_v4 = vor.u32 %v1974_v53, %v1971_v8 }
 0x1d7   : > { %v8519_v21 = vpop.f32.mrf.mxu1 }
 0x1d8   : > { %6755 = vmatmul.mubr.msk.bf16.gmra.mxu0 %vm498_vm1, %v7094_v45  ;;  %v1976_v38 = vrot.slane %v1975_v4, 4  ;;  %v7123_v45 = vld [vmem:[#allocation3 + $0x28] sm:$0xff]  }
 0x1d9   : > { %6758 = vmatprep.mubr.msk.bf16.mxu0 %vm498_vm1, %v7096_v41  ;;  %v8523_v56 = vpop.f32.mrf.mxu1 }
 0x1da   : > { %v1981_v41 = vsel %vm7582_vm8, %v1976_v38, %v1980_v52 }
 0x1db   : > { %v8527_v15 = vpop.f32.mrf.mxu1  ;;  %2063 = vst.msk [vmem:[#allocation3 + $0x1a8] sm:$0xf] %vm332_vm2, %v1981_v41 }
 0x1dc   : > { %6729 = vmatmul.mubr.msk.bf16.gmra.mxu1 %vm498_vm1, %v7099_v62 }
 0x1dd   : > { %6732 = vmatprep.mubr.msk.bf16.mxu1 %vm498_vm1, %v7101_v39 }
 0x1e0   : > { %6759 = vmatmul.mubr.msk.bf16.gmra.mxu0 %vm498_vm1, %v7098_v49 }
 0x1e1   : > { %6762 = vmatprep.mubr.msk.bf16.mxu0 %vm498_vm1, %v7100_v7 }
 0x1e3   : > { %v8531_v29 = vpop.f32.mrf.mxu1 }
 0x1e4   : > { %6733 = vmatmul.mubr.msk.bf16.gmra.mxu1 %vm498_vm1, %v7103_v12 }
 0x1e5   : > { %6736 = vmatprep.mubr.msk.bf16.mxu1 %vm498_vm1, %v7105_v18  ;;  %v8535_v27 = vpop.f32.mrf.mxu1 }
 0x1e7   : > { %v8541_v46 = vpop.f32.mrf.mxu1 }
 0x1e8   : > { %6763 = vmatmul.mubr.msk.bf16.gmra.mxu0 %vm498_vm1, %v7102_v20 }
 0x1e9   : > { %6766 = vmatprep.mubr.msk.bf16.mxu0 %vm498_vm1, %v7104_v23  ;;  %v2332_v60 = vpop.f32.mrf.mxu1  ;;  %v7127_v23 = vld [vmem:[#allocation3 + $0x38] sm:$0xff]  }
 0x1ec   : > { %6737 = vmatmul.mubr.msk.bf16.gmra.mxu1 %vm498_vm1, %v7107_v2  ;;  %v6594_v17 = vpop.f32.mrf.mxu1  ;;  %v7129_v2 = vld [vmem:[#allocation3 + $0x40] sm:$0xff]  }
 0x1ed   : > { %6740 = vmatprep.mubr.msk.bf16.mxu1 %vm498_vm1, %v7109_v47 }
 0x1ee   : > { %v2345_v33 = vpop.f32.mrf.mxu1 }
 0x1f0   : > { %6767 = vmatmul.mubr.msk.bf16.gmra.mxu0 %vm498_vm1, %v7106_v61  ;;  %v6595_v20 = vpop.f32.mrf.mxu1 }
 0x1f1   : > { %6770 = vmatprep.mubr.msk.bf16.mxu0 %vm498_vm1, %v7108_v59  ;;  %v7128_v59 = vld [vmem:[#allocation3 + $0xc0] sm:$0xff]  }
 0x1f2   : > { %v2348_v47 = vpop.f32.mrf.mxu1 }
 0x1f4   : > { %6741 = vmatmul.mubr.msk.bf16.gmra.mxu1 %vm498_vm1, %v7111_v1 }
 0x1f5   : > { %6744 = vmatprep.mubr.msk.bf16.mxu1 %vm498_vm1, %v7113_v13 }
 0x1f8   : > { %6771 = vmatmul.mubr.msk.bf16.gmra.mxu0 %vm498_vm1, %v7110_v36  ;;  %v7131_v36 = vld [vmem:[#allocation3 + $0x48] sm:$0xff]  }
 0x1f9   : > { %6774 = vmatprep.mubr.msk.bf16.mxu0 %vm498_vm1, %v7112_v24 }
 0x1fc   : > { %6745 = vmatmul.mubr.msk.bf16.gmra.mxu1 %vm498_vm1, %v7115_v44  ;;  %v7133_v44 = vld [vmem:[#allocation3 + $0x50] sm:$0xff]  }
 0x1fd   : > { %6784 = vmatprep.mubr.msk.bf16.mxu1 %vm498_vm1, %v7117_v34 }
 0x200   : > { %6775 = vmatmul.mubr.msk.bf16.gmra.mxu0 %vm498_vm1, %v7114_v6 }
 0x201   : > { %6778 = vmatprep.mubr.msk.bf16.mxu0 %vm498_vm1, %v7116_v10 }
 0x202   : > { %v6620_v30 = vpop.f32.mrf.mxu0 }
 0x203   : > { %v8557_v62 = vadd.f32 %v6620_v30, %v8515_v0  ;;  %v7143_v30 = vld [vmem:[#allocation3 + $0x78] sm:$0xff]  }
 0x204   : > { %6785 = vmatmul.mubr.msk.bf16.vlgmr.msra.gmra.mxu1 %vm498_vm1, %v7119_v16  ;;  %v2605_v39 = vpop.f32.mrf.mxu0 }
 0x205   : > { %6851 = vmatpush3.bf16.msra.mxu1 %v5033_v11  ;;  %6788 = vmatprep.mubr.msk.bf16.mxu1 %vm498_vm1, %v7121_v14  ;;  %v8561_v49 = vadd.f32 %v2605_v39, %v8519_v21  ;;  %v7126_v21 = vld [vmem:[#allocation3 + $0xb8] sm:$0xff]  }
 0x206   : > { %v6621_v7 = vpop.f32.mrf.mxu0 }
 0x207   : > { %v8565_v12 = vadd.f32 %v6621_v7, %v8523_v56 }
 0x208   : > { %6779 = vmatmul.mubr.msk.bf16.gmra.mxu0 %vm498_vm1, %v7118_v54  ;;  %v2608_v18 = vpop.f32.mrf.mxu0 }
 0x209   : > { %6818 = vmatprep.mubr.msk.bf16.mxu0 %vm498_vm1, %v7120_v48  ;;  %v8569_v0 = vadd.f32 %v2608_v18, %v8527_v15 }
 0x20c   : > { %6789 = vmatmul.mubr.msk.bf16.gmra.mxu1 %vm498_vm1, %v7123_v45 }
 0x20d   : > { %6792 = vmatprep.mubr.msk.bf16.mxu1 %vm498_vm1, %v7125_v50  ;;  %v6624_v61 = vpop.f32.mrf.mxu0 }
 0x20e   : > { %v8574_v56 = vadd.f32 %v6624_v61, %v8531_v29 }
 0x20f   : > { %v2621_v1 = vpop.f32.mrf.mxu0 }
 0x210   : > { %6819 = vmatmul.mubr.msk.bf16.vlgmr.msra.gmra.mxu0 %vm498_vm1, %v7122_v63  ;;  %v8579_v13 = vadd.f32 %v2621_v1, %v8535_v27  ;;  %v6598_v15 = vpop.f32.mrf.mxu1  ;;  %v7132_v27 = vld [vmem:[#allocation3 + $0xd0] sm:$0xff]  }
 0x211   : > { %6822 = vmatprep.mubr.msk.bf16.mxu0 %vm498_vm1, %v7124_v55  ;;  %v6625_v24 = vpop.f32.mrf.mxu0 }
 0x212   : > { %v8582_v34 = vadd.f32 %v6625_v24, %v8541_v46  ;;  %v2361_v6 = vpop.f32.mrf.mxu1 }
 0x213   : > { %v2624_v29 = vpop.f32.mrf.mxu0 }
 0x214   : > { %6793 = vmatmul.mubr.msk.bf16.gmra.mxu1 %vm498_vm1, %v7127_v23  ;;  %v8586_v10 = vadd.f32 %v2624_v29, %v2332_v60  ;;  %v6599_v11 = vpop.f32.mrf.mxu1  ;;  %v7136_v60 = vld [vmem:[#allocation3 + $0xe0] sm:$0xff]  }
 0x215   : > { %6796 = vmatprep.mubr.msk.bf16.mxu1 %vm498_vm1, %v7129_v2  ;;  %v6628_v9 = vpop.f32.mrf.mxu0  ;;  %v7144_v23 = vld [vmem:[#allocation3 + $0x100] sm:$0xff]  }
 0x216   : > { %v8588_v3 = vadd.f32 %v6628_v9, %v6594_v17  ;;  %v8590_v16 = vpop.f32.mrf.mxu1  ;;  %v7140_v17 = vld [vmem:[#allocation3 + $0xf0] sm:$0xff]  }
 0x217   : > { %v2637_v46 = vpop.f32.mrf.mxu0 }
 0x218   : > { %6823 = vmatmul.mubr.msk.bf16.gmra.mxu0 %vm498_vm1, %v7126_v21  ;;  %v8594_v31 = vadd.f32 %v2637_v46, %v2345_v33  ;;  %v7145_v33 = vld [vmem:[#allocation3 + $0x80] sm:$0xff]   ;;  %v7147_v21 = vld [vmem:[#allocation3 + $0x88] sm:$0xff]  }
 0x219   : > { %6826 = vmatprep.mubr.msk.bf16.mxu0 %vm498_vm1, %v7128_v59  ;;  %v6629_v51 = vpop.f32.mrf.mxu0  ;;  %v6602_v22 = vpop.f32.mrf.mxu1 }
 0x21a   : > { %v8596_v14 = vadd.f32 %v6629_v51, %v6595_v20  ;;  %v7142_v20 = vld [vmem:[#allocation3 + $0xf8] sm:$0xff]  }
 0x21b   : > { %v2640_v8 = vpop.f32.mrf.mxu0  ;;  %v2377_v52 = vpop.f32.mrf.mxu1  ;;  %v7151_v51 = vld [vmem:[#allocation3 + $0x138] sm:$0xff]  }
 0x21c   : > { %6797 = vmatmul.mubr.msk.bf16.gmra.mxu1 %vm498_vm1, %v7131_v36  ;;  %v8600_v53 = vadd.f32 %v2640_v8, %v2348_v47  ;;  %v7149_v36 = vld [vmem:[#allocation3 + $0x130] sm:$0xff]  }
 0x21d   : > { %6800 = vmatprep.mubr.msk.bf16.mxu1 %vm498_vm1, %v7133_v44  ;;  %v6603_v54 = vpop.f32.mrf.mxu1 }
 0x21f   : > { %v8604_v4 = vpop.f32.mrf.mxu1 }
 0x220   : > { %6827 = vmatmul.mubr.msk.bf16.gmra.mxu0 %vm498_vm1, %v7130_v57  ;;  %v7148_v57 = vld [vmem:[#allocation3 + $0x110] sm:$0xff]  }
 0x221   : > { %6830 = vmatprep.mubr.msk.bf16.mxu0 %vm498_vm1, %v7132_v27 }
 0x223   : > { %v6606_v48 = vpop.f32.mrf.mxu1 }
 0x224   : > { %6801 = vmatmul.mubr.msk.bf16.gmra.mxu1 %vm498_vm1, %v7135_v25 }
 0x225   : > { %6804 = vmatprep.mubr.msk.bf16.mxu1 %vm498_vm1, %v7137_v5  ;;  %v2393_v38 = vpop.f32.mrf.mxu1 }
 0x227   : > { %v6607_v41 = vpop.f32.mrf.mxu1 }
 0x228   : > { %6831 = vmatmul.mubr.msk.bf16.gmra.mxu0 %vm498_vm1, %v7134_v28 }
 0x229   : > { %6834 = vmatprep.mubr.msk.bf16.mxu0 %vm498_vm1, %v7136_v60  ;;  %v8615_v55 = vpop.f32.mrf.mxu1 }
 0x22c   : > { %6805 = vmatmul.mubr.msk.bf16.gmra.mxu1 %vm498_vm1, %v7139_v35 }
 0x22d   : > { %6808 = vmatprep.mubr.msk.bf16.mxu1 %vm498_vm1, %v7141_v42 }
 0x230   : > { %v6632_v45 = vpop.f32.mrf.mxu0  ;;  %6835 = vmatmul.mubr.msk.bf16.gmra.mxu0 %vm498_vm1, %v7138_v40 }
 0x231   : > { %v8609_v58 = vadd.f32 %v6632_v45, %v6598_v15  ;;  %6838 = vmatprep.mubr.msk.bf16.mxu0 %vm498_vm1, %v7140_v17 }
 0x232   : > { %v2653_v50 = vpop.f32.mrf.mxu0 }
 0x233   : > { %v8612_v39 = vadd.f32 %v2653_v50, %v2361_v6 }
 0x234   : > { %v6633_v63 = vpop.f32.mrf.mxu0  ;;  %6809 = vmatmul.mubr.msk.bf16.gmra.mxu1 %vm498_vm1, %v7143_v30  ;;  %v7153_v30 = vld [vmem:[#allocation3 + $0x148] sm:$0xff]  }
 0x235   : > { %v8617_v7 = vadd.f32 %v6633_v63, %v6599_v11  ;;  %6812 = vmatprep.mubr.msk.bf16.mxu1 %vm498_vm1, %v7145_v33  ;;  %v7146_v11 = vld [vmem:[#allocation3 + $0x108] sm:$0xff]   ;;  %v7154_v33 = vld [vmem:[#allocation3 + $0x150] sm:$0xff]  }
 0x236   : > { %v8620_v18 = vpop.f32.mrf.mxu0 }
 0x238   : > { %v6636_v2 = vpop.f32.mrf.mxu0  ;;  %6839 = vmatmul.mubr.msk.bf16.gmra.mxu0 %vm498_vm1, %v7142_v20  ;;  %v6610_v47 = vpop.f32.mrf.mxu1 }
 0x239   : > { %v8623_v61 = vadd.f32 %v6636_v2, %v6602_v22  ;;  %6842 = vmatprep.mubr.msk.bf16.mxu0 %vm498_vm1, %v7144_v23  ;;  %v7152_v22 = vld [vmem:[#allocation3 + $0x140] sm:$0xff]  }
 0x23a   : > { %v2669_v59 = vpop.f32.mrf.mxu0  ;;  %v2409_v1 = vpop.f32.mrf.mxu1 }
 0x23b   : > { %v8626_v15 = vadd.f32 %v2669_v59, %v2377_v52  ;;  %v7150_v52 = vld [vmem:[#allocation3 + $0x118] sm:$0xff]  }
 0x23c   : > { %v6637_v24 = vpop.f32.mrf.mxu0  ;;  %6813 = vmatmul.mubr.msk.bf16.gmra.mxu1 %vm498_vm1, %v7147_v21  ;;  %v6611_v44 = vpop.f32.mrf.mxu1 }
 0x23d   : > { %v8629_v6 = vadd.f32 %v6637_v24, %v6603_v54  ;;  %6852 = vmatprep.mubr.msk.bf16.mxu1 %vm498_vm1, %v7149_v36 }
 0x23e   : > { %v8632_v29 = vpop.f32.mrf.mxu0  ;;  %v8635_v27 = vpop.f32.mrf.mxu1 }
 0x240   : > { %v6640_v9 = vpop.f32.mrf.mxu0  ;;  %6843 = vmatmul.mubr.msk.bf16.gmra.mxu0 %vm498_vm1, %v7146_v11 }
 0x241   : > { %v8637_v46 = vadd.f32 %v6640_v9, %v6606_v48  ;;  %6846 = vmatprep.mubr.msk.bf16.mxu0 %vm498_vm1, %v7148_v57  ;;  %v7155_v57 = vld [vmem:[#allocation3 + $0x158] sm:$0xff]   ;;  %v7156_v9 = vld [vmem:[#allocation3 + $0x160] sm:$0xff]  }
 0x242   : > { %v2685_v25 = vpop.f32.mrf.mxu0 }
 0x243   : > { %v8640_v5 = vadd.f32 %v2685_v25, %v2393_v38 }
 0x244   : > { %v6641_v8 = vpop.f32.mrf.mxu0  ;;  %v6650_v28 = vpop.f32.mrf.mxu1  ;;  %6853 = vmatmul.mubr.msk.bf16.vlgmr.msra.gmra.mxu1 %vm498_vm1, %v7151_v51 }
 0x245   : > { %v8643_v60 = vadd.f32 %v6641_v8, %v6607_v41  ;;  %v3044_v54 = vadd.f32 %v6650_v28, %v8498_v37  ;;  %6856 = vmatprep.mubr.msk.bf16.mxu1 %vm498_vm1, %v7152_v22 }
 0x246   : > { %v8647_v35 = vpop.f32.mrf.mxu0  ;;  %v2915_v42 = vpop.f32.mrf.mxu1 }
 0x247   : > { %v3042_v48 = vadd.f32 %v2915_v42, %v8501_v26 }
 0x248   : > { %v6644_v40 = vpop.f32.mrf.mxu0  ;;  %6847 = vmatmul.mubr.msk.bf16.gmra.mxu0 %vm498_vm1, %v7150_v52  ;;  %v6651_v38 = vpop.f32.mrf.mxu1 }
 0x249   : > { %v8651_v17 = vadd.f32 %v6644_v40, %v6610_v47  ;;  %v3045_v45 = vadd.f32 %v6651_v38, %v8504_v19 }
 0x24a   : > { %v2701_v50 = vpop.f32.mrf.mxu0  ;;  %v8654_v41 = vpop.f32.mrf.mxu1 }
 0x24b   : > { %v8656_v37 = vadd.f32 %v2701_v50, %v2409_v1 }
 0x24c   : > { %v6645_v63 = vpop.f32.mrf.mxu0  ;;  %v6654_v20 = vpop.f32.mrf.mxu1  ;;  %6857 = vmatmul.mubr.msk.bf16.gmra.mxu1 %vm498_vm1, %v7153_v30 }
 0x24d   : > { %v8659_v26 = vadd.f32 %v6645_v63, %v6611_v44  ;;  %v3048_v23 = vadd.f32 %v6654_v20, %v8557_v62  ;;  %6860 = vmatprep.mubr.msk.bf16.mxu1 %vm498_vm1, %v7154_v33  ;;  %v7158_v33 = vld [vmem:[#allocation3 + $0x170] sm:$0xff]  }
 0x24e   : > { %v8663_v2 = vpop.f32.mrf.mxu0  ;;  %v2931_v19 = vpop.f32.mrf.mxu1 }
 0x24f   : > { %v3046_v47 = vadd.f32 %v2931_v19, %v8561_v49 }
 0x250   : > { %v6684_v21 = vpop.f32.mrf.mxu0  ;;  %v6655_v59 = vpop.f32.mrf.mxu1 }
 0x251   : > { %v8666_v1 = vadd.f32 %v6684_v21, %v3044_v54  ;;  %v3049_v36 = vadd.f32 %v6655_v59, %v8565_v12 }
 0x252   : > { %v3274_v24 = vpop.f32.mrf.mxu0  ;;  %v2934_v11 = vpop.f32.mrf.mxu1 }
 0x253   : > { %v8669_v44 = vadd.f32 %v3274_v24, %v3042_v48  ;;  %v8672_v62 = vadd.f32 %v2934_v11, %v8569_v0  ;;  %v5315_v48 = vld [vmem:[%s9445_s5] sm:$0xf] }
 0x254   : > { %v6685_v25 = vpop.f32.mrf.mxu0  ;;  %v6658_v51 = vpop.f32.mrf.mxu1  ;;  %6861 = vmatmul.mubr.msk.bf16.gmra.mxu1 %vm498_vm1, %v7155_v57  ;;  %6962 = vmatprep.subr.msk.bf16.mxu0 %vm547_vm0, %v5315_v48 }
 0x255   : > { %v8675_v49 = vadd.f32 %v6685_v25, %v3045_v45  ;;  %v3052_v22 = vadd.f32 %v6658_v51, %v8574_v56  ;;  %6864 = vmatprep.mubr.msk.bf16.mxu1 %vm498_vm1, %v7156_v9  ;;  %v5535_v56 = vld [vmem:[%s9447_s7] sm:$0xf]  ;;  %v7157_v45 = vld [vmem:[#allocation3 + $0x168] sm:$0xff]   ;;  %v7159_v51 = vld [vmem:[#allocation3 + $0x178] sm:$0xff]  }
 0x256   : > { %v8679_v12 = vpop.f32.mrf.mxu0  ;;  %v2947_v8 = vpop.f32.mrf.mxu1  ;;  %6963 = vmatprep.subr.msk.bf16.mxu1 %vm547_vm0, %v5535_v56  ;;  %v5544_v50 = vsel %vm547_vm0, %v5535_v56, 0 }
 0x257   : > { %v3050_v52 = vadd.f32 %v2947_v8, %v8579_v13  ;;  %v5372_v13 = vsel %vm547_vm0, %v5315_v48, 0  ;;  %6919 = vmatpush3.bf16.msra.mxu1 %v5544_v50  ;;  %v7160_v8 = vld [vmem:[#allocation3 + $0x180] sm:$0xff]   ;;  %v7161_v50 = vld [vmem:[#allocation3 + $0x188] sm:$0xff]  }
 0x258   : > { %v6688_v28 = vpop.f32.mrf.mxu0  ;;  %v6659_v54 = vpop.f32.mrf.mxu1  ;;  %6885 = vmatpush3.bf16.msra.mxu0 %v5372_v13 }
 0x259   : > { %v8682_v0 = vadd.f32 %v6688_v28, %v3048_v23  ;;  %v3053_v42 = vadd.f32 %v6659_v54, %v8582_v34 }
 0x25a   : > { %v3290_v40 = vpop.f32.mrf.mxu0  ;;  %v2950_v38 = vpop.f32.mrf.mxu1 }
 0x25b   : > { %v8695_v34 = vadd.f32 %v3290_v40, %v3046_v47  ;;  %v8698_v30 = vadd.f32 %v2950_v38, %v8586_v10 }
 0x25c   : > { %v6689_v63 = vpop.f32.mrf.mxu0  ;;  %v6662_v20 = vpop.f32.mrf.mxu1  ;;  %6865 = vmatmul.mubr.msk.bf16.gmra.mxu1 %vm498_vm1, %v7157_v45 }
 0x25d   : > { %v8701_v23 = vadd.f32 %v6689_v63, %v3049_v36  ;;  %v3056_v19 = vadd.f32 %v6662_v20, %v8588_v3  ;;  %6868 = vmatprep.mubr.msk.bf16.mxu1 %vm498_vm1, %v7158_v33  ;;  %v7162_v63 = vld [vmem:[#allocation3 + $0x190] sm:$0xff]  }
 0x25e   : > { %v8705_v21 = vpop.f32.mrf.mxu0  ;;  %v2963_v47 = vpop.f32.mrf.mxu1 }
 0x25f   : > { %v3054_v59 = vadd.f32 %v2963_v47, %v8594_v31 }
 0x260   : > { %v6692_v10 = vpop.f32.mrf.mxu0  ;;  %v6663_v24 = vpop.f32.mrf.mxu1 }
 0x261   : > { %v8708_v11 = vadd.f32 %v6692_v10, %v3052_v22  ;;  %v3057_v57 = vadd.f32 %v6663_v24, %v8596_v14  ;;  %v2673_v24 = vadd.f32 %v8632_v29, %v8604_v4 }
 0x262   : > { %v3306_v9 = vpop.f32.mrf.mxu0  ;;  %v2966_v25 = vpop.f32.mrf.mxu1 }
 0x263   : > { %v8711_v36 = vadd.f32 %v3306_v9, %v3050_v52  ;;  %v8714_v3 = vadd.f32 %v2966_v25, %v8600_v53  ;;  %v2657_v53 = vadd.f32 %v8620_v18, %v8590_v16 }
 0x264   : > { %v6693_v28 = vpop.f32.mrf.mxu0  ;;  %v6666_v54 = vpop.f32.mrf.mxu1  ;;  %6869 = vmatmul.mubr.msk.bf16.gmra.mxu1 %vm498_vm1, %v7159_v51 }
 0x265   : > { %v8717_v31 = vadd.f32 %v6693_v28, %v3053_v42  ;;  %v3060_v22 = vadd.f32 %v6666_v54, %v8609_v58  ;;  %6872 = vmatprep.mubr.msk.bf16.mxu1 %vm498_vm1, %v7160_v8  ;;  %v7163_v8 = vld [vmem:[#allocation3 + $0x198] sm:$0xff]   ;;  %v7164_v54 = vld [vmem:[#allocation3 + $0x1a0] sm:$0xff]  }
 0x266   : > { %v8721_v14 = vpop.f32.mrf.mxu0  ;;  %v2979_v48 = vpop.f32.mrf.mxu1 }
 0x267   : > { %v3058_v52 = vadd.f32 %v2979_v48, %v8612_v39 }
 0x268   : > { %v6696_v56 = vpop.f32.mrf.mxu0  ;;  %v6667_v40 = vpop.f32.mrf.mxu1 }
 0x269   : > { %v8726_v38 = vadd.f32 %v6696_v56, %v3056_v19  ;;  %v3061_v45 = vadd.f32 %v6667_v40, %v8617_v7 }
 0x26a   : > { %v3322_v42 = vpop.f32.mrf.mxu0  ;;  %v2982_v13 = vpop.f32.mrf.mxu1 }
 0x26b   : > { %v8729_v58 = vadd.f32 %v3322_v42, %v3054_v59  ;;  %v3059_v33 = vadd.f32 %v2982_v13, %v2657_v53  ;;  %v7165_v42 = vld [vmem:[#allocation3 + $0x1a8] sm:$0xff]   ;;  %v2689_v13 = vadd.f32 %v8647_v35, %v8615_v55 }
 0x26c   : > { %v6697_v20 = vpop.f32.mrf.mxu0  ;;  %v6670_v47 = vpop.f32.mrf.mxu1  ;;  %6873 = vmatmul.mubr.msk.bf16.gmra.mxu1 %vm498_vm1, %v7161_v50 }
 0x26d   : > { %v8732_v39 = vadd.f32 %v6697_v20, %v3057_v57  ;;  %v3064_v10 = vadd.f32 %v6670_v47, %v8623_v61  ;;  %6876 = vmatprep.mubr.msk.bf16.mxu1 %vm498_vm1, %v7162_v63 }
 0x26e   : > { %v8736_v16 = vpop.f32.mrf.mxu0  ;;  %v2995_v7 = vpop.f32.mrf.mxu1 }
 0x26f   : > { %v3062_v18 = vadd.f32 %v2995_v7, %v8626_v15 }
 0x270   : > { %v6700_v19 = vpop.f32.mrf.mxu0  ;;  %v6671_v59 = vpop.f32.mrf.mxu1 }
 0x271   : > { %v8741_v9 = vadd.f32 %v6700_v19, %v3060_v22  ;;  %v3065_v25 = vadd.f32 %v6671_v59, %v8629_v6  ;;  %v7169_v59 = vld [vmem:[%s7359_s27] sm:$0xff]  }
 0x272   : > { %v3338_v57 = vpop.f32.mrf.mxu0  ;;  %v2998_v51 = vpop.f32.mrf.mxu1 }
 0x273   : > { %v8744_v61 = vadd.f32 %v3338_v57, %v3058_v52  ;;  %v3063_v28 = vadd.f32 %v2998_v51, %v2673_v24  ;;  %v2705_v57 = vadd.f32 %v8663_v2, %v8635_v27  ;;  %v7171_v2 = vld [vmem:[%s7359_s27 + $0x10] sm:$0xff]  }
 0x274   : > { %v6701_v48 = vpop.f32.mrf.mxu0  ;;  %v6674_v56 = vpop.f32.mrf.mxu1  ;;  %6877 = vmatmul.mubr.msk.bf16.gmra.mxu1 %vm498_vm1, %v7163_v8 }
 0x275   : > { %v8747_v15 = vadd.f32 %v6701_v48, %v3061_v45  ;;  %v3068_v40 = vadd.f32 %v6674_v56, %v8637_v46  ;;  %6880 = vmatprep.mubr.msk.bf16.mxu1 %vm498_vm1, %v7164_v54 }
 0x276   : > { %v3341_v4 = vpop.f32.mrf.mxu0  ;;  %v3011_v29 = vpop.f32.mrf.mxu1 }
 0x277   : > { %v8751_v6 = vadd.f32 %v3341_v4, %v3059_v33  ;;  %v3066_v22 = vadd.f32 %v3011_v29, %v8640_v5  ;;  %v7170_v4 = vld [vmem:[%s7359_s27 + $0x8] sm:$0xff]  }
 0x278   : > { %v6704_v52 = vpop.f32.mrf.mxu0  ;;  %v6675_v53 = vpop.f32.mrf.mxu1 }
 0x279   : > { %v8756_v50 = vadd.f32 %v6704_v52, %v3064_v10  ;;  %v3069_v45 = vadd.f32 %v6675_v53, %v8643_v60 }
 0x27a   : > { %v3354_v46 = vpop.f32.mrf.mxu0  ;;  %v3014_v63 = vpop.f32.mrf.mxu1 }
 0x27b   : > { %v8759_v20 = vadd.f32 %v3354_v46, %v3062_v18  ;;  %v3067_v47 = vadd.f32 %v3014_v63, %v2689_v13 }
 0x27c   : > { %v6705_v33 = vpop.f32.mrf.mxu0  ;;  %v6678_v7 = vpop.f32.mrf.mxu1  ;;  %6881 = vmatmul.mubr.msk.bf16.gmra.mxu1 %vm498_vm1, %v7165_v42 }
 0x27d   : > { %v8762_v5 = vadd.f32 %v6705_v33, %v3065_v25  ;;  %v3072_v19 = vadd.f32 %v6678_v7, %v8651_v17  ;;  %6920 = vmatprep.mubr.msk.bf16.mxu1 %vm498_vm1, %v7169_v59  ;;  %v7172_v7 = vld [vmem:[%s7359_s27 + $0x18] sm:$0xff]  }
 0x27e   : > { %v3357_v55 = vpop.f32.mrf.mxu0  ;;  %v3027_v35 = vpop.f32.mrf.mxu1 }
 0x27f   : > { %v8767_v60 = vadd.f32 %v3357_v55, %v3063_v28  ;;  %v3070_v10 = vadd.f32 %v3027_v35, %v8656_v37  ;;  %v2593_v37 = vadd.f32 %v8545_v32, %v8511_v43 }
 0x280   : > { %v6708_v18 = vpop.f32.mrf.mxu0  ;;  %v6679_v24 = vpop.f32.mrf.mxu1 }
 0x281   : > { %v8772_v25 = vadd.f32 %v6708_v18, %v3068_v40  ;;  %v3073_v17 = vadd.f32 %v6679_v24, %v8659_v26  ;;  %v3406_v24 = vadd.f32 %v8705_v21, %v8672_v62  ;;  %v7175_v62 = vld [vmem:[%s7359_s27 + $0x30] sm:$0xff]  }
 0x282   : > { %v3370_v51 = vpop.f32.mrf.mxu0  ;;  %v3030_v8 = vpop.f32.mrf.mxu1 }
 0x283   : > { %v8775_v54 = vadd.f32 %v3370_v51, %v3066_v22  ;;  %v3071_v48 = vadd.f32 %v3030_v8, %v2705_v57  ;;  %v3043_v22 = vadd.f32 %v8654_v41, %v2593_v37 }
 0x284   : > { %v6709_v56 = vpop.f32.mrf.mxu0  ;;  %v6718_v28 = vpop.f32.mrf.mxu1  ;;  %6921 = vmatmul.mubr.msk.bf16.vlgmr.msra.gmra.mxu1 %vm498_vm1, %v7170_v4 }
 0x285   : > { %v8781_v29 = vadd.f32 %v6709_v56, %v3069_v45  ;;  %v3762_v27 = vadd.f32 %v6718_v28, %v8666_v1  ;;  %6924 = vmatprep.mubr.msk.bf16.mxu1 %vm498_vm1, %v7171_v2  ;;  %v3402_v43 = vadd.f32 %v8679_v12, %v3043_v22 }
 0x286   : > { %v3373_v26 = vpop.f32.mrf.mxu0  ;;  %v3633_v40 = vpop.f32.mrf.mxu1 }
 0x287   : > { %v8787_v52 = vadd.f32 %v3373_v26, %v3067_v47  ;;  %v3760_v53 = vadd.f32 %v3633_v40, %v8669_v44  ;;  %v3410_v26 = vadd.f32 %v8721_v14, %v8698_v30  ;;  %v7177_v30 = vld [vmem:[%s7359_s27 + $0x40] sm:$0xff]  }
 0x288   : > { %v6712_v42 = vpop.f32.mrf.mxu0  ;;  %v6719_v13 = vpop.f32.mrf.mxu1 }
 0x289   : > { %v8791_v32 = vadd.f32 %v6712_v42, %v3072_v19  ;;  %v8794_v1 = vadd.f32 %v6719_v13, %v8675_v49  ;;  %v7173_v19 = vld [vmem:[%s7359_s27 + $0x20] sm:$0xff]  }
 0x28a   : > { %v3386_v45 = vpop.f32.mrf.mxu0  ;;  %v3636_v46 = vpop.f32.mrf.mxu1 }
 0x28b   : > { %v8796_v63 = vadd.f32 %v3386_v45, %v3070_v10  ;;  %v8798_v33 = vadd.f32 %v3636_v46, %v3402_v43 }
 0x28c   : > { %v6713_v41 = vpop.f32.mrf.mxu0  ;;  %v6722_v47 = vpop.f32.mrf.mxu1  ;;  %6925 = vmatmul.mubr.msk.bf16.gmra.mxu1 %vm498_vm1, %v7172_v7 }
 0x28d   : > { %v8802_v44 = vadd.f32 %v6713_v41, %v3073_v17  ;;  %v3766_v12 = vadd.f32 %v6722_v47, %v8682_v0  ;;  %6928 = vmatprep.mubr.msk.bf16.mxu1 %vm498_vm1, %v7173_v19 }
 0x28e   : > { %v3389_v49 = vpop.f32.mrf.mxu0  ;;  %v3649_v59 = vpop.f32.mrf.mxu1 }
 0x28f   : > { %v8807_v55 = vadd.f32 %v3389_v49, %v3071_v48  ;;  %v3764_v35 = vadd.f32 %v3649_v59, %v8695_v34  ;;  %v7174_v34 = vld [vmem:[%s7359_s27 + $0x28] sm:$0xff]  }
 0x290   : > { %v6752_v10 = vpop.f32.mrf.mxu0  ;;  %v6723_v18 = vpop.f32.mrf.mxu1 }
 0x291   : > { %v8812_v57 = vadd.f32 %v6752_v10, %v3762_v27  ;;  %v8815_v0 = vadd.f32 %v6723_v18, %v8701_v23 }
 0x292   : > { %v3992_v17 = vpop.f32.mrf.mxu0  ;;  %v3652_v51 = vpop.f32.mrf.mxu1 }
 0x293   : > { %v8817_v8 = vadd.f32 %v3992_v17, %v3760_v53  ;;  %v8819_v56 = vadd.f32 %v3652_v51, %v3406_v24 }
 0x294   : > { %v8821_v48 = vpop.f32.mrf.mxu0  ;;  %v6726_v28 = vpop.f32.mrf.mxu1  ;;  %6929 = vmatmul.mubr.msk.bf16.gmra.mxu1 %vm498_vm1, %v7174_v34 }
 0x295   : > { %v3770_v4 = vadd.f32 %v6726_v28, %v8708_v11  ;;  %6932 = vmatprep.mubr.msk.bf16.mxu1 %vm498_vm1, %v7175_v62 }
 0x296   : > { %v8828_v23 = vpop.f32.mrf.mxu0  ;;  %v3665_v21 = vpop.f32.mrf.mxu1 }
 0x297   : > { %v3768_v37 = vadd.f32 %v3665_v21, %v8711_v36  ;;  %v7176_v36 = vld [vmem:[%s7359_s27 + $0x38] sm:$0xff]  }
 0x298   : > { %v6756_v27 = vpop.f32.mrf.mxu0  ;;  %v6727_v2 = vpop.f32.mrf.mxu1 }
 0x299   : > { %v8833_v40 = vadd.f32 %v6756_v27, %v3766_v12  ;;  %v8836_v22 = vadd.f32 %v6727_v2, %v8717_v31  ;;  %v3414_v12 = vadd.f32 %v8736_v16, %v8714_v3  ;;  %v7179_v3 = vld [vmem:[%s7359_s27 + $0x50] sm:$0xff]  }
 0x29a   : > { %v4008_v11 = vpop.f32.mrf.mxu0  ;;  %v3668_v53 = vpop.f32.mrf.mxu1 }
 0x29b   : > { %v8838_v42 = vadd.f32 %v4008_v11, %v3764_v35  ;;  %v8840_v13 = vadd.f32 %v3668_v53, %v3410_v26  ;;  %v7180_v11 = vld [vmem:[%s7359_s27 + $0x58] sm:$0xff]   ;;  %v7181_v53 = vld [vmem:[%s7359_s27 + $0x60] sm:$0xff]  }
 0x29c   : > { %v8842_v43 = vpop.f32.mrf.mxu0  ;;  %v6730_v45 = vpop.f32.mrf.mxu1  ;;  %6933 = vmatmul.mubr.msk.bf16.gmra.mxu1 %vm498_vm1, %v7176_v36 }
 0x29d   : > { %v3774_v46 = vadd.f32 %v6730_v45, %v8726_v38  ;;  %6936 = vmatprep.mubr.msk.bf16.mxu1 %vm498_vm1, %v7177_v30 }
 0x29e   : > { %v8849_v31 = vpop.f32.mrf.mxu0  ;;  %v3681_v14 = vpop.f32.mrf.mxu1 }
 0x29f   : > { %v3772_v41 = vadd.f32 %v3681_v14, %v8729_v58  ;;  %v7178_v58 = vld [vmem:[%s7359_s27 + $0x48] sm:$0xff]  }
 0x2a0   : > { %v6760_v47 = vpop.f32.mrf.mxu0  ;;  %v6731_v7 = vpop.f32.mrf.mxu1 }
 0x2a1   : > { %v8854_v19 = vadd.f32 %v6760_v47, %v3770_v4  ;;  %v8857_v49 = vadd.f32 %v6731_v7, %v8732_v39 }
 0x2a2   : > { %v4024_v38 = vpop.f32.mrf.mxu0  ;;  %v3684_v59 = vpop.f32.mrf.mxu1 }
 0x2a3   : > { %v8859_v35 = vadd.f32 %v4024_v38, %v3768_v37  ;;  %v8861_v10 = vadd.f32 %v3684_v59, %v3414_v12  ;;  %v7182_v59 = vld [vmem:[%s7359_s27 + $0x68] sm:$0xff]  }
 0x2a4   : > { %v8863_v18 = vpop.f32.mrf.mxu0  ;;  %v6734_v24 = vpop.f32.mrf.mxu1  ;;  %6937 = vmatmul.mubr.msk.bf16.gmra.mxu1 %vm498_vm1, %v7178_v58 }
 0x2a5   : > { %v3778_v17 = vadd.f32 %v6734_v24, %v8741_v9  ;;  %6940 = vmatprep.mubr.msk.bf16.mxu1 %vm498_vm1, %v7179_v3  ;;  %v7183_v24 = vld [vmem:[%s7359_s27 + $0x70] sm:$0xff]  }
 0x2a6   : > { %v8870_v39 = vpop.f32.mrf.mxu0  ;;  %v3697_v16 = vpop.f32.mrf.mxu1 }
 0x2a7   : > { %v3776_v51 = vadd.f32 %v3697_v16, %v8744_v61 }
 0x2a8   : > { %v6764_v28 = vpop.f32.mrf.mxu0  ;;  %v6735_v34 = vpop.f32.mrf.mxu1 }
 0x2a9   : > { %v8873_v4 = vadd.f32 %v6764_v28, %v3774_v46  ;;  %v8876_v62 = vadd.f32 %v6735_v34, %v8747_v15 }
 0x2aa   : > { %v4040_v21 = vpop.f32.mrf.mxu0  ;;  %v3700_v37 = vpop.f32.mrf.mxu1 }
 0x2ab   : > { %v8878_v9 = vadd.f32 %v4040_v21, %v3772_v41  ;;  %v8881_v27 = vadd.f32 %v3700_v37, %v8751_v6 }
 0x2ac   : > { %v8883_v2 = vpop.f32.mrf.mxu0  ;;  %v6738_v26 = vpop.f32.mrf.mxu1  ;;  %6941 = vmatmul.mubr.msk.bf16.gmra.mxu1 %vm498_vm1, %v7180_v11  ;;  %v7184_v11 = vld [vmem:[%s7359_s27 + $0x78] sm:$0xff]  }
 0x2ad   : > { %9538 = vst [vmem:[#allocation13_spill] sm:$0xff] %v8881_v27  ;;  %v3782_v61 = vadd.f32 %v6738_v26, %v8756_v50  ;;  %6944 = vmatprep.mubr.msk.bf16.mxu1 %vm498_vm1, %v7181_v53 }
 0x2ae   : > { %v8890_v15 = vpop.f32.mrf.mxu0  ;;  %v3713_v45 = vpop.f32.mrf.mxu1 }
 0x2af   : > { %v3780_v36 = vadd.f32 %v3713_v45, %v8759_v20 }
 0x2b0   : > { %v6768_v6 = vpop.f32.mrf.mxu0  ;;  %v6739_v46 = vpop.f32.mrf.mxu1 }
 0x2b1   : > { %v8893_v30 = vadd.f32 %v6768_v6, %v3778_v17  ;;  %v8896_v14 = vadd.f32 %v6739_v46, %v8762_v5 }
 0x2b2   : > { %v4056_v41 = vpop.f32.mrf.mxu0  ;;  %v3716_v47 = vpop.f32.mrf.mxu1 }
 0x2b3   : > { %9539 = vst [vmem:[#allocation17_spill] sm:$0xff] %v8896_v14  ;;  %v8898_v50 = vadd.f32 %v4056_v41, %v3776_v51  ;;  %v8901_v7 = vadd.f32 %v3716_v47, %v8767_v60 }
 0x2b4   : > { %v8903_v12 = vpop.f32.mrf.mxu0  ;;  %v6742_v38 = vpop.f32.mrf.mxu1  ;;  %6945 = vmatmul.mubr.msk.bf16.gmra.mxu1 %vm498_vm1, %v7182_v59 }
 0x2b5   : > { %9540 = vst [vmem:[#allocation16_spill] sm:$0xff] %v8901_v7  ;;  %v3786_v20 = vadd.f32 %v6742_v38, %v8772_v25  ;;  %6948 = vmatprep.mubr.msk.bf16.mxu1 %vm498_vm1, %v7183_v24 }
 0x2b6   : > { %v8910_v5 = vpop.f32.mrf.mxu0  ;;  %v3729_v58 = vpop.f32.mrf.mxu1 }
 0x2b7   : > { %9541 = vst [vmem:[#allocation11_spill] sm:$0xff] %v8910_v5  ;;  %v3784_v17 = vadd.f32 %v3729_v58, %v8775_v54 }
 0x2b8   : > { %v6772_v3 = vpop.f32.mrf.mxu0  ;;  %v6743_v60 = vpop.f32.mrf.mxu1 }
 0x2b9   : > { %v8913_v16 = vadd.f32 %v6772_v3, %v3782_v61  ;;  %v8916_v51 = vadd.f32 %v6743_v60, %v8781_v29 }
 0x2ba   : > { %v4072_v28 = vpop.f32.mrf.mxu0  ;;  %v3732_v34 = vpop.f32.mrf.mxu1 }
 0x2bb   : > { %9542 = vst [vmem:[#allocation19_spill] sm:$0xff] %v8916_v51  ;;  %v8918_v21 = vadd.f32 %v4072_v28, %v3780_v36  ;;  %v8921_v25 = vadd.f32 %v3732_v34, %v8787_v52 }
 0x2bc   : > { %v8923_v37 = vpop.f32.mrf.mxu0  ;;  %v6746_v26 = vpop.f32.mrf.mxu1  ;;  %6949 = vmatmul.mubr.msk.bf16.gmra.mxu1 %vm498_vm1, %v7184_v11 }
 0x2bd   : > { %9543 = vst [vmem:[#allocation14_spill] sm:$0xff] %v8921_v25  ;;  %9544 = vst [vmem:[#allocation15_spill] sm:$0xff] %v8923_v37  ;;  %v3790_v54 = vadd.f32 %v6746_v26, %v8791_v32 }
 0x2be   : > { %v8928_v61 = vpop.f32.mrf.mxu0  ;;  %v3745_v53 = vpop.f32.mrf.mxu1 }
 0x2bf   : > { %9545 = vst [vmem:[#allocation9_spill] sm:$0xff] %v8928_v61  ;;  %v3788_v29 = vadd.f32 %v3745_v53, %v8796_v63 }
 0x2c0   : > { %v6776_v45 = vpop.f32.mrf.mxu0  ;;  %v6747_v6 = vpop.f32.mrf.mxu1 }
 0x2c1   : > { %v8931_v36 = vadd.f32 %v6776_v45, %v3786_v20  ;;  %v8934_v52 = vadd.f32 %v6747_v6, %v8802_v44 }
 0x2c2   : > { %v4088_v46 = vpop.f32.mrf.mxu0  ;;  %v3748_v41 = vpop.f32.mrf.mxu1 }
 0x2c3   : > { %9546 = vst [vmem:[#allocation18_spill] sm:$0xff] %v8934_v52  ;;  %v8936_v47 = vadd.f32 %v4088_v46, %v3784_v17  ;;  %v8939_v38 = vadd.f32 %v3748_v41, %v8807_v55 }
 0x2c4   : > { %v8941_v32 = vpop.f32.mrf.mxu0  ;;  %v6786_v59 = vpop.f32.mrf.mxu1 }
 0x2c5   : > { %9547 = vst [vmem:[#allocation22_spill] sm:$0xff] %v8939_v38  ;;  %9548 = vst [vmem:[#allocation23_spill] sm:$0xff] %v8941_v32  ;;  %v8944_v24 = vadd.f32 %v6786_v59, %v8812_v57 }
 0x2c6   : > { %v8946_v63 = vpop.f32.mrf.mxu0  ;;  %v4351_v20 = vpop.f32.mrf.mxu1 }
 0x2c7   : > { %9549 = vst [vmem:[#allocation7_spill] sm:$0xff] %v8946_v63  ;;  %v8949_v58 = vadd.f32 %v4351_v20, %v8817_v8 }
 0x2c8   : > { %v6780_v44 = vpop.f32.mrf.mxu0  ;;  %v8951_v3 = vpop.f32.mrf.mxu1 }
 0x2c9   : > { %v4149_v17 = vadd.f32 %v6780_v44, %v3790_v54 }
 0x2ca   : > { %v4104_v60 = vpop.f32.mrf.mxu0  ;;  %v8953_v28 = vpop.f32.mrf.mxu1 }
 0x2cb   : > { %v4147_v55 = vadd.f32 %v4104_v60, %v3788_v29 }
 0x2cc   : > { %v8955_v34 = vpop.f32.mrf.mxu0  ;;  %v6790_v26 = vpop.f32.mrf.mxu1 }
 0x2cd   : > { %9550 = vst [vmem:[#allocation8_spill] sm:$0xff] %v8955_v34  ;;  %v8958_v57 = vadd.f32 %v6790_v26, %v8833_v40 }
 0x2ce   : > { %v8960_v11 = vpop.f32.mrf.mxu0  ;;  %v4367_v53 = vpop.f32.mrf.mxu1 }
 0x2cf   : > { %9551 = vst [vmem:[#allocation20_spill] sm:$0xff] %v8960_v11  ;;  %v8963_v8 = vadd.f32 %v4367_v53, %v8838_v42 }
 0x2d0   : > { %v6820_v45 = vpop.f32.mrf.mxu0  ;;  %v8965_v6 = vpop.f32.mrf.mxu1 }
 0x2d2   : > { %v4710_v54 = vpop.f32.mrf.mxu0  ;;  %v8967_v46 = vpop.f32.mrf.mxu1 }
 0x2d4   : > { %v6821_v41 = vpop.f32.mrf.mxu0  ;;  %v6794_v29 = vpop.f32.mrf.mxu1 }
 0x2d5   : > { %v8970_v59 = vadd.f32 %v6794_v29, %v8854_v19 }
 0x2d6   : > { %v4713_v20 = vpop.f32.mrf.mxu0  ;;  %v4383_v40 = vpop.f32.mrf.mxu1 }
 0x2d7   : > { %v8973_v44 = vadd.f32 %v4383_v40, %v8859_v35 }
 0x2d8   : > { %v8975_v60 = vpop.f32.mrf.mxu0  ;;  %v8977_v42 = vpop.f32.mrf.mxu1 }
 0x2da   : > { %v8979_v26 = vpop.f32.mrf.mxu0  ;;  %v8981_v53 = vpop.f32.mrf.mxu1 }
 0x2dc   : > { %v8983_v11 = vpop.f32.mrf.mxu0  ;;  %v6798_v38 = vpop.f32.mrf.mxu1 }
 0x2dd   : > { %v8986_v34 = vadd.f32 %v6798_v38, %v8873_v4 }
 0x2de   : > { %v8988_v19 = vpop.f32.mrf.mxu0  ;;  %v4399_v29 = vpop.f32.mrf.mxu1 }
 0x2df   : > { %v8991_v35 = vadd.f32 %v4399_v29, %v8878_v9 }
 0x2e0   : > { %v8993_v40 = vpop.f32.mrf.mxu1  ;;  %v8995_v52 = vpop.f32.mrf.mxu0 }
 0x2e2   : > { %v8997_v63 = vpop.f32.mrf.mxu1  ;;  %v9002_v51 = vpop.f32.mrf.mxu0 }
 0x2e4   : > { %v6802_v25 = vpop.f32.mrf.mxu1  ;;  %v9009_v9 = vpop.f32.mrf.mxu0 }
 0x2e5   : > { %v9000_v32 = vadd.f32 %v6802_v25, %v8893_v30 }
 0x2e6   : > { %v4415_v4 = vpop.f32.mrf.mxu1  ;;  %v9016_v14 = vpop.f32.mrf.mxu0 }
 0x2e7   : > { %v9005_v38 = vadd.f32 %v4415_v4, %v8898_v50 }
 0x2e8   : > { %v9007_v61 = vpop.f32.mrf.mxu1  ;;  %v9023_v50 = vpop.f32.mrf.mxu0 }
 0x2e9   : > { %9552 = vst [vmem:[#allocation21_spill] sm:$0xff] %v9005_v38  ;;  %9553 = vst [vmem:[#allocation26_spill] sm:$0xff] %v9007_v61 }
 0x2ea   : > { %v9011_v29 = vpop.f32.mrf.mxu1 }
 0x2eb   : > { %9554 = vst [vmem:[#allocation27_spill] sm:$0xff] %v9011_v29  ;;  %v9030_v29 = vpop.f32.mrf.mxu0 }
 0x2ec   : > { %v6806_v7 = vpop.f32.mrf.mxu1 }
 0x2ed   : > { %v9014_v37 = vadd.f32 %v6806_v7, %v8913_v16 }
 0x2ee   : > { %v4431_v30 = vpop.f32.mrf.mxu1 }
 0x2ef   : > { %9555 = vst [vmem:[#allocation12_spill] sm:$0xff] %v9014_v37  ;;  %v9019_v25 = vadd.f32 %v4431_v30, %v8918_v21  ;;  %v9037_v21 = vpop.f32.mrf.mxu0 }
 0x2f0   : > { %v9021_v5 = vpop.f32.mrf.mxu1 }
 0x2f1   : > { %9556 = vst [vmem:[#allocation10_spill] sm:$0xff] %v9019_v25  ;;  %9557 = vst [vmem:[#allocation25_spill] sm:$0xff] %v9021_v5 }
 0x2f2   : > { %v9025_v4 = vpop.f32.mrf.mxu1 }
 0x2f3   : > { %9558 = vst [vmem:[#allocation24_spill] sm:$0xff] %v9025_v4  ;;  %v9043_v4 = vpop.f32.mrf.mxu0 }
 0x2f4   : > { %v6810_v38 = vpop.f32.mrf.mxu1 }
 0x2f5   : > { %v9028_v61 = vadd.f32 %v6810_v38, %v8931_v36 }
 0x2f6   : > { %v4447_v7 = vpop.f32.mrf.mxu1 }
 0x2f7   : > { %9559 = vst [vmem:[#allocation28_spill] sm:$0xff] %v9028_v61  ;;  %v9033_v16 = vadd.f32 %v4447_v7, %v8936_v47  ;;  %v9049_v61 = vpop.f32.mrf.mxu0  ;;  %v4122_v7 = vadd.f32 %v8821_v48, %v8794_v1 }
 0x2f8   : > { %v9035_v37 = vpop.f32.mrf.mxu1 }
 0x2f9   : > { %9560 = vst [vmem:[#allocation30_spill] sm:$0xff] %v9033_v16  ;;  %v4839_v16 = vadd.f32 %v6820_v45, %v8944_v24 }
 0x2fa   : > { %v9039_v30 = vpop.f32.mrf.mxu1 }
 0x2fb   : > { %9561 = vst [vmem:[#allocation29_spill] sm:$0xff] %v9039_v30 }
 0x2fc   : > { %v6814_v25 = vpop.f32.mrf.mxu1 }
 0x2fd   : > { %v9041_v5 = vadd.f32 %v6814_v25, %v4149_v17  ;;  %v4120_v17 = vadd.f32 %v8828_v23, %v8798_v33  ;;  %v4481_v25 = vadd.f32 %v8951_v3, %v4122_v7 }
 0x2fe   : > { %v4463_v27 = vpop.f32.mrf.mxu1 }
 0x2ff   : > { %9562 = vst [vmem:[#allocation31_spill] sm:$0xff] %v9041_v5  ;;  %v9045_v36 = vadd.f32 %v4463_v27, %v4147_v55  ;;  %v4837_v27 = vadd.f32 %v4710_v54, %v8949_v58  ;;  %v4479_v1 = vadd.f32 %v8953_v28, %v4120_v17  ;;  %v4840_v48 = vadd.f32 %v6821_v41, %v4481_v25 }
 0x300   : > { %v9047_v38 = vpop.f32.mrf.mxu1  ;;  %v4126_v58 = vadd.f32 %v8842_v43, %v8815_v0 }
 0x301   : > { %9563 = vst [vmem:[#allocation32_spill] sm:$0xff] %v9045_v36  ;;  %9564 = vst [vmem:[#allocation33_spill] sm:$0xff] %v9047_v38  ;;  %v9060_v36 = vpop.f32.mrf.mxu0  ;;  %v4838_v5 = vadd.f32 %v4713_v20, %v4479_v1  ;;  %v4124_v20 = vadd.f32 %v8849_v31, %v8819_v56 }
 0x302   : > { %v9051_v47 = vpop.f32.mrf.mxu1 }
 0x303   : > { %9565 = vst [vmem:[#allocation34_spill] sm:$0xff] %v9051_v47  ;;  %v9065_v47 = vld [vmem:[%s9444_s4] ss:$0 sm:$0xff]  ;;  %v9071_v3 = vpop.f32.mrf.mxu0 }
 0x304   : > { %v6854_v30 = vpop.f32.mrf.mxu1 }
 0x305   : > { %v5198_v55 = vadd.f32 %v6854_v30, %v4839_v16  ;;  %v4843_v16 = vadd.f32 %v8975_v60, %v8958_v57  ;;  %v4841_v57 = vadd.f32 %v8979_v26, %v8963_v8  ;;  %v9084_v60 = vpop.f32.mrf.mxu0 }
 0x306   : > { %v5069_v38 = vpop.f32.mrf.mxu1 }
 0x307   : > { %v5196_v24 = vadd.f32 %v5069_v38, %v4837_v27  ;;  %v5237_v33 = vadd.f32 %v9065_v47, %v5198_v55  ;;  %v4485_v38 = vadd.f32 %v8965_v6, %v4126_v58  ;;  %v4483_v27 = vadd.f32 %v8967_v46, %v4124_v20  ;;  %v9091_v8 = vpop.f32.mrf.mxu0 }
 0x308   : > { %v6855_v45 = vpop.f32.mrf.mxu1  ;;  %v4130_v46 = vadd.f32 %v8863_v18, %v8836_v22  ;;  %v4845_v22 = vadd.f32 %v9002_v51, %v8973_v44 }
 0x309   : > { %v5199_v23 = vadd.f32 %v6855_v45, %v4840_v48  ;;  %v5235_v30 = vadd.f32 %v9065_v47, %v5196_v24  ;;  %v5269_v17 = vmax.f32 %v5237_v33, 0.0  ;;  %v4842_v24 = vadd.f32 %v8988_v19, %v4483_v27 }
 0x30a   : > { %v5072_v54 = vpop.f32.mrf.mxu1  ;;  %v4128_v19 = vadd.f32 %v8870_v39, %v8840_v13 }
 0x30b   : > { %v5238_v28 = vadd.f32 %v9065_v47, %v5199_v23  ;;  %v5197_v41 = vadd.f32 %v5072_v54, %v4838_v5  ;;  %v4844_v5 = vadd.f32 %v8983_v11, %v4485_v38  ;;  %v5267_v1 = vmax.f32 %v5235_v30, 0.0 }
 0x30c   : > { %v6858_v7 = vpop.f32.mrf.mxu1  ;;  %v4847_v11 = vadd.f32 %v8995_v52, %v8970_v59  ;;  %v4489_v30 = vadd.f32 %v8977_v42, %v4130_v46  ;;  %v4487_v20 = vadd.f32 %v8981_v53, %v4128_v19 }
 0x30d   : > { %v5270_v25 = vmax.f32 %v5238_v28, 0.0  ;;  %v5236_v0 = vadd.f32 %v9065_v47, %v5197_v41  ;;  %v5202_v43 = vadd.f32 %v6858_v7, %v4843_v16  ;;  %v9107_v7 = vpop.f32.mrf.mxu0 }
 0x30e   : > { %v5085_v55 = vpop.f32.mrf.mxu1  ;;  %v4848_v38 = vadd.f32 %v9009_v9, %v4489_v30  ;;  %v4846_v44 = vadd.f32 %v9016_v14, %v4487_v20  ;;  %v4132_v14 = vadd.f32 %v8890_v15, %v8861_v10 }
 0x30f   : > { %v5300_v56 = vpack.c.bf16 %v5270_v25, %v5269_v17  ;;  %v5268_v31 = vmax.f32 %v5236_v0, 0.0  ;;  %v5200_v6 = vadd.f32 %v5085_v55, %v4841_v57  ;;  %v5241_v33 = vadd.f32 %v9065_v47, %v5202_v43  ;;  %v9113_v53 = vpop.f32.mrf.mxu0 }
 0x310   : > { %v6859_v48 = vpop.f32.mrf.mxu1  ;;  %v4134_v57 = vadd.f32 %v8883_v2, %v8857_v49  ;;  %v4851_v55 = vadd.f32 %v9023_v50, %v8986_v34  ;;  %v4849_v49 = vadd.f32 %v9030_v29, %v8991_v35 }
 0x311   : > { %v5299_v45 = vpack.c.bf16 %v5268_v31, %v5267_v1  ;;  %v5203_v23 = vadd.f32 %v6859_v48, %v4844_v5  ;;  %v5239_v58 = vadd.f32 %v9065_v47, %v5200_v6  ;;  %v5273_v28 = vmax.f32 %v5241_v33, 0.0  ;;  %v9129_v33 = vpop.f32.mrf.mxu0 }
 0x312   : > { %v5088_v26 = vpop.f32.mrf.mxu1  ;;  %v4493_v31 = vadd.f32 %v8993_v40, %v4134_v57 }
 0x313   : > { %v5242_v54 = vadd.f32 %v9065_v47, %v5203_v23  ;;  %v5201_v16 = vadd.f32 %v5088_v26, %v4842_v24  ;;  %6886 = vmatprep.mubr.msk.bf16.mxu0 %vm498_vm1, %v5299_v45  ;;  %v5271_v39 = vmax.f32 %v5239_v58, 0.0  ;;  %v4491_v24 = vadd.f32 %v8997_v63, %v4132_v14  ;;  %v6844_v63 = vpop.f32.mrf.mxu0 }
 0x314   : > { %v6862_v18 = vpop.f32.mrf.mxu1  ;;  %6887 = vmatmul.mubr.msk.bf16.vlgmr.msra.gmra.mxu0 %vm498_vm1, %v5300_v56  ;;  %v4852_v45 = vadd.f32 %v9037_v21, %v4493_v31  ;;  %v4855_v21 = vadd.f32 %v9049_v61, %v9000_v32 }
 0x315   : > { %v5274_v52 = vmax.f32 %v5242_v54, 0.0  ;;  %v5240_v59 = vadd.f32 %v9065_v47, %v5201_v16  ;;  %v5206_v41 = vadd.f32 %v6862_v18, %v4847_v11  ;;  %v4850_v29 = vadd.f32 %v9043_v4, %v4491_v24  ;;  %v9566_v4 = vld [vmem:[#allocation13_spill] sm:$0xff]  ;;  %v9567_v18 = vld [vmem:[#allocation11_spill] sm:$0xff] }
 0x316   : > { %v5101_v13 = vpop.f32.mrf.mxu1  ;;  %v4138_v54 = vadd.f32 %v8903_v12, %v8876_v62  ;;  %v9576_v24 = vld [vmem:[#allocation25_spill] sm:$0xff] }
 0x317   : > { %v5302_v42 = vpack.c.bf16 %v5274_v52, %v5273_v28  ;;  %v5272_v17 = vmax.f32 %v5240_v59, 0.0  ;;  %v5204_v25 = vadd.f32 %v5101_v13, %v4845_v22  ;;  %v5245_v43 = vadd.f32 %v9065_v47, %v5206_v41  ;;  %v9568_v52 = vld [vmem:[#allocation26_spill] sm:$0xff]  ;;  %v9569_v41 = vld [vmem:[#allocation21_spill] sm:$0xff]  ;;  %v9570_v13 = vld [vmem:[#allocation27_spill] sm:$0xff] }
 0x318   : > { %v6863_v51 = vpop.f32.mrf.mxu1  ;;  %v4136_v28 = vadd.f32 %v9567_v18, %v9566_v4  ;;  %v4497_v59 = vadd.f32 %v9568_v52, %v4138_v54  ;;  %v4853_v62 = vadd.f32 %v9060_v36, %v9569_v41  ;;  %v9579_v52 = vld [vmem:[#allocation19_spill] sm:$0xff] }
 0x319   : > { %v5301_v0 = vpack.c.bf16 %v5272_v17, %v5271_v39  ;;  %v5207_v27 = vadd.f32 %v6863_v51, %v4848_v38  ;;  %v5243_v5 = vadd.f32 %v9065_v47, %v5204_v25  ;;  %v5277_v6 = vmax.f32 %v5245_v43, 0.0  ;;  %v4806_v17 = vpop.f32.mrf.mxu0 }
 0x31a   : > { %v5104_v9 = vpop.f32.mrf.mxu1  ;;  %v4495_v39 = vadd.f32 %v9570_v13, %v4136_v28  ;;  %v9582_v13 = vld [vmem:[#allocation14_spill] sm:$0xff] }
 0x31b   : > { %v5246_v1 = vadd.f32 %v9065_v47, %v5207_v27  ;;  %v5205_v56 = vadd.f32 %v5104_v9, %v4846_v44  ;;  %6890 = vmatprep.mubr.msk.bf16.mxu0 %vm498_vm1, %v5301_v0  ;;  %v5275_v15 = vmax.f32 %v5243_v5, 0.0  ;;  %v9571_v5 = vld [vmem:[#allocation17_spill] sm:$0xff]  ;;  %v6845_v14 = vpop.f32.mrf.mxu0 }
 0x31c   : > { %v6866_v2 = vpop.f32.mrf.mxu1  ;;  %6891 = vmatmul.mubr.msk.bf16.gmra.mxu0 %vm498_vm1, %v5302_v42  ;;  %v4856_v42 = vadd.f32 %v9071_v3, %v4497_v59  ;;  %v4854_v36 = vadd.f32 %v9084_v60, %v4495_v39  ;;  %v9574_v60 = vld [vmem:[#allocation16_spill] sm:$0xff]  ;;  %v9580_v59 = vld [vmem:[#allocation23_spill] sm:$0xff] }
 0x31d   : > { %v5278_v34 = vmax.f32 %v5246_v1, 0.0  ;;  %v5244_v50 = vadd.f32 %v9065_v47, %v5205_v56  ;;  %v5210_v48 = vadd.f32 %v6866_v2, %v4851_v55  ;;  %v9572_v1 = vld [vmem:[#allocation15_spill] sm:$0xff]  ;;  %v4146_v41 = vadd.f32 %v9580_v59, %v9579_v52 }
 0x31e   : > { %v5117_v10 = vpop.f32.mrf.mxu1  ;;  %v4142_v56 = vadd.f32 %v9572_v1, %v9571_v5 }
 0x31f   : > { %v5304_v40 = vpack.c.bf16 %v5278_v34, %v5277_v6  ;;  %v5276_v23 = vmax.f32 %v5244_v50, 0.0  ;;  %v5208_v46 = vadd.f32 %v5117_v10, %v4849_v49  ;;  %v5249_v11 = vadd.f32 %v9065_v47, %v5210_v48  ;;  %v9573_v49 = vld [vmem:[#allocation12_spill] sm:$0xff]  ;;  %v9575_v50 = vld [vmem:[#allocation9_spill] sm:$0xff]  ;;  %v9577_v10 = vld [vmem:[#allocation10_spill] sm:$0xff] }
 0x320   : > { %v6867_v35 = vpop.f32.mrf.mxu1  ;;  %v4859_v3 = vadd.f32 %v9091_v8, %v9573_v49  ;;  %v4140_v48 = vadd.f32 %v9575_v50, %v9574_v60  ;;  %v9587_v60 = vld [vmem:[#allocation8_spill] sm:$0xff] }
 0x321   : > { %v5303_v26 = vpack.c.bf16 %v5276_v23, %v5275_v15  ;;  %v5211_v58 = vadd.f32 %v6867_v35, %v4852_v45  ;;  %v5247_v19 = vadd.f32 %v9065_v47, %v5208_v46  ;;  %v5281_v20 = vmax.f32 %v5249_v11, 0.0 }
 0x322   : > { %v5120_v16 = vpop.f32.mrf.mxu1  ;;  %v4501_v45 = vadd.f32 %v9576_v24, %v4142_v56  ;;  %v4857_v15 = vadd.f32 %v9107_v7, %v9577_v10 }
 0x323   : > { %v5250_v30 = vadd.f32 %v9065_v47, %v5211_v58  ;;  %v5209_v22 = vadd.f32 %v5120_v16, %v4850_v29  ;;  %6894 = vmatprep.mubr.msk.bf16.mxu0 %vm498_vm1, %v5303_v26  ;;  %v5279_v51 = vmax.f32 %v5247_v19, 0.0  ;;  %v9578_v29 = vld [vmem:[#allocation24_spill] sm:$0xff]  ;;  %v4809_v58 = vpop.f32.mrf.mxu0 }
 0x324   : > { %v6870_v12 = vpop.f32.mrf.mxu1  ;;  %6895 = vmatmul.mubr.msk.bf16.gmra.mxu0 %vm498_vm1, %v5304_v40  ;;  %v4499_v26 = vadd.f32 %v9578_v29, %v4140_v48  ;;  %v4860_v11 = vadd.f32 %v9113_v53, %v4501_v45  ;;  %v9588_v45 = vld [vmem:[#allocation31_spill] sm:$0xff] }
 0x325   : > { %v5282_v61 = vmax.f32 %v5250_v30, 0.0  ;;  %v5248_v32 = vadd.f32 %v9065_v47, %v5209_v22  ;;  %v5214_v38 = vadd.f32 %v6870_v12, %v4855_v21 }
 0x326   : > { %v5133_v25 = vpop.f32.mrf.mxu1  ;;  %v4858_v7 = vadd.f32 %v9129_v33, %v4499_v26  ;;  %v9583_v33 = vld [vmem:[#allocation7_spill] sm:$0xff]  ;;  %v9592_v26 = vld [vmem:[#allocation32_spill] sm:$0xff] }
 0x327   : > { %v5306_v44 = vpack.c.bf16 %v5282_v61, %v5281_v20  ;;  %v5280_v0 = vmax.f32 %v5248_v32, 0.0  ;;  %v5212_v43 = vadd.f32 %v5133_v25, %v4853_v62  ;;  %v5253_v9 = vadd.f32 %v9065_v47, %v5214_v38  ;;  %v6848_v62 = vpop.f32.mrf.mxu0  ;;  %v9581_v20 = vld [vmem:[#allocation28_spill] sm:$0xff]  ;;  %v9584_v25 = vld [vmem:[#allocation30_spill] sm:$0xff] }
 0x328   : > { %v6871_v27 = vpop.f32.mrf.mxu1  ;;  %v4863_v53 = vadd.f32 %v6844_v63, %v9581_v20  ;;  %v4144_v39 = vadd.f32 %v9583_v33, %v9582_v13  ;;  %v4867_v10 = vadd.f32 %v6848_v62, %v9588_v45 }
 0x329   : > { %v5305_v57 = vpack.c.bf16 %v5280_v0, %v5279_v51  ;;  %v5215_v55 = vadd.f32 %v6871_v27, %v4856_v42  ;;  %v5251_v2 = vadd.f32 %v9065_v47, %v5212_v43  ;;  %v5285_v23 = vmax.f32 %v5253_v9, 0.0 }
 0x32a   : > { %v5136_v31 = vpop.f32.mrf.mxu1  ;;  %v4505_v42 = vadd.f32 %v9035_v37, %v4146_v41  ;;  %v4861_v51 = vadd.f32 %v4806_v17, %v9584_v25 }
 0x32b   : > { %v5254_v6 = vadd.f32 %v9065_v47, %v5215_v55  ;;  %v5213_v34 = vadd.f32 %v5136_v31, %v4854_v36  ;;  %6898 = vmatprep.mubr.msk.bf16.mxu0 %vm498_vm1, %v5305_v57  ;;  %v5283_v16 = vmax.f32 %v5251_v2, 0.0  ;;  %v9585_v36 = vld [vmem:[#allocation29_spill] sm:$0xff]  ;;  %v4822_v55 = vpop.f32.mrf.mxu0 }
 0x32c   : > { %v6874_v40 = vpop.f32.mrf.mxu1  ;;  %6899 = vmatmul.mubr.msk.bf16.gmra.mxu0 %vm498_vm1, %v5306_v44  ;;  %v4503_v57 = vadd.f32 %v9585_v36, %v4144_v39  ;;  %v4864_v9 = vadd.f32 %v6845_v14, %v4505_v42 }
 0x32d   : > { %v5286_v8 = vmax.f32 %v5254_v6, 0.0  ;;  %v5252_v46 = vadd.f32 %v9065_v47, %v5213_v34  ;;  %v5218_v35 = vadd.f32 %v6874_v40, %v4859_v3  ;;  %v9586_v34 = vld [vmem:[#allocation18_spill] sm:$0xff]  ;;  %v6849_v48 = vpop.f32.mrf.mxu0 }
 0x32e   : > { %v5149_v54 = vpop.f32.mrf.mxu1  ;;  %v4862_v3 = vadd.f32 %v4809_v58, %v4503_v57  ;;  %v4150_v50 = vadd.f32 %v9587_v60, %v9586_v34  ;;  %v9227_v34 = vld [vmem:[%s9446_s6] ss:$0 sm:$0xff] }
 0x32f   : > { %v5308_v21 = vpack.c.bf16 %v5286_v8, %v5285_v23  ;;  %v5284_v19 = vmax.f32 %v5252_v46, 0.0  ;;  %v5216_v30 = vadd.f32 %v5149_v54, %v4857_v15  ;;  %v5257_v18 = vadd.f32 %v9065_v47, %v5218_v35  ;;  %v9589_v23 = vld [vmem:[#allocation22_spill] sm:$0xff]  ;;  %v9590_v8 = vld [vmem:[#allocation20_spill] sm:$0xff]  ;;  %v9591_v35 = vld [vmem:[#allocation33_spill] sm:$0xff] }
 0x330   : > { %v6875_v22 = vpop.f32.mrf.mxu1  ;;  %v4148_v46 = vadd.f32 %v9590_v8, %v9589_v23  ;;  %v4509_v29 = vadd.f32 %v9591_v35, %v4150_v50 }
 0x331   : > { %v5307_v4 = vpack.c.bf16 %v5284_v19, %v5283_v16  ;;  %v5219_v28 = vadd.f32 %v6875_v22, %v4860_v11  ;;  %v5255_v61 = vadd.f32 %v9065_v47, %v5216_v30  ;;  %v5289_v0 = vmax.f32 %v5257_v18, 0.0  ;;  %v9593_v30 = vld [vmem:[#allocation34_spill] sm:$0xff] }
 0x332   : > { %v5152_v12 = vpop.f32.mrf.mxu1  ;;  %v4865_v11 = vadd.f32 %v4822_v55, %v9592_v26  ;;  %v4507_v22 = vadd.f32 %v9593_v30, %v4148_v46 }
 0x333   : > { %v5258_v32 = vadd.f32 %v9065_v47, %v5219_v28  ;;  %v5217_v38 = vadd.f32 %v5152_v12, %v4858_v7  ;;  %6902 = vmatprep.mubr.msk.bf16.mxu0 %vm498_vm1, %v5307_v4  ;;  %v5287_v1 = vmax.f32 %v5255_v61, 0.0  ;;  %v4868_v7 = vadd.f32 %v6849_v48, %v4509_v29  ;;  %v4825_v4 = vpop.f32.mrf.mxu0 }
 0x334   : > { %v6878_v44 = vpop.f32.mrf.mxu1  ;;  %6903 = vmatmul.mubr.msk.bf16.gmra.mxu0 %vm498_vm1, %v5308_v21  ;;  %v4866_v12 = vadd.f32 %v4825_v4, %v4507_v22 }
 0x335   : > { %v5290_v43 = vmax.f32 %v5258_v32, 0.0  ;;  %v5256_v63 = vadd.f32 %v9065_v47, %v5217_v38  ;;  %v5222_v27 = vadd.f32 %v6878_v44, %v4863_v53 }
 0x336   : > { %v5165_v5 = vpop.f32.mrf.mxu1 }
 0x337   : > { %v5310_v56 = vpack.c.bf16 %v5290_v43, %v5289_v0  ;;  %v5288_v31 = vmax.f32 %v5256_v63, 0.0  ;;  %v5220_v49 = vadd.f32 %v5165_v5, %v4861_v51  ;;  %v5261_v2 = vadd.f32 %v9065_v47, %v5222_v27 }
 0x338   : > { %v6879_v37 = vpop.f32.mrf.mxu1 }
 0x339   : > { %v5309_v17 = vpack.c.bf16 %v5288_v31, %v5287_v1  ;;  %v5223_v6 = vadd.f32 %v6879_v37, %v4864_v9  ;;  %v5259_v14 = vadd.f32 %v9065_v47, %v5220_v49  ;;  %v5293_v54 = vmax.f32 %v5261_v2, 0.0  ;;  %v9219_v2 = vld [vmem:[%s9448_s8] ss:$0 sm:$0xff] }
 0x33a   : > { %v5168_v24 = vpop.f32.mrf.mxu1 }
 0x33b   : > { %v5262_v15 = vadd.f32 %v9065_v47, %v5223_v6  ;;  %v5221_v40 = vadd.f32 %v5168_v24, %v4862_v3  ;;  %6906 = vmatprep.mubr.msk.bf16.mxu0 %vm498_vm1, %v5309_v17  ;;  %v5291_v28 = vmax.f32 %v5259_v14, 0.0 }
 0x33c   : > { %v6882_v58 = vpop.f32.mrf.mxu1  ;;  %6907 = vmatmul.mubr.msk.bf16.gmra.mxu0 %vm498_vm1, %v5310_v56 }
 0x33d   : > { %v5294_v16 = vmax.f32 %v5262_v15, 0.0  ;;  %v5260_v21 = vadd.f32 %v9065_v47, %v5221_v40  ;;  %v5226_v19 = vadd.f32 %v6882_v58, %v4867_v10 }
 0x33e   : > { %v5181_v18 = vpop.f32.mrf.mxu1 }
 0x33f   : > { %v5312_v52 = vpack.c.bf16 %v5294_v16, %v5293_v54  ;;  %v5292_v59 = vmax.f32 %v5260_v21, 0.0  ;;  %v5224_v41 = vadd.f32 %v5181_v18, %v4865_v11  ;;  %v5265_v53 = vadd.f32 %v9065_v47, %v5226_v19 }
 0x340   : > { %v6883_v62 = vpop.f32.mrf.mxu1 }
 0x341   : > { %v5311_v20 = vpack.c.bf16 %v5292_v59, %v5291_v28  ;;  %v5227_v61 = vadd.f32 %v6883_v62, %v4868_v7  ;;  %v5263_v38 = vadd.f32 %v9065_v47, %v5224_v41  ;;  %v5297_v39 = vmax.f32 %v5265_v53, 0.0 }
 0x342   : > { %v5184_v32 = vpop.f32.mrf.mxu1 }
 0x343   : > { %v5266_v13 = vadd.f32 %v9065_v47, %v5227_v61  ;;  %v5225_v33 = vadd.f32 %v5184_v32, %v4866_v12  ;;  %6910 = vmatprep.mubr.msk.bf16.mxu0 %vm498_vm1, %v5311_v20  ;;  %v5295_v51 = vmax.f32 %v5263_v38, 0.0 }
 0x344   : > { %6911 = vmatmul.mubr.msk.bf16.gmra.mxu0 %vm498_vm1, %v5312_v52  ;;  %v6922_v63 = vpop.f32.mrf.mxu1 }
 0x345   : > { %v5298_v42 = vmax.f32 %v5266_v13, 0.0  ;;  %v5264_v25 = vadd.f32 %v9065_v47, %v5225_v33  ;;  %v5589_v60 = vadd.f32 %v6922_v63, %v9219_v2 }
 0x346   : > { %v5580_v27 = vpop.f32.mrf.mxu1 }
 0x347   : > { %v5314_v44 = vpack.c.bf16 %v5298_v42, %v5297_v39  ;;  %v5296_v0 = vmax.f32 %v5264_v25, 0.0  ;;  %v5581_v10 = vadd.f32 %v9219_v2, %v5580_v27 }
 0x348   : > { %v6923_v36 = vpop.f32.mrf.mxu1 }
 0x349   : > { %v5313_v43 = vpack.c.bf16 %v5296_v0, %v5295_v51  ;;  %v5592_v8 = vadd.f32 %v6923_v36, %v9219_v2 }
 0x34a   : > { %v5583_v57 = vpop.f32.mrf.mxu1 }
 0x34b   : > { %6914 = vmatprep.mubr.msk.bf16.mxu0 %vm498_vm1, %v5313_v43  ;;  %v5584_v26 = vadd.f32 %v9219_v2, %v5583_v57 }
 0x34c   : > { %6915 = vmatmul.mubr.msk.bf16.gmra.mxu0 %vm498_vm1, %v5314_v44  ;;  %v6926_v9 = vpop.f32.mrf.mxu1 }
 0x34d   : > { %v5605_v54 = vadd.f32 %v6926_v9, %v9219_v2 }
 0x34e   : > { %v5596_v55 = vpop.f32.mrf.mxu1 }
 0x34f   : > { %v5597_v28 = vadd.f32 %v9219_v2, %v5596_v55 }
 0x350   : > { %v6927_v5 = vpop.f32.mrf.mxu1 }
 0x351   : > { %v5608_v20 = vadd.f32 %v6927_v5, %v9219_v2 }
 0x352   : > { %v5599_v1 = vpop.f32.mrf.mxu1 }
 0x353   : > { %v5600_v38 = vadd.f32 %v9219_v2, %v5599_v1 }
 0x354   : > { %v6930_v56 = vpop.f32.mrf.mxu1 }
 0x355   : > { %v5621_v39 = vadd.f32 %v6930_v56, %v9219_v2 }
 0x356   : > { %v9204_v47 = vpop.f32.mrf.mxu1 }
 0x357   : > { %v5613_v36 = vadd.f32 %v9219_v2, %v9204_v47 }
 0x358   : > { %v9206_v31 = vpop.f32.mrf.mxu1 }
 0x359   : > { %v5624_v56 = vadd.f32 %v9206_v31, %v9219_v2 }
 0x35a   : > { %v9208_v49 = vpop.f32.mrf.mxu1 }
 0x35b   : > { %v5616_v47 = vadd.f32 %v9219_v2, %v9208_v49 }
 0x35c   : > { %v9210_v37 = vpop.f32.mrf.mxu1 }
 0x35e   : > { %v9212_v3 = vpop.f32.mrf.mxu1 }
 0x360   : > { %v9214_v17 = vpop.f32.mrf.mxu1 }
 0x362   : > { %v9221_v6 = vpop.f32.mrf.mxu1 }
 0x364   : > { %v9230_v48 = vpop.f32.mrf.mxu1 }
 0x366   : > { %v9237_v23 = vpop.f32.mrf.mxu1 }
 0x368   : > { %v9248_v30 = vpop.f32.mrf.mxu1 }
 0x36a   : > { %v9257_v12 = vpop.f32.mrf.mxu1 }
 0x36c   : > { %v9268_v44 = vpop.f32.mrf.mxu1 }
 0x36e   : > { %v9278_v1 = vpop.f32.mrf.mxu1 }
 0x3d4   : > { %v6888_v50 = vpop.f32.mrf.mxu0 }
 0x3d5   : > { %v5417_v24 = vadd.f32 %v6888_v50, %v9227_v34 }
 0x3d6   : > { %v5408_v45 = vpop.f32.mrf.mxu0 }
 0x3d7   : > { %v5709_v14 = vadd.f32 %v5589_v60, %v5417_v24  ;;  %v5409_v15 = vadd.f32 %v9227_v34, %v5408_v45 }
 0x3d8   : > { %v6889_v40 = vpop.f32.mrf.mxu0 }
 0x3d9   : > { %v5741_v46 = vmax.f32 %v5709_v14, 0.0  ;;  %v5707_v35 = vadd.f32 %v5581_v10, %v5409_v15  ;;  %v5420_v29 = vadd.f32 %v6889_v40, %v9227_v34  ;;  %v5637_v14 = vadd.f32 %v9210_v37, %v9219_v2 }
 0x3da   : > { %v5411_v11 = vpop.f32.mrf.mxu0  ;;  %v5629_v37 = vadd.f32 %v9219_v2, %v9212_v3  ;;  %v5632_v3 = vadd.f32 %v9219_v2, %v9221_v6 }
 0x3db   : > { %5774 = vst.msk [vmem:[%s9242_s17 + $0x10] sm:$0xff] %vm5771_vm9, %v5741_v46  ;;  %v5739_v58 = vmax.f32 %v5707_v35, 0.0  ;;  %v5710_v16 = vadd.f32 %v5592_v8, %v5420_v29  ;;  %v5412_v21 = vadd.f32 %v9227_v34, %v5411_v11  ;;  %v9292_v8 = vpop.f32.mrf.mxu1 }
 0x3dc   : > { %v6892_v19 = vpop.f32.mrf.mxu0 }
 0x3dd   : > { %5772 = vst.msk [vmem:[%s9242_s17] sm:$0xff] %vm5771_vm9, %v5739_v58  ;;  %v5742_v22 = vmax.f32 %v5710_v16, 0.0  ;;  %v5708_v7 = vadd.f32 %v5584_v26, %v5412_v21  ;;  %v5433_v4 = vadd.f32 %v6892_v19, %v9227_v34  ;;  %v5663_v16 = vpop.f32.mrf.mxu1  ;;  %v5640_v21 = vadd.f32 %v9214_v17, %v9219_v2 }
 0x3de   : > { %v5424_v18 = vpop.f32.mrf.mxu0 }
 0x3df   : > { %5775 = vst.msk [vmem:[%s9242_s17 + $0x18] sm:$0xff] %vm5771_vm9, %v5742_v22  ;;  %v5740_v52 = vmax.f32 %v5708_v7, 0.0  ;;  %v5713_v59 = vadd.f32 %v5605_v54, %v5433_v4  ;;  %v5425_v41 = vadd.f32 %v9227_v34, %v5424_v18 }
 0x3e0   : > { %v6893_v62 = vpop.f32.mrf.mxu0 }
 0x3e1   : > { %5773 = vst.msk [vmem:[%s9242_s17 + $0x8] sm:$0xff] %vm5771_vm9, %v5740_v52  ;;  %v5745_v53 = vmax.f32 %v5713_v59, 0.0  ;;  %v5711_v61 = vadd.f32 %v5597_v28, %v5425_v41  ;;  %v5436_v32 = vadd.f32 %v6893_v62, %v9227_v34  ;;  %v5653_v28 = vadd.f32 %v9230_v48, %v9219_v2  ;;  %v6946_v41 = vpop.f32.mrf.mxu1 }
 0x3e2   : > { %v5427_v13 = vpop.f32.mrf.mxu0 }
 0x3e3   : > { %5778 = vst.msk [vmem:[%s9242_s17 + $0x30] sm:$0xff] %vm5771_vm9, %v5745_v53  ;;  %v5743_v33 = vmax.f32 %v5711_v61, 0.0  ;;  %v5714_v42 = vadd.f32 %v5608_v20, %v5436_v32  ;;  %v5428_v25 = vadd.f32 %v9227_v34, %v5427_v13  ;;  %v5645_v61 = vadd.f32 %v9219_v2, %v9237_v23 }
 0x3e4   : > { %v6896_v51 = vpop.f32.mrf.mxu0  ;;  %v5648_v23 = vadd.f32 %v9219_v2, %v9257_v12 }
 0x3e5   : > { %5776 = vst.msk [vmem:[%s9242_s17 + $0x20] sm:$0xff] %vm5771_vm9, %v5743_v33  ;;  %v5746_v0 = vmax.f32 %v5714_v42, 0.0  ;;  %v5712_v43 = vadd.f32 %v5600_v38, %v5428_v25  ;;  %v5449_v63 = vadd.f32 %v6896_v51, %v9227_v34  ;;  %v5676_v33 = vpop.f32.mrf.mxu1 }
 0x3e6   : > { %v5440_v27 = vpop.f32.mrf.mxu0 }
 0x3e7   : > { %5779 = vst.msk [vmem:[%s9242_s17 + $0x38] sm:$0xff] %vm5771_vm9, %v5746_v0  ;;  %v5744_v57 = vmax.f32 %v5712_v43, 0.0  ;;  %v5717_v9 = vadd.f32 %v5621_v39, %v5449_v63  ;;  %v5441_v55 = vadd.f32 %v9227_v34, %v5440_v27  ;;  %v5656_v39 = vadd.f32 %v9248_v30, %v9219_v2 }
 0x3e8   : > { %v6897_v5 = vpop.f32.mrf.mxu0  ;;  %v5669_v63 = vadd.f32 %v9268_v44, %v9219_v2 }
 0x3e9   : > { %5777 = vst.msk [vmem:[%s9242_s17 + $0x28] sm:$0xff] %vm5771_vm9, %v5744_v57  ;;  %v5749_v60 = vmax.f32 %v5717_v9, 0.0  ;;  %v5715_v50 = vadd.f32 %v5613_v36, %v5441_v55  ;;  %v5452_v24 = vadd.f32 %v6897_v5, %v9227_v34  ;;  %v6947_v57 = vpop.f32.mrf.mxu1 }
 0x3ea   : > { %v5443_v45 = vpop.f32.mrf.mxu0 }
 0x3eb   : > { %5782 = vst.msk [vmem:[%s9242_s17 + $0x50] sm:$0xff] %vm5771_vm9, %v5749_v60  ;;  %v5747_v10 = vmax.f32 %v5715_v50, 0.0  ;;  %v5718_v15 = vadd.f32 %v5624_v56, %v5452_v24  ;;  %v5444_v40 = vadd.f32 %v9227_v34, %v5443_v45  ;;  %v5661_v56 = vadd.f32 %v9219_v2, %v9278_v1 }
 0x3ec   : > { %v6900_v31 = vpop.f32.mrf.mxu0  ;;  %v5672_v45 = vadd.f32 %v9292_v8, %v9219_v2 }
 0x3ed   : > { %5780 = vst.msk [vmem:[%s9242_s17 + $0x40] sm:$0xff] %vm5771_vm9, %v5747_v10  ;;  %v5750_v46 = vmax.f32 %v5718_v15, 0.0  ;;  %v5716_v35 = vadd.f32 %v5616_v47, %v5444_v40  ;;  %v5465_v49 = vadd.f32 %v6900_v31, %v9227_v34  ;;  %v5679_v47 = vpop.f32.mrf.mxu1  ;;  %v5664_v40 = vadd.f32 %v9219_v2, %v5663_v16 }
 0x3ee   : > { %v5456_v29 = vpop.f32.mrf.mxu0 }
 0x3ef   : > { %5783 = vst.msk [vmem:[%s9242_s17 + $0x58] sm:$0xff] %vm5771_vm9, %v5750_v46  ;;  %v5748_v26 = vmax.f32 %v5716_v35, 0.0  ;;  %v5721_v11 = vadd.f32 %v5637_v14, %v5465_v49  ;;  %v5457_v58 = vadd.f32 %v9227_v34, %v5456_v29  ;;  %v5685_v46 = vadd.f32 %v6946_v41, %v9219_v2 }
 0x3f0   : > { %v6901_v54 = vpop.f32.mrf.mxu0 }
 0x3f1   : > { %5781 = vst.msk [vmem:[%s9242_s17 + $0x48] sm:$0xff] %vm5771_vm9, %v5748_v26  ;;  %v5753_v19 = vmax.f32 %v5721_v11, 0.0  ;;  %v5719_v22 = vadd.f32 %v5629_v37, %v5457_v58  ;;  %v5468_v7 = vadd.f32 %v6901_v54, %v9227_v34  ;;  %v6950_v37 = vpop.f32.mrf.mxu1  ;;  %v5677_v54 = vadd.f32 %v9219_v2, %v5676_v33 }
 0x3f2   : > { %v5459_v4 = vpop.f32.mrf.mxu0  ;;  %v5701_v41 = vadd.f32 %v6950_v37, %v9219_v2 }
 0x3f3   : > { %5786 = vst.msk [vmem:[%s9242_s17 + $0x70] sm:$0xff] %vm5771_vm9, %v5753_v19  ;;  %v5751_v18 = vmax.f32 %v5719_v22, 0.0  ;;  %v5722_v52 = vadd.f32 %v5640_v21, %v5468_v7  ;;  %v5460_v59 = vadd.f32 %v9227_v34, %v5459_v4  ;;  %v5692_v7 = vpop.f32.mrf.mxu1 }
 0x3f4   : > { %v6904_v17 = vpop.f32.mrf.mxu0 }
 0x3f5   : > { %5784 = vst.msk [vmem:[%s9242_s17 + $0x60] sm:$0xff] %vm5771_vm9, %v5751_v18  ;;  %v5754_v62 = vmax.f32 %v5722_v52, 0.0  ;;  %v5720_v20 = vadd.f32 %v5632_v3, %v5460_v59  ;;  %v5481_v53 = vadd.f32 %v6904_v17, %v9227_v34  ;;  %v5688_v3 = vadd.f32 %v6947_v57, %v9219_v2 }
 0x3f6   : > { %v5472_v6 = vpop.f32.mrf.mxu0  ;;  %v5680_v52 = vadd.f32 %v9219_v2, %v5679_v47 }
 0x3f7   : > { %5787 = vst.msk [vmem:[%s9242_s17 + $0x78] sm:$0xff] %vm5771_vm9, %v5754_v62  ;;  %v5752_v48 = vmax.f32 %v5720_v20, 0.0  ;;  %v5725_v32 = vadd.f32 %v5653_v28, %v5481_v53  ;;  %v5473_v38 = vadd.f32 %v9227_v34, %v5472_v6  ;;  %v6951_v53 = vpop.f32.mrf.mxu1 }
 0x3f8   : > { %v6905_v13 = vpop.f32.mrf.mxu0 }
 0x3f9   : > { %5785 = vst.msk [vmem:[%s9242_s17 + $0x68] sm:$0xff] %vm5771_vm9, %v5752_v48  ;;  %v5757_v42 = vmax.f32 %v5725_v32, 0.0  ;;  %v5723_v25 = vadd.f32 %v5645_v61, %v5473_v38  ;;  %v5484_v51 = vadd.f32 %v6905_v13, %v9227_v34  ;;  %v5693_v13 = vadd.f32 %v9219_v2, %v5692_v7 }
 0x3fa   : > { %v5475_v0 = vpop.f32.mrf.mxu0 }
 0x3fb   : > { %5790 = vst.msk [vmem:[%s9242_s17 + $0x90] sm:$0xff] %vm5771_vm9, %v5757_v42  ;;  %v5755_v43 = vmax.f32 %v5723_v25, 0.0  ;;  %v5726_v27 = vadd.f32 %v5656_v39, %v5484_v51  ;;  %v5476_v36 = vadd.f32 %v9227_v34, %v5475_v0  ;;  %v5695_v25 = vpop.f32.mrf.mxu1 }
 0x3fc   : > { %v6908_v30 = vpop.f32.mrf.mxu0 }
 0x3fd   : > { %5788 = vst.msk [vmem:[%s9242_s17 + $0x80] sm:$0xff] %vm5771_vm9, %v5755_v43  ;;  %v5758_v9 = vmax.f32 %v5726_v27, 0.0  ;;  %v5724_v55 = vadd.f32 %v5648_v23, %v5476_v36  ;;  %v5497_v5 = vadd.f32 %v6908_v30, %v9227_v34  ;;  %v5704_v23 = vadd.f32 %v6951_v53, %v9219_v2 }
 0x3fe   : > { %v5488_v12 = vpop.f32.mrf.mxu0  ;;  %v5696_v36 = vadd.f32 %v9219_v2, %v5695_v25 }
 0x3ff   : > { %5791 = vst.msk [vmem:[%s9242_s17 + $0x98] sm:$0xff] %vm5771_vm9, %v5758_v9  ;;  %v5756_v44 = vmax.f32 %v5724_v55, 0.0  ;;  %v5729_v60 = vadd.f32 %v5669_v63, %v5497_v5  ;;  %v5489_v50 = vadd.f32 %v9227_v34, %v5488_v12 }
 0x400   : > { %v6909_v24 = vpop.f32.mrf.mxu0 }
 0x401   : > { %5789 = vst.msk [vmem:[%s9242_s17 + $0x88] sm:$0xff] %vm5771_vm9, %v5756_v44  ;;  %v5761_v10 = vmax.f32 %v5729_v60, 0.0  ;;  %v5727_v14 = vadd.f32 %v5661_v56, %v5489_v50  ;;  %v5500_v15 = vadd.f32 %v6909_v24, %v9227_v34 }
 0x402   : > { %v5491_v1 = vpop.f32.mrf.mxu0 }
 0x403   : > { %5794 = vst.msk [vmem:[%s9242_s17 + $0xb0] sm:$0xff] %vm5771_vm9, %v5761_v10  ;;  %v5759_v31 = vmax.f32 %v5727_v14, 0.0  ;;  %v5730_v35 = vadd.f32 %v5672_v45, %v5500_v15  ;;  %v5492_v49 = vadd.f32 %v9227_v34, %v5491_v1 }
 0x404   : > { %v6912_v29 = vpop.f32.mrf.mxu0 }
 0x405   : > { %5792 = vst.msk [vmem:[%s9242_s17 + $0xa0] sm:$0xff] %vm5771_vm9, %v5759_v31  ;;  %v5762_v8 = vmax.f32 %v5730_v35, 0.0  ;;  %v5728_v26 = vadd.f32 %v5664_v40, %v5492_v49  ;;  %v5513_v11 = vadd.f32 %v6912_v29, %v9227_v34 }
 0x406   : > { %v5504_v58 = vpop.f32.mrf.mxu0 }
 0x407   : > { %5795 = vst.msk [vmem:[%s9242_s17 + $0xb8] sm:$0xff] %vm5771_vm9, %v5762_v8  ;;  %v5760_v16 = vmax.f32 %v5728_v26, 0.0  ;;  %v5733_v21 = vadd.f32 %v5685_v46, %v5513_v11  ;;  %v5505_v19 = vadd.f32 %v9227_v34, %v5504_v58 }
 0x408   : > { %v6913_v22 = vpop.f32.mrf.mxu0 }
 0x409   : > { %5793 = vst.msk [vmem:[%s9242_s17 + $0xa8] sm:$0xff] %vm5771_vm9, %v5760_v16  ;;  %v5765_v4 = vmax.f32 %v5733_v21, 0.0  ;;  %v5731_v18 = vadd.f32 %v5677_v54, %v5505_v19  ;;  %v5516_v28 = vadd.f32 %v6913_v22, %v9227_v34 }
 0x40a   : > { %v5507_v59 = vpop.f32.mrf.mxu0 }
 0x40b   : > { %5798 = vst.msk [vmem:[%s9242_s17 + $0xd0] sm:$0xff] %vm5771_vm9, %v5765_v4  ;;  %v5763_v17 = vmax.f32 %v5731_v18, 0.0  ;;  %v5734_v62 = vadd.f32 %v5688_v3, %v5516_v28  ;;  %v5508_v20 = vadd.f32 %v9227_v34, %v5507_v59 }
 0x40c   : > { %v6916_v6 = vpop.f32.mrf.mxu0 }
 0x40d   : > { %5796 = vst.msk [vmem:[%s9242_s17 + $0xc0] sm:$0xff] %vm5771_vm9, %v5763_v17  ;;  %v5766_v61 = vmax.f32 %v5734_v62, 0.0  ;;  %v5732_v48 = vadd.f32 %v5680_v52, %v5508_v20  ;;  %v5529_v32 = vadd.f32 %v6916_v6, %v9227_v34 }
 0x40e   : > { %v5520_v38 = vpop.f32.mrf.mxu0 }
 0x40f   : > { %5799 = vst.msk [vmem:[%s9242_s17 + $0xd8] sm:$0xff] %vm5771_vm9, %v5766_v61  ;;  %v5764_v33 = vmax.f32 %v5732_v48, 0.0  ;;  %v5737_v39 = vadd.f32 %v5701_v41, %v5529_v32  ;;  %v5521_v42 = vadd.f32 %v9227_v34, %v5520_v38 }
 0x410   : > { %v6917_v51 = vpop.f32.mrf.mxu0 }
 0x411   : > { %5797 = vst.msk [vmem:[%s9242_s17 + $0xc8] sm:$0xff] %vm5771_vm9, %v5764_v33  ;;  %v5769_v0 = vmax.f32 %v5737_v39, 0.0  ;;  %v5735_v43 = vadd.f32 %v5693_v13, %v5521_v42  ;;  %v5532_v63 = vadd.f32 %v6917_v51, %v9227_v34 }
 0x412   : > { %v5523_v27 = vpop.f32.mrf.mxu0 }
 0x413   : > { %5802 = vst.msk [vmem:[%s9242_s17 + $0xf0] sm:$0xff] %vm5771_vm9, %v5769_v0  ;;  %v5767_v30 = vmax.f32 %v5735_v43, 0.0  ;;  %v5738_v57 = vadd.f32 %v5704_v23, %v5532_v63  ;;  %v5524_v9 = vadd.f32 %v9227_v34, %v5523_v27 }
 0x415   : > { %5800 = vst.msk [vmem:[%s9242_s17 + $0xe0] sm:$0xff] %vm5771_vm9, %v5767_v30  ;;  %v5770_v55 = vmax.f32 %v5738_v57, 0.0  ;;  %v5736_v5 = vadd.f32 %v5696_v36, %v5524_v9 }
 0x417   : > { %5803 = vst.msk [vmem:[%s9242_s17 + $0xf8] sm:$0xff] %vm5771_vm9, %v5770_v55  ;;  %v5768_v2 = vmax.f32 %v5736_v5, 0.0 }
 0x419   : > { %5801 = vst.msk [vmem:[%s9242_s17 + $0xe8] sm:$0xff] %vm5771_vm9, %v5768_v2 }
 0x41a   : > { %7198 = shalt.err (!%p7195_p3)
}
 0x41b   : > { %s7199_s28 = scalar_lea.hbm %s9390_s24, 4096  ;;  %s7203_s21 = scalar_lea.hbm %s9449_s9, 8192 }
 0x41c   : > { %p7200_p4 = scmp.ne.s32.totalorder %s9390_s24, %s7199_s28  ;;  %p7204_p9 = scmp.lt.s32.totalorder %s9390_s24, %s9449_s9 }
 0x41d   : > { %p7205_p10 = scmp.lt.s32.totalorder %s7203_s21, %s7199_s28 }
 0x41e   : > { %p7201_p7 = pnand %p7200_p4, %p7339_p5 }
 0x41f   : > { %p7206_p11 = por %p7205_p10, %p7204_p9 }
 0x420   : > { %p7202_p8 = pneg %p7201_p7 }
 0x422   : > { %p7207_p12 = pnand %p7206_p11, %p7202_p8 }
 0x424   : > { %7210 = shalt.err (!%p7207_p12)
}
 0x425   : > { %s7249_s25 = smov 128   ;;  %s7250_s26 = smov 8  }
 0x426   : > { %6964 = dma.vmem_to_hbm [thread:$0]  (%p7339_p5), %s9392_s22, 4096, %s9390_s24, %s9400_s13, %s7249_s25, %s7249_s25, %s7250_s26  }
 0x427 PF: > { %p6970_p13 = scmp.ge.s32.totalorder %s7245_s12, 2  ;;  %s5833_s29 = sand.u32 1, %s7233_s30  }
 0x428   : > { %s5834_s14 = scalar_lea.sflag [#allocation5], %s5833_s29 }
 0x429   : > { %p6967_p0 = pnand %p6970_p13, %p7343_p6 }
 0x42b   : > { %p6968_p1 = pneg %p6967_p0 }
 0x42d   : > { %7228 = dma.done.wait (%p6968_p1), %s5834_s14, 4096  }
 0x42e   : > { %7230 = vsyncadd (%p6968_p1), %s5834_s14, 4294963200  ;;  %p19_p2 = scmp.ge.s32.totalorder %s7326_s15, 4   ;;  %s9594_s30 = smov %s7237_s10 }
 0x42f   : > { %s9595_s10 = smov %s7241_s11  ;;  %s9596_s11 = smov %s7337_s18 }
 0x430   : > { %s9597_s12 = smov %s7326_s15  ;;  %21 = sbr.rel (!%p19_p2) target bundleno = 3 (0x3), region = 109 }
 0x435   :  { %5839 = vsyncpa [#allocation5], 1 }
 0x436   :  { %5841 = vsyncpa [#allocation5 + $0x1], 1 }

</bundles_post_ra>
